<compile_context>
chip_gen: v7x
topology: tpu7x:2x2x1
jax: 0.10.0
libtpu: 0.0.40
codegen_flags: <defaults>
</compile_context>

<pallas_src>
import functools

import jax
import jax.numpy as jnp
from jax.experimental import pallas as pl
from jax.experimental.pallas import tpu as pltpu


# ----------------------------------------------------------------------------
# Fused Pallas kernel
# ----------------------------------------------------------------------------

def _deepfamq_kernel(pat_ref, wc_ref, bc_ref, wx_ref, bx_ref, wh_ref,
                     w1_ref, b1_ref, w2_ref, b2_ref, w3_ref, b3_ref,
                     o_ref, xg_ref):
    """One fused kernel: conv+pool -> gate projection -> biLSTM -> MLP head.

    pat: (pool*Tp*Bp, Wp)  bf16  im2col patches (rows ordered pool, t, b).
    wc:  (Wp, C)           bf16  block-diagonal conv weight (zero-padded rows).
    bc:  (1, C)            f32   conv bias.
    wx:  (C, 8H)           bf16  input projection, interleaved gate layout.
    bx:  (1, 8H)           f32   fused gate biases, interleaved layout.
    wh:  (2H, 8H)          bf16  block-diag recurrent weight (both directions).
    w1:  (Tp, 2H, Hf)      bf16  FC-1 rearranged: flat@W1 == sum_t h_cat@w1[t].
    o:   (Bp, 1)           f32   output.
    xg:  (Tp*Bp, 8H)       f32   VMEM scratch holding x-gate pre-activations.
    """
    R = xg_ref.shape[0]                  # Tp * Bp
    Bp = o_ref.shape[0]
    T = R // Bp
    H2 = wh_ref.shape[0]                 # 2 * H  (one gate group = 128 lanes)
    G = wh_ref.shape[1]                  # 8 * H
    H = H2 // 2
    Hf = w2_ref.shape[0]
    pool = pat_ref.shape[0] // R

    # ---- conv blocks: one im2col matmul, then MaxPool, then bias + ReLU ----
    y = jnp.dot(pat_ref[...], wc_ref[...], preferred_element_type=jnp.float32)
    m = y[0:R]
    for s in range(1, pool):             # static, sublane-aligned slices
        m = jnp.maximum(m, y[s * R:(s + 1) * R])
    feat = jnp.maximum(m + bc_ref[...], 0.0)              # (R, C) f32

    # ---- LSTM input projection for both directions (interleaved gates) ----
    xg_ref[...] = (jnp.dot(feat.astype(jnp.bfloat16), wx_ref[...],
                           preferred_element_type=jnp.float32) + bx_ref[...])

    # ---- bidirectional LSTM (fused gates) + incremental FC-1 --------------
    wh = wh_ref[...]                                       # hoisted
    lane = jax.lax.broadcasted_iota(jnp.int32, (Bp, G), 1)
    fwd_mask = (lane % H2) < H           # fwd-direction lanes inside each gate

    def step(t, carry):
        h, c, acc = carry
        tr = T - 1 - t
        xf = xg_ref[pl.ds(pl.multiple_of(t * Bp, Bp), Bp), :]    # (Bp, 8H)
        xb = xg_ref[pl.ds(pl.multiple_of(tr * Bp, Bp), Bp), :]   # (Bp, 8H)
        gates = (jnp.where(fwd_mask, xf, xb)
                 + jnp.dot(h.astype(jnp.bfloat16), wh,
                           preferred_element_type=jnp.float32))
        i = jax.nn.sigmoid(gates[:, 0 * H2:1 * H2])        # 128-lane aligned
        f = jax.nn.sigmoid(gates[:, 1 * H2:2 * H2])
        g = jnp.tanh(gates[:, 2 * H2:3 * H2])
        o = jax.nn.sigmoid(gates[:, 3 * H2:4 * H2])
        c = f * c + i * g
        h = o * jnp.tanh(c)
        acc = acc + jnp.dot(h.astype(jnp.bfloat16), w1_ref[t],
                            preferred_element_type=jnp.float32)
        return h, c, acc

    unroll = next(u for u in (4, 3, 2, 1) if T % u == 0)

    def block(q, carry):
        for u in range(unroll):          # manual unroll for LLO visibility
            carry = step(q * unroll + u, carry)
        return carry

    h0 = jnp.zeros((Bp, H2), jnp.float32)
    acc0 = jnp.zeros((Bp, Hf), jnp.float32)
    _, _, acc = jax.lax.fori_loop(0, T // unroll, block, (h0, h0, acc0))

    # ---- MLP head ----------------------------------------------------------
    z = jnp.maximum(acc + b1_ref[...], 0.0)
    z = jnp.maximum(jnp.dot(z, w2_ref[...], preferred_element_type=jnp.float32)
                    + b2_ref[...], 0.0)
    o_ref[...] = (jnp.dot(z, w3_ref[...], preferred_element_type=jnp.float32)
                  + b3_ref[...])


# ----------------------------------------------------------------------------
# One-time parameter preprocessing (hoisted out of the jitted forward)
# ----------------------------------------------------------------------------

def preprocess_params(params):
    """Fuse / re-layout all weights once; returns arrays the kernel consumes."""
    conv_blocks = params["conv_blocks"]
    C_in = conv_blocks[0]["w"].shape[1]
    C_out = sum(cp["w"].shape[0] for cp in conv_blocks)
    Wtot = sum(cp["w"].shape[2] * C_in for cp in conv_blocks)
    Wp = ((Wtot + 127) // 128) * 128                     # lane-pad K*C_in dim

    wbd = jnp.zeros((Wp, C_out), jnp.float32)
    bconv, row, col = [], 0, 0
    for cp in conv_blocks:
        Co, Ci, K = cp["w"].shape
        wcol = jnp.transpose(cp["w"], (2, 1, 0)).reshape(K * Ci, Co)
        wbd = wbd.at[row:row + K * Ci, col:col + Co].set(wcol)
        bconv.append(cp["b"])
        row += K * Ci
        col += Co
    bconv = jnp.concatenate(bconv).reshape(1, C_out)

    pF, pB = params["lstm_fwd"], params["lstm_bwd"]
    H = pF["whi"].shape[0]
    zer = jnp.zeros((H, H), jnp.float32)
    wx_cols, bx_cols, wh_cols = [], [], []
    for g in "ifgo":                     # interleaved gate layout: [g_f | g_b]
        wx_cols += [pF["wx" + g], pB["wx" + g]]
        bx_cols += [pF["b" + g], pB["b" + g]]
        wh_cols += [jnp.concatenate([pF["wh" + g], zer], axis=0),
                    jnp.concatenate([zer, pB["wh" + g]], axis=0)]
    wx = jnp.concatenate(wx_cols, axis=1)                # (C_out, 8H)
    bx = jnp.concatenate(bx_cols, axis=1)                # (1, 8H)
    wh = jnp.concatenate(wh_cols, axis=1)                # (2H, 8H) block-diag

    fc = params["fc"]
    Hf = fc["w1"].shape[1]
    Tp = fc["w1"].shape[0] // (2 * H)
    w1 = fc["w1"].reshape(Tp, 2 * H, Hf)
    # After loop step t:  h_f = fwd hidden(t),  h_b = bwd hidden(T-1-t).
    w1c = jnp.concatenate([w1[:, :H, :], w1[::-1, H:, :]], axis=1)  # (Tp,2H,Hf)

    return {
        "wc": wbd.astype(jnp.bfloat16), "bc": bconv,
        "wx": wx.astype(jnp.bfloat16), "bx": bx,
        "wh": wh.astype(jnp.bfloat16),
        "w1": w1c.astype(jnp.bfloat16), "b1": fc["b1"],
        "w2": fc["w2"], "b2": fc["b2"], "w3": fc["w3"], "b3": fc["b3"],
    }


# ----------------------------------------------------------------------------
# Forward wrapper (im2col glue + single pallas_call)
# ----------------------------------------------------------------------------

def _fs(shape):
    return pl.BlockSpec(shape, lambda i, _n=len(shape): (0,) * _n)


def deepfamq_forward(x, fused, *, kernel_sizes, pool_size=3):
    """x: (B, L, C_in) float32 -> (B,) float32."""
    B, L, C_in = x.shape
    Bp = ((B + 7) // 8) * 8              # sublane-pad batch (free at B=2)
    Tp = L // pool_size
    Wp, C_out = fused["wc"].shape
    G = fused["wx"].shape[1]             # 8H
    H2 = fused["wh"].shape[0]            # 2H
    Hf = fused["w2"].shape[0]

    # im2col patches for ALL conv blocks, rows ordered (pool_offset, t, b).
    xb = jnp.pad(x, ((0, Bp - B), (0, 0), (0, 0)))
    cols = []
    for K in kernel_sizes:
        left = (K - 1) // 2              # torch 'same' padding split (stride 1)
        xp = jnp.pad(xb, ((0, 0), (left, K - 1 - left), (0, 0)))
        p = jnp.stack([xp[:, j:j + L, :] for j in range(K)], axis=2)
        cols.append(p.reshape(Bp, L, K * C_in))
    pat = jnp.concatenate(cols, axis=-1)                    # (Bp, L, Wtot)
    pat = jnp.pad(pat, ((0, 0), (0, 0), (0, Wp - pat.shape[-1])))
    pat = pat[:, :Tp * pool_size].reshape(Bp, Tp, pool_size, Wp)
    pat = jnp.transpose(pat, (2, 1, 0, 3)).reshape(pool_size * Tp * Bp, Wp)
    pat = pat.astype(jnp.bfloat16)

    # NOTE: at large batch, add a leading "parallel" grid axis over batch tiles
    # (Bblk<=128 on v7x's 64 MiB VMEM, ~256 on v5e/v6e) — unnecessary at B=2.
    out = pl.pallas_call(
        _deepfamq_kernel,
        out_shape=jax.ShapeDtypeStruct((Bp, 1), jnp.float32),
        grid=(1,),
        in_specs=[_fs((pool_size * Tp * Bp, Wp)),
                  _fs((Wp, C_out)), _fs((1, C_out)),
                  _fs((C_out, G)), _fs((1, G)),
                  _fs((H2, G)),
                  _fs((Tp, H2, Hf)), _fs((1, Hf)),
                  _fs((Hf, Hf)), _fs((1, Hf)),
                  _fs((Hf, 1)), _fs((1, 1))],
        out_specs=_fs((Bp, 1)),
        scratch_shapes=[pltpu.VMEM((Tp * Bp, G), jnp.float32)],
        compiler_params=pltpu.CompilerParams(
            dimension_semantics=("arbitrary",)),
    )(pat, fused["wc"], fused["bc"], fused["wx"], fused["bx"], fused["wh"],
      fused["w1"], fused["b1"], fused["w2"], fused["b2"],
      fused["w3"], fused["b3"])
    return out[:B, 0]


# ----------------------------------------------------------------------------
# Deterministic parameter init (synthetic; no checkpoint load)
# ----------------------------------------------------------------------------

def init_params(key, *, conv_out_dim, conv_kernel_size, lstm_hidden, fc_hidden,
                pool_size, seq_len):
    conv_each = conv_out_dim // len(conv_kernel_size)
    pool_out_len = int(1 + (seq_len - pool_size) / pool_size)
    fc_input_dim = lstm_hidden * 2 * pool_out_len

    def normal(k, shape, fan_in):
        return (jax.random.normal(k, shape, dtype=jnp.float32)
                / jnp.sqrt(jnp.float32(fan_in)))

    keys = iter(jax.random.split(key, 64))
    params = {"conv_blocks": [], "fc": {}}
    for ksz in conv_kernel_size:
        params["conv_blocks"].append({
            "w": normal(next(keys), (conv_each, 4, ksz), 4 * ksz),
            "b": normal(next(keys), (conv_each,), 4 * ksz),
        })
    D, H = conv_out_dim, lstm_hidden
    for direction in ("lstm_fwd", "lstm_bwd"):
        p = {}
        for g in ("i", "f", "g", "o"):
            p["wx" + g] = normal(next(keys), (D, H), D)
            p["wh" + g] = normal(next(keys), (H, H), H)
            p["b" + g] = normal(next(keys), (1, H), H)
        params[direction] = p
    # NOTE: PyTorch nn.LSTM has two bias vectors (b_ih + b_hh) per gate; their
    # sum is equivalent to the single bias used here (synthetic init).
    params["fc"]["w1"] = normal(next(keys), (fc_input_dim, fc_hidden), fc_input_dim)
    params["fc"]["b1"] = normal(next(keys), (1, fc_hidden), fc_input_dim)
    params["fc"]["w2"] = normal(next(keys), (fc_hidden, fc_hidden), fc_hidden)
    params["fc"]["b2"] = normal(next(keys), (1, fc_hidden), fc_hidden)
    params["fc"]["w3"] = normal(next(keys), (fc_hidden, 1), fc_hidden)
    params["fc"]["b3"] = normal(next(keys), (1, 1), fc_hidden)
    return params


# ----------------------------------------------------------------------------
# Pure-JAX reference (correctness sanity check)
# ----------------------------------------------------------------------------

def _ref_forward(x, params, pool_size):
    def conv_block(x, w, b):
        B, L, C_in = x.shape
        C_out, _, K = w.shape
        left = (K - 1) // 2
        xp = jnp.pad(x, ((0, 0), (left, K - 1 - left), (0, 0)))
        patches = jnp.stack([xp[:, j:j + L, :] for j in range(K)], axis=2)
        y = jnp.maximum(jnp.einsum("bljc,ocj->blo", patches, w) + b, 0.0)
        Tp = L // pool_size
        return jnp.max(y[:, :Tp * pool_size].reshape(B, Tp, pool_size, C_out), axis=2)

    feat = jnp.concatenate([conv_block(x, cp["w"], cp["b"])
                            for cp in params["conv_blocks"]], axis=-1)
    x_tbd = jnp.transpose(feat, (1, 0, 2))

    def run_lstm(xs, p):
        B, H = xs.shape[1], p["wxi"].shape[1]

        def step(carry, xt):
            h, c = carry
            def gate(g):
                return xt @ p["wx" + g] + h @ p["wh" + g] + p["b" + g]
            i = jax.nn.sigmoid(gate("i"))
            f = jax.nn.sigmoid(gate("f"))
            g = jnp.tanh(gate("g"))
            o = jax.nn.sigmoid(gate("o"))
            c = f * c + i * g
            h = o * jnp.tanh(c)
            return (h, c), h

        init = (jnp.zeros((B, H), jnp.float32), jnp.zeros((B, H), jnp.float32))
        _, hs = jax.lax.scan(step, init, xs)
        return hs

    h_fwd = run_lstm(x_tbd, params["lstm_fwd"])
    h_bwd = run_lstm(x_tbd[::-1], params["lstm_bwd"])[::-1]
    h = jnp.transpose(jnp.concatenate([h_fwd, h_bwd], axis=-1), (1, 0, 2))
    flat = h.reshape(h.shape[0], -1)
    fc = params["fc"]
    z = jnp.maximum(flat @ fc["w1"] + fc["b1"], 0.0)
    z = jnp.maximum(z @ fc["w2"] + fc["b2"], 0.0)
    return (z @ fc["w3"] + fc["b3"]).reshape(-1)


# ----------------------------------------------------------------------------

if __name__ == "__main__":
    B = 2
    SEQ_LEN = 110          # hard-wired into the module's FC sizing
    POOL = 3
    CONV_OUT_DIM = 64      # -> 32 channels per conv block
    KERNEL_SIZES = (10, 15)
    LSTM_HIDDEN = 64
    FC_HIDDEN = 32

    root = jax.random.PRNGKey(0)
    k_x, k_p = jax.random.split(root)
    x = jax.random.normal(k_x, (B, SEQ_LEN, 4), dtype=jnp.float32)
    params = init_params(k_p,
                         conv_out_dim=CONV_OUT_DIM,
                         conv_kernel_size=KERNEL_SIZES,
                         lstm_hidden=LSTM_HIDDEN,
                         fc_hidden=FC_HIDDEN,
                         pool_size=POOL,
                         seq_len=SEQ_LEN)

    fused = preprocess_params(params)          # one-time, outside jit
    fwd = jax.jit(functools.partial(deepfamq_forward,
                                    kernel_sizes=KERNEL_SIZES,
                                    pool_size=POOL))
    out = jax.block_until_ready(fwd(x, fused))

    # Sanity check vs pure-JAX f32 reference (bf16 matmul operands -> loose tol).
    ref = jax.block_until_ready(_ref_forward(x, params, POOL))
    assert out.shape == (B,), out.shape
    assert jnp.allclose(out, ref, rtol=5e-2, atol=5e-2), (out, ref)

    print("KERNEL_OK")
</pallas_src>

<mosaic_0001>
module attributes {stable_mosaic.version = 11 : i64} {
  func.func @_deepfamq_kernel(%arg0: i32, %arg1: memref<864x128xbf16, #tpu.memory_space<vmem>>, %arg2: memref<128x64xbf16, #tpu.memory_space<vmem>>, %arg3: memref<1x64xf32, #tpu.memory_space<vmem>>, %arg4: memref<64x512xbf16, #tpu.memory_space<vmem>>, %arg5: memref<1x512xf32, #tpu.memory_space<vmem>>, %arg6: memref<128x512xbf16, #tpu.memory_space<vmem>>, %arg7: memref<36x128x32xbf16, #tpu.memory_space<vmem>>, %arg8: memref<1x32xf32, #tpu.memory_space<vmem>>, %arg9: memref<32x32xf32, #tpu.memory_space<vmem>>, %arg10: memref<1x32xf32, #tpu.memory_space<vmem>>, %arg11: memref<32x1xf32, #tpu.memory_space<vmem>>, %arg12: memref<1x1xf32, #tpu.memory_space<vmem>>, %arg13: memref<8x1xf32, #tpu.memory_space<vmem>>, %arg14: memref<288x512xf32, #tpu.memory_space<vmem>>) attributes {dimension_semantics = [#tpu.dimension_semantics<arbitrary>], iteration_bounds = array<i64: 1>, scalar_prefetch = 0 : i64, scratch_operands = 1 : i64, tpu.core_type = #tpu.core_type<tc>, window_params = [{pipeline_mode = #tpu.pipeline_mode<synchronous>, transform_indices = @transform_0, window_bounds = array<i64: 864, 128>}, {pipeline_mode = #tpu.pipeline_mode<synchronous>, transform_indices = @transform_1, window_bounds = array<i64: 128, 64>}, {pipeline_mode = #tpu.pipeline_mode<synchronous>, transform_indices = @transform_2, window_bounds = array<i64: 1, 64>}, {pipeline_mode = #tpu.pipeline_mode<synchronous>, transform_indices = @transform_3, window_bounds = array<i64: 64, 512>}, {pipeline_mode = #tpu.pipeline_mode<synchronous>, transform_indices = @transform_4, window_bounds = array<i64: 1, 512>}, {pipeline_mode = #tpu.pipeline_mode<synchronous>, transform_indices = @transform_5, window_bounds = array<i64: 128, 512>}, {pipeline_mode = #tpu.pipeline_mode<synchronous>, transform_indices = @transform_6, window_bounds = array<i64: 36, 128, 32>}, {pipeline_mode = #tpu.pipeline_mode<synchronous>, transform_indices = @transform_7, window_bounds = array<i64: 1, 32>}, {pipeline_mode = #tpu.pipeline_mode<synchronous>, transform_indices = @transform_8, window_bounds = array<i64: 32, 32>}, {pipeline_mode = #tpu.pipeline_mode<synchronous>, transform_indices = @transform_9, window_bounds = array<i64: 1, 32>}, {pipeline_mode = #tpu.pipeline_mode<synchronous>, transform_indices = @transform_10, window_bounds = array<i64: 32, 1>}, {pipeline_mode = #tpu.pipeline_mode<synchronous>, transform_indices = @transform_11, window_bounds = array<i64: 1, 1>}, {pipeline_mode = #tpu.pipeline_mode<synchronous>, transform_indices = @transform_12, window_bounds = array<i64: 8, 1>}]} {
    %c0 = arith.constant 0 : index
    %c0_0 = arith.constant 0 : index
    %0 = vector.load %arg1[%c0, %c0_0] : memref<864x128xbf16, #tpu.memory_space<vmem>>, vector<864x128xbf16>
    %c0_1 = arith.constant 0 : index
    %c0_2 = arith.constant 0 : index
    %1 = vector.load %arg2[%c0_1, %c0_2] : memref<128x64xbf16, #tpu.memory_space<vmem>>, vector<128x64xbf16>
    %cst = arith.constant dense<0.000000e+00> : vector<864x64xf32>
    %2 = tpu.matmul %0, %1, %cst {dimension_numbers = #tpu.dot_dimension_numbers<[1], [0], [0], [1], [0, 0, 1, 1], [], []>} : vector<864x128xbf16>, vector<128x64xbf16>, vector<864x64xf32> -> vector<864x64xf32>
    %3 = vector.extract_strided_slice %2 {offsets = [0, 0], sizes = [288, 64], strides = [1, 1]} : vector<864x64xf32> to vector<288x64xf32>
    %4 = vector.extract_strided_slice %2 {offsets = [288, 0], sizes = [288, 64], strides = [1, 1]} : vector<864x64xf32> to vector<288x64xf32>
    %5 = arith.maximumf %3, %4 : vector<288x64xf32>
    %6 = vector.extract_strided_slice %2 {offsets = [576, 0], sizes = [288, 64], strides = [1, 1]} : vector<864x64xf32> to vector<288x64xf32>
    %7 = arith.maximumf %5, %6 : vector<288x64xf32>
    %c0_3 = arith.constant 0 : index
    %c0_4 = arith.constant 0 : index
    %8 = vector.load %arg3[%c0_3, %c0_4] : memref<1x64xf32, #tpu.memory_space<vmem>>, vector<1x64xf32>
    %9 = vector.broadcast %8 : vector<1x64xf32> to vector<288x64xf32>
    %10 = arith.addf %7, %9 : vector<288x64xf32>
    %cst_5 = arith.constant 0.000000e+00 : f32
    %11 = vector.broadcast %cst_5 : f32 to vector<288x64xf32>
    %12 = arith.maximumf %10, %11 : vector<288x64xf32>
    %13 = arith.truncf %12 : vector<288x64xf32> to vector<288x64xbf16>
    %c0_6 = arith.constant 0 : index
    %c0_7 = arith.constant 0 : index
    %14 = vector.load %arg4[%c0_6, %c0_7] : memref<64x512xbf16, #tpu.memory_space<vmem>>, vector<64x512xbf16>
    %cst_8 = arith.constant dense<0.000000e+00> : vector<288x512xf32>
    %15 = tpu.matmul %13, %14, %cst_8 {dimension_numbers = #tpu.dot_dimension_numbers<[1], [0], [0], [1], [0, 0, 1, 1], [], []>} : vector<288x64xbf16>, vector<64x512xbf16>, vector<288x512xf32> -> vector<288x512xf32>
    %c0_9 = arith.constant 0 : index
    %c0_10 = arith.constant 0 : index
    %16 = vector.load %arg5[%c0_9, %c0_10] : memref<1x512xf32, #tpu.memory_space<vmem>>, vector<1x512xf32>
    %17 = vector.broadcast %16 : vector<1x512xf32> to vector<288x512xf32>
    %18 = arith.addf %15, %17 : vector<288x512xf32>
    %c0_11 = arith.constant 0 : index
    %c0_12 = arith.constant 0 : index
    %19 = vector.load %arg14[%c0_11, %c0_12] : memref<288x512xf32, #tpu.memory_space<vmem>>, vector<288x512xf32>
    tpu.vector_store %arg14[%c0_11, %c0_12], %18 {strides = array<i32>} : memref<288x512xf32, #tpu.memory_space<vmem>>, vector<288x512xf32>,
    %c0_13 = arith.constant 0 : index
    %c0_14 = arith.constant 0 : index
    %20 = vector.load %arg6[%c0_13, %c0_14] : memref<128x512xbf16, #tpu.memory_space<vmem>>, vector<128x512xbf16>
    %21 = tpu.iota {dimensions = array<i32: 1>} : vector<8x512xi32>
    %c128_i32 = arith.constant 128 : i32
    %c0_i32 = arith.constant 0 : i32
    %22 = arith.cmpi eq, %c128_i32, %c0_i32 : i32
    %c1_i32 = arith.constant 1 : i32
    %23 = arith.select %22, %c1_i32, %c128_i32 : i32
    %24 = vector.broadcast %23 : i32 to vector<8x512xi32>
    %25 = arith.remsi %21, %24 : vector<8x512xi32>
    %c0_i32_15 = arith.constant 0 : i32
    %26 = vector.broadcast %c0_i32_15 : i32 to vector<8x512xi32>
    %27 = arith.cmpi ne, %25, %26 : vector<8x512xi32>
    %c0_i32_16 = arith.constant 0 : i32
    %28 = vector.broadcast %c0_i32_16 : i32 to vector<8x512xi32>
    %29 = arith.cmpi slt, %25, %28 : vector<8x512xi32>
    %c0_i32_17 = arith.constant 0 : i32
    %30 = arith.cmpi slt, %23, %c0_i32_17 : i32
    %31 = vector.broadcast %30 : i1 to vector<8x512xi1>
    %32 = vector.broadcast %31 : vector<8x512xi1> to vector<8x512xi1>
    %33 = arith.xori %29, %32 : vector<8x512xi1>
    %34 = arith.andi %33, %27 : vector<8x512xi1>
    %35 = vector.broadcast %23 : i32 to vector<8x512xi32>
    %36 = arith.addi %25, %35 : vector<8x512xi32>
    %37 = arith.select %34, %36, %25 : vector<8x512xi1>, vector<8x512xi32>
    %c64_i32 = arith.constant 64 : i32
    %38 = vector.broadcast %c64_i32 : i32 to vector<8x512xi32>
    %39 = arith.cmpi slt, %37, %38 : vector<8x512xi32>
    %cst_18 = arith.constant 0.000000e+00 : f32
    %40 = vector.broadcast %cst_18 : f32 to vector<8x128xf32>
    %cst_19 = arith.constant 0.000000e+00 : f32
    %41 = vector.broadcast %cst_19 : f32 to vector<8x32xf32>
    %c0_i32_20 = arith.constant 0 : i32
    %c9_i32 = arith.constant 9 : i32
    %42 = arith.addi %c0_i32_20, %c9_i32 : i32
    %c1_i32_21 = arith.constant 1 : i32
    %43:3 = scf.for %arg15 = %c0_i32_20 to %42 step %c1_i32_21 iter_args(%arg16 = %40, %arg17 = %40, %arg18 = %41) -> (vector<8x128xf32>, vector<8x128xf32>, vector<8x32xf32>)  : i32 {
      %c4_i32 = arith.constant 4 : i32
      %62 = arith.muli %arg15, %c4_i32 : i32
      %c0_i32_39 = arith.constant 0 : i32
      %63 = arith.addi %62, %c0_i32_39 : i32
      %c35_i32 = arith.constant 35 : i32
      %64 = arith.subi %c35_i32, %63 : i32
      %c8_i32 = arith.constant 8 : i32
      %65 = arith.muli %63, %c8_i32 : i32
      %66 = tpu.assume_multiple %65, 8 : i32
      %67 = arith.index_cast %66 : i32 to index
      %c0_40 = arith.constant 0 : index
      %68 = vector.load %arg14[%67, %c0_40] : memref<288x512xf32, #tpu.memory_space<vmem>>, vector<8x512xf32>
      %c8_i32_41 = arith.constant 8 : i32
      %69 = arith.muli %64, %c8_i32_41 : i32
      %70 = tpu.assume_multiple %69, 8 : i32
      %71 = arith.index_cast %70 : i32 to index
      %c0_42 = arith.constant 0 : index
      %72 = vector.load %arg14[%71, %c0_42] : memref<288x512xf32, #tpu.memory_space<vmem>>, vector<8x512xf32>
      %73 = arith.select %39, %68, %72 : vector<8x512xi1>, vector<8x512xf32>
      %74 = arith.truncf %arg16 : vector<8x128xf32> to vector<8x128xbf16>
      %cst_43 = arith.constant dense<0.000000e+00> : vector<8x512xf32>
      %75 = tpu.matmul %74, %20, %cst_43 {dimension_numbers = #tpu.dot_dimension_numbers<[1], [0], [0], [1], [0, 0, 1, 1], [], []>} : vector<8x128xbf16>, vector<128x512xbf16>, vector<8x512xf32> -> vector<8x512xf32>
      %76 = arith.addf %73, %75 : vector<8x512xf32>
      %77 = vector.extract_strided_slice %76 {offsets = [0, 0], sizes = [8, 128], strides = [1, 1]} : vector<8x512xf32> to vector<8x128xf32>
      %78 = arith.negf %77 : vector<8x128xf32>
      %79 = math.exp %78 : vector<8x128xf32>
      %cst_44 = arith.constant 1.000000e+00 : f32
      %80 = vector.broadcast %cst_44 : f32 to vector<8x128xf32>
      %81 = arith.addf %80, %79 : vector<8x128xf32>
      %82 = arith.divf %80, %81 : vector<8x128xf32>
      %83 = vector.extract_strided_slice %76 {offsets = [0, 128], sizes = [8, 128], strides = [1, 1]} : vector<8x512xf32> to vector<8x128xf32>
      %84 = arith.negf %83 : vector<8x128xf32>
      %85 = math.exp %84 : vector<8x128xf32>
      %cst_45 = arith.constant 1.000000e+00 : f32
      %86 = vector.broadcast %cst_45 : f32 to vector<8x128xf32>
      %87 = arith.addf %86, %85 : vector<8x128xf32>
      %88 = arith.divf %86, %87 : vector<8x128xf32>
      %89 = vector.extract_strided_slice %76 {offsets = [0, 256], sizes = [8, 128], strides = [1, 1]} : vector<8x512xf32> to vector<8x128xf32>
      %90 = math.tanh %89 : vector<8x128xf32>
      %91 = vector.extract_strided_slice %76 {offsets = [0, 384], sizes = [8, 128], strides = [1, 1]} : vector<8x512xf32> to vector<8x128xf32>
      %92 = arith.negf %91 : vector<8x128xf32>
      %93 = math.exp %92 : vector<8x128xf32>
      %cst_46 = arith.constant 1.000000e+00 : f32
      %94 = vector.broadcast %cst_46 : f32 to vector<8x128xf32>
      %95 = arith.addf %94, %93 : vector<8x128xf32>
      %96 = arith.divf %94, %95 : vector<8x128xf32>
      %97 = arith.mulf %88, %arg17 : vector<8x128xf32>
      %98 = arith.mulf %82, %90 : vector<8x128xf32>
      %99 = arith.addf %97, %98 : vector<8x128xf32>
      %100 = math.tanh %99 : vector<8x128xf32>
      %101 = arith.mulf %96, %100 : vector<8x128xf32>
      %102 = arith.truncf %101 : vector<8x128xf32> to vector<8x128xbf16>
      %103 = arith.index_cast %63 : i32 to index
      %c0_47 = arith.constant 0 : index
      %c0_48 = arith.constant 0 : index
      %104 = vector.load %arg7[%103, %c0_47, %c0_48] : memref<36x128x32xbf16, #tpu.memory_space<vmem>>, vector<1x128x32xbf16>
      %105 = vector.shape_cast %104 : vector<1x128x32xbf16> to vector<128x32xbf16>
      %cst_49 = arith.constant dense<0.000000e+00> : vector<8x32xf32>
      %106 = tpu.matmul %102, %105, %cst_49 {dimension_numbers = #tpu.dot_dimension_numbers<[1], [0], [0], [1], [0, 0, 1, 1], [], []>} : vector<8x128xbf16>, vector<128x32xbf16>, vector<8x32xf32> -> vector<8x32xf32>
      %107 = arith.addf %arg18, %106 : vector<8x32xf32>
      %c4_i32_50 = arith.constant 4 : i32
      %108 = arith.muli %arg15, %c4_i32_50 : i32
      %c1_i32_51 = arith.constant 1 : i32
      %109 = arith.addi %108, %c1_i32_51 : i32
      %c35_i32_52 = arith.constant 35 : i32
      %110 = arith.subi %c35_i32_52, %109 : i32
      %c8_i32_53 = arith.constant 8 : i32
      %111 = arith.muli %109, %c8_i32_53 : i32
      %112 = tpu.assume_multiple %111, 8 : i32
      %113 = arith.index_cast %112 : i32 to index
      %c0_54 = arith.constant 0 : index
      %114 = vector.load %arg14[%113, %c0_54] : memref<288x512xf32, #tpu.memory_space<vmem>>, vector<8x512xf32>
      %c8_i32_55 = arith.constant 8 : i32
      %115 = arith.muli %110, %c8_i32_55 : i32
      %116 = tpu.assume_multiple %115, 8 : i32
      %117 = arith.index_cast %116 : i32 to index
      %c0_56 = arith.constant 0 : index
      %118 = vector.load %arg14[%117, %c0_56] : memref<288x512xf32, #tpu.memory_space<vmem>>, vector<8x512xf32>
      %119 = arith.select %39, %114, %118 : vector<8x512xi1>, vector<8x512xf32>
      %120 = arith.truncf %101 : vector<8x128xf32> to vector<8x128xbf16>
      %cst_57 = arith.constant dense<0.000000e+00> : vector<8x512xf32>
      %121 = tpu.matmul %120, %20, %cst_57 {dimension_numbers = #tpu.dot_dimension_numbers<[1], [0], [0], [1], [0, 0, 1, 1], [], []>} : vector<8x128xbf16>, vector<128x512xbf16>, vector<8x512xf32> -> vector<8x512xf32>
      %122 = arith.addf %119, %121 : vector<8x512xf32>
      %123 = vector.extract_strided_slice %122 {offsets = [0, 0], sizes = [8, 128], strides = [1, 1]} : vector<8x512xf32> to vector<8x128xf32>
      %124 = arith.negf %123 : vector<8x128xf32>
      %125 = math.exp %124 : vector<8x128xf32>
      %cst_58 = arith.constant 1.000000e+00 : f32
      %126 = vector.broadcast %cst_58 : f32 to vector<8x128xf32>
      %127 = arith.addf %126, %125 : vector<8x128xf32>
      %128 = arith.divf %126, %127 : vector<8x128xf32>
      %129 = vector.extract_strided_slice %122 {offsets = [0, 128], sizes = [8, 128], strides = [1, 1]} : vector<8x512xf32> to vector<8x128xf32>
      %130 = arith.negf %129 : vector<8x128xf32>
      %131 = math.exp %130 : vector<8x128xf32>
      %cst_59 = arith.constant 1.000000e+00 : f32
      %132 = vector.broadcast %cst_59 : f32 to vector<8x128xf32>
      %133 = arith.addf %132, %131 : vector<8x128xf32>
      %134 = arith.divf %132, %133 : vector<8x128xf32>
      %135 = vector.extract_strided_slice %122 {offsets = [0, 256], sizes = [8, 128], strides = [1, 1]} : vector<8x512xf32> to vector<8x128xf32>
      %136 = math.tanh %135 : vector<8x128xf32>
      %137 = vector.extract_strided_slice %122 {offsets = [0, 384], sizes = [8, 128], strides = [1, 1]} : vector<8x512xf32> to vector<8x128xf32>
      %138 = arith.negf %137 : vector<8x128xf32>
      %139 = math.exp %138 : vector<8x128xf32>
      %cst_60 = arith.constant 1.000000e+00 : f32
      %140 = vector.broadcast %cst_60 : f32 to vector<8x128xf32>
      %141 = arith.addf %140, %139 : vector<8x128xf32>
      %142 = arith.divf %140, %141 : vector<8x128xf32>
      %143 = arith.mulf %134, %99 : vector<8x128xf32>
      %144 = arith.mulf %128, %136 : vector<8x128xf32>
      %145 = arith.addf %143, %144 : vector<8x128xf32>
      %146 = math.tanh %145 : vector<8x128xf32>
      %147 = arith.mulf %142, %146 : vector<8x128xf32>
      %148 = arith.truncf %147 : vector<8x128xf32> to vector<8x128xbf16>
      %149 = arith.index_cast %109 : i32 to index
      %c0_61 = arith.constant 0 : index
      %c0_62 = arith.constant 0 : index
      %150 = vector.load %arg7[%149, %c0_61, %c0_62] : memref<36x128x32xbf16, #tpu.memory_space<vmem>>, vector<1x128x32xbf16>
      %151 = vector.shape_cast %150 : vector<1x128x32xbf16> to vector<128x32xbf16>
      %cst_63 = arith.constant dense<0.000000e+00> : vector<8x32xf32>
      %152 = tpu.matmul %148, %151, %cst_63 {dimension_numbers = #tpu.dot_dimension_numbers<[1], [0], [0], [1], [0, 0, 1, 1], [], []>} : vector<8x128xbf16>, vector<128x32xbf16>, vector<8x32xf32> -> vector<8x32xf32>
      %153 = arith.addf %107, %152 : vector<8x32xf32>
      %c4_i32_64 = arith.constant 4 : i32
      %154 = arith.muli %arg15, %c4_i32_64 : i32
      %c2_i32 = arith.constant 2 : i32
      %155 = arith.addi %154, %c2_i32 : i32
      %c35_i32_65 = arith.constant 35 : i32
      %156 = arith.subi %c35_i32_65, %155 : i32
      %c8_i32_66 = arith.constant 8 : i32
      %157 = arith.muli %155, %c8_i32_66 : i32
      %158 = tpu.assume_multiple %157, 8 : i32
      %159 = arith.index_cast %158 : i32 to index
      %c0_67 = arith.constant 0 : index
      %160 = vector.load %arg14[%159, %c0_67] : memref<288x512xf32, #tpu.memory_space<vmem>>, vector<8x512xf32>
      %c8_i32_68 = arith.constant 8 : i32
      %161 = arith.muli %156, %c8_i32_68 : i32
      %162 = tpu.assume_multiple %161, 8 : i32
      %163 = arith.index_cast %162 : i32 to index
      %c0_69 = arith.constant 0 : index
      %164 = vector.load %arg14[%163, %c0_69] : memref<288x512xf32, #tpu.memory_space<vmem>>, vector<8x512xf32>
      %165 = arith.select %39, %160, %164 : vector<8x512xi1>, vector<8x512xf32>
      %166 = arith.truncf %147 : vector<8x128xf32> to vector<8x128xbf16>
      %cst_70 = arith.constant dense<0.000000e+00> : vector<8x512xf32>
      %167 = tpu.matmul %166, %20, %cst_70 {dimension_numbers = #tpu.dot_dimension_numbers<[1], [0], [0], [1], [0, 0, 1, 1], [], []>} : vector<8x128xbf16>, vector<128x512xbf16>, vector<8x512xf32> -> vector<8x512xf32>
      %168 = arith.addf %165, %167 : vector<8x512xf32>
      %169 = vector.extract_strided_slice %168 {offsets = [0, 0], sizes = [8, 128], strides = [1, 1]} : vector<8x512xf32> to vector<8x128xf32>
      %170 = arith.negf %169 : vector<8x128xf32>
      %171 = math.exp %170 : vector<8x128xf32>
      %cst_71 = arith.constant 1.000000e+00 : f32
      %172 = vector.broadcast %cst_71 : f32 to vector<8x128xf32>
      %173 = arith.addf %172, %171 : vector<8x128xf32>
      %174 = arith.divf %172, %173 : vector<8x128xf32>
      %175 = vector.extract_strided_slice %168 {offsets = [0, 128], sizes = [8, 128], strides = [1, 1]} : vector<8x512xf32> to vector<8x128xf32>
      %176 = arith.negf %175 : vector<8x128xf32>
      %177 = math.exp %176 : vector<8x128xf32>
      %cst_72 = arith.constant 1.000000e+00 : f32
      %178 = vector.broadcast %cst_72 : f32 to vector<8x128xf32>
      %179 = arith.addf %178, %177 : vector<8x128xf32>
      %180 = arith.divf %178, %179 : vector<8x128xf32>
      %181 = vector.extract_strided_slice %168 {offsets = [0, 256], sizes = [8, 128], strides = [1, 1]} : vector<8x512xf32> to vector<8x128xf32>
      %182 = math.tanh %181 : vector<8x128xf32>
      %183 = vector.extract_strided_slice %168 {offsets = [0, 384], sizes = [8, 128], strides = [1, 1]} : vector<8x512xf32> to vector<8x128xf32>
      %184 = arith.negf %183 : vector<8x128xf32>
      %185 = math.exp %184 : vector<8x128xf32>
      %cst_73 = arith.constant 1.000000e+00 : f32
      %186 = vector.broadcast %cst_73 : f32 to vector<8x128xf32>
      %187 = arith.addf %186, %185 : vector<8x128xf32>
      %188 = arith.divf %186, %187 : vector<8x128xf32>
      %189 = arith.mulf %180, %145 : vector<8x128xf32>
      %190 = arith.mulf %174, %182 : vector<8x128xf32>
      %191 = arith.addf %189, %190 : vector<8x128xf32>
      %192 = math.tanh %191 : vector<8x128xf32>
      %193 = arith.mulf %188, %192 : vector<8x128xf32>
      %194 = arith.truncf %193 : vector<8x128xf32> to vector<8x128xbf16>
      %195 = arith.index_cast %155 : i32 to index
      %c0_74 = arith.constant 0 : index
      %c0_75 = arith.constant 0 : index
      %196 = vector.load %arg7[%195, %c0_74, %c0_75] : memref<36x128x32xbf16, #tpu.memory_space<vmem>>, vector<1x128x32xbf16>
      %197 = vector.shape_cast %196 : vector<1x128x32xbf16> to vector<128x32xbf16>
      %cst_76 = arith.constant dense<0.000000e+00> : vector<8x32xf32>
      %198 = tpu.matmul %194, %197, %cst_76 {dimension_numbers = #tpu.dot_dimension_numbers<[1], [0], [0], [1], [0, 0, 1, 1], [], []>} : vector<8x128xbf16>, vector<128x32xbf16>, vector<8x32xf32> -> vector<8x32xf32>
      %199 = arith.addf %153, %198 : vector<8x32xf32>
      %c4_i32_77 = arith.constant 4 : i32
      %200 = arith.muli %arg15, %c4_i32_77 : i32
      %c3_i32 = arith.constant 3 : i32
      %201 = arith.addi %200, %c3_i32 : i32
      %c35_i32_78 = arith.constant 35 : i32
      %202 = arith.subi %c35_i32_78, %201 : i32
      %c8_i32_79 = arith.constant 8 : i32
      %203 = arith.muli %201, %c8_i32_79 : i32
      %204 = tpu.assume_multiple %203, 8 : i32
      %205 = arith.index_cast %204 : i32 to index
      %c0_80 = arith.constant 0 : index
      %206 = vector.load %arg14[%205, %c0_80] : memref<288x512xf32, #tpu.memory_space<vmem>>, vector<8x512xf32>
      %c8_i32_81 = arith.constant 8 : i32
      %207 = arith.muli %202, %c8_i32_81 : i32
      %208 = tpu.assume_multiple %207, 8 : i32
      %209 = arith.index_cast %208 : i32 to index
      %c0_82 = arith.constant 0 : index
      %210 = vector.load %arg14[%209, %c0_82] : memref<288x512xf32, #tpu.memory_space<vmem>>, vector<8x512xf32>
      %211 = arith.select %39, %206, %210 : vector<8x512xi1>, vector<8x512xf32>
      %212 = arith.truncf %193 : vector<8x128xf32> to vector<8x128xbf16>
      %cst_83 = arith.constant dense<0.000000e+00> : vector<8x512xf32>
      %213 = tpu.matmul %212, %20, %cst_83 {dimension_numbers = #tpu.dot_dimension_numbers<[1], [0], [0], [1], [0, 0, 1, 1], [], []>} : vector<8x128xbf16>, vector<128x512xbf16>, vector<8x512xf32> -> vector<8x512xf32>
      %214 = arith.addf %211, %213 : vector<8x512xf32>
      %215 = vector.extract_strided_slice %214 {offsets = [0, 0], sizes = [8, 128], strides = [1, 1]} : vector<8x512xf32> to vector<8x128xf32>
      %216 = arith.negf %215 : vector<8x128xf32>
      %217 = math.exp %216 : vector<8x128xf32>
      %cst_84 = arith.constant 1.000000e+00 : f32
      %218 = vector.broadcast %cst_84 : f32 to vector<8x128xf32>
      %219 = arith.addf %218, %217 : vector<8x128xf32>
      %220 = arith.divf %218, %219 : vector<8x128xf32>
      %221 = vector.extract_strided_slice %214 {offsets = [0, 128], sizes = [8, 128], strides = [1, 1]} : vector<8x512xf32> to vector<8x128xf32>
      %222 = arith.negf %221 : vector<8x128xf32>
      %223 = math.exp %222 : vector<8x128xf32>
      %cst_85 = arith.constant 1.000000e+00 : f32
      %224 = vector.broadcast %cst_85 : f32 to vector<8x128xf32>
      %225 = arith.addf %224, %223 : vector<8x128xf32>
      %226 = arith.divf %224, %225 : vector<8x128xf32>
      %227 = vector.extract_strided_slice %214 {offsets = [0, 256], sizes = [8, 128], strides = [1, 1]} : vector<8x512xf32> to vector<8x128xf32>
      %228 = math.tanh %227 : vector<8x128xf32>
      %229 = vector.extract_strided_slice %214 {offsets = [0, 384], sizes = [8, 128], strides = [1, 1]} : vector<8x512xf32> to vector<8x128xf32>
      %230 = arith.negf %229 : vector<8x128xf32>
      %231 = math.exp %230 : vector<8x128xf32>
      %cst_86 = arith.constant 1.000000e+00 : f32
      %232 = vector.broadcast %cst_86 : f32 to vector<8x128xf32>
      %233 = arith.addf %232, %231 : vector<8x128xf32>
      %234 = arith.divf %232, %233 : vector<8x128xf32>
      %235 = arith.mulf %226, %191 : vector<8x128xf32>
      %236 = arith.mulf %220, %228 : vector<8x128xf32>
      %237 = arith.addf %235, %236 : vector<8x128xf32>
      %238 = math.tanh %237 : vector<8x128xf32>
      %239 = arith.mulf %234, %238 : vector<8x128xf32>
      %240 = arith.truncf %239 : vector<8x128xf32> to vector<8x128xbf16>
      %241 = arith.index_cast %201 : i32 to index
      %c0_87 = arith.constant 0 : index
      %c0_88 = arith.constant 0 : index
      %242 = vector.load %arg7[%241, %c0_87, %c0_88] : memref<36x128x32xbf16, #tpu.memory_space<vmem>>, vector<1x128x32xbf16>
      %243 = vector.shape_cast %242 : vector<1x128x32xbf16> to vector<128x32xbf16>
      %cst_89 = arith.constant dense<0.000000e+00> : vector<8x32xf32>
      %244 = tpu.matmul %240, %243, %cst_89 {dimension_numbers = #tpu.dot_dimension_numbers<[1], [0], [0], [1], [0, 0, 1, 1], [], []>} : vector<8x128xbf16>, vector<128x32xbf16>, vector<8x32xf32> -> vector<8x32xf32>
      %245 = arith.addf %199, %244 : vector<8x32xf32>
      scf.yield %239, %237, %245 : vector<8x128xf32>, vector<8x128xf32>, vector<8x32xf32>
    }
    %c9_i32_22 = arith.constant 9 : i32
    %c0_23 = arith.constant 0 : index
    %c0_24 = arith.constant 0 : index
    %44 = vector.load %arg8[%c0_23, %c0_24] : memref<1x32xf32, #tpu.memory_space<vmem>>, vector<1x32xf32>
    %45 = vector.broadcast %44 : vector<1x32xf32> to vector<8x32xf32>
    %46 = arith.addf %43#2, %45 : vector<8x32xf32>
    %cst_25 = arith.constant 0.000000e+00 : f32
    %47 = vector.broadcast %cst_25 : f32 to vector<8x32xf32>
    %48 = arith.maximumf %46, %47 : vector<8x32xf32>
    %c0_26 = arith.constant 0 : index
    %c0_27 = arith.constant 0 : index
    %49 = vector.load %arg9[%c0_26, %c0_27] : memref<32x32xf32, #tpu.memory_space<vmem>>, vector<32x32xf32>
    %cst_28 = arith.constant dense<0.000000e+00> : vector<8x32xf32>
    %50 = tpu.matmul %48, %49, %cst_28 {dimension_numbers = #tpu.dot_dimension_numbers<[1], [0], [0], [1], [0, 0, 1, 1], [], []>} : vector<8x32xf32>, vector<32x32xf32>, vector<8x32xf32> -> vector<8x32xf32>
    %c0_29 = arith.constant 0 : index
    %c0_30 = arith.constant 0 : index
    %51 = vector.load %arg10[%c0_29, %c0_30] : memref<1x32xf32, #tpu.memory_space<vmem>>, vector<1x32xf32>
    %52 = vector.broadcast %51 : vector<1x32xf32> to vector<8x32xf32>
    %53 = arith.addf %50, %52 : vector<8x32xf32>
    %cst_31 = arith.constant 0.000000e+00 : f32
    %54 = vector.broadcast %cst_31 : f32 to vector<8x32xf32>
    %55 = arith.maximumf %53, %54 : vector<8x32xf32>
    %c0_32 = arith.constant 0 : index
    %c0_33 = arith.constant 0 : index
    %56 = vector.load %arg11[%c0_32, %c0_33] : memref<32x1xf32, #tpu.memory_space<vmem>>, vector<32x1xf32>
    %cst_34 = arith.constant dense<0.000000e+00> : vector<8x1xf32>
    %57 = tpu.matmul %55, %56, %cst_34 {dimension_numbers = #tpu.dot_dimension_numbers<[1], [0], [0], [1], [0, 0, 1, 1], [], []>} : vector<8x32xf32>, vector<32x1xf32>, vector<8x1xf32> -> vector<8x1xf32>
    %c0_35 = arith.constant 0 : index
    %c0_36 = arith.constant 0 : index
    %58 = vector.load %arg12[%c0_35, %c0_36] : memref<1x1xf32, #tpu.memory_space<vmem>>, vector<1x1xf32>
    %59 = vector.broadcast %58 : vector<1x1xf32> to vector<8x1xf32>
    %60 = arith.addf %57, %59 : vector<8x1xf32>
    %c0_37 = arith.constant 0 : index
    %c0_38 = arith.constant 0 : index
    %61 = vector.load %arg13[%c0_37, %c0_38] : memref<8x1xf32, #tpu.memory_space<vmem>>, vector<8x1xf32>
    tpu.vector_store %arg13[%c0_37, %c0_38], %60 {strides = array<i32>} : memref<8x1xf32, #tpu.memory_space<vmem>>, vector<8x1xf32>,
    return
  }
  func.func @transform_0(%arg0: i32) -> (i32, i32) {
    %c0_i32 = arith.constant 0 : i32
    %c0_i32_0 = arith.constant 0 : i32
    %c0_i32_1 = arith.constant 0 : i32
    return %c0_i32, %c0_i32_0 : i32, i32
  }
  func.func @transform_1(%arg0: i32) -> (i32, i32) {
    %c0_i32 = arith.constant 0 : i32
    %c0_i32_0 = arith.constant 0 : i32
    %c0_i32_1 = arith.constant 0 : i32
    return %c0_i32, %c0_i32_0 : i32, i32
  }
  func.func @transform_2(%arg0: i32) -> (i32, i32) {
    %c0_i32 = arith.constant 0 : i32
    %c0_i32_0 = arith.constant 0 : i32
    %c0_i32_1 = arith.constant 0 : i32
    return %c0_i32, %c0_i32_0 : i32, i32
  }
  func.func @transform_3(%arg0: i32) -> (i32, i32) {
    %c0_i32 = arith.constant 0 : i32
    %c0_i32_0 = arith.constant 0 : i32
    %c0_i32_1 = arith.constant 0 : i32
    return %c0_i32, %c0_i32_0 : i32, i32
  }
  func.func @transform_4(%arg0: i32) -> (i32, i32) {
    %c0_i32 = arith.constant 0 : i32
    %c0_i32_0 = arith.constant 0 : i32
    %c0_i32_1 = arith.constant 0 : i32
    return %c0_i32, %c0_i32_0 : i32, i32
  }
  func.func @transform_5(%arg0: i32) -> (i32, i32) {
    %c0_i32 = arith.constant 0 : i32
    %c0_i32_0 = arith.constant 0 : i32
    %c0_i32_1 = arith.constant 0 : i32
    return %c0_i32, %c0_i32_0 : i32, i32
  }
  func.func @transform_6(%arg0: i32) -> (i32, i32, i32) {
    %c0_i32 = arith.constant 0 : i32
    %c0_i32_0 = arith.constant 0 : i32
    %c0_i32_1 = arith.constant 0 : i32
    %c0_i32_2 = arith.constant 0 : i32
    return %c0_i32, %c0_i32_0, %c0_i32_1 : i32, i32, i32
  }
  func.func @transform_7(%arg0: i32) -> (i32, i32) {
    %c0_i32 = arith.constant 0 : i32
    %c0_i32_0 = arith.constant 0 : i32
    %c0_i32_1 = arith.constant 0 : i32
    return %c0_i32, %c0_i32_0 : i32, i32
  }
  func.func @transform_8(%arg0: i32) -> (i32, i32) {
    %c0_i32 = arith.constant 0 : i32
    %c0_i32_0 = arith.constant 0 : i32
    %c0_i32_1 = arith.constant 0 : i32
    return %c0_i32, %c0_i32_0 : i32, i32
  }
  func.func @transform_9(%arg0: i32) -> (i32, i32) {
    %c0_i32 = arith.constant 0 : i32
    %c0_i32_0 = arith.constant 0 : i32
    %c0_i32_1 = arith.constant 0 : i32
    return %c0_i32, %c0_i32_0 : i32, i32
  }
  func.func @transform_10(%arg0: i32) -> (i32, i32) {
    %c0_i32 = arith.constant 0 : i32
    %c0_i32_0 = arith.constant 0 : i32
    %c0_i32_1 = arith.constant 0 : i32
    return %c0_i32, %c0_i32_0 : i32, i32
  }
  func.func @transform_11(%arg0: i32) -> (i32, i32) {
    %c0_i32 = arith.constant 0 : i32
    %c0_i32_0 = arith.constant 0 : i32
    %c0_i32_1 = arith.constant 0 : i32
    return %c0_i32, %c0_i32_0 : i32, i32
  }
  func.func @transform_12(%arg0: i32) -> (i32, i32) {
    %c0_i32 = arith.constant 0 : i32
    %c0_i32_0 = arith.constant 0 : i32
    %c0_i32_1 = arith.constant 0 : i32
    return %c0_i32, %c0_i32_0 : i32, i32
  }
}

</mosaic_0001>

<bundles_post_ra>
// kernel: deepfamq_forward.1
= control target key start
LH: loop header
LB: loop body
LE: loop exit
PB: predicated region body
PF: predicated region fallthrough
CT: control target
= control target key end

     0   :  { %vm1292_vm0 = vcmask 523264   ;;  %s5931_s1 = inlined_call_operand.vmem [shape: bf16[128,64], index: 1, kind: input, shape index: {}]   ;;  %s5932_s6 = inlined_call_operand.vmem [shape: bf16[36,128,32], index: 6, kind: input, shape index: {}]   ;;  %s5933_s7 = inlined_call_operand.vmem [shape: f32[1,32], index: 7, kind: input, shape index: {}]   ;;  %s5934_s8 = inlined_call_operand.vmem [shape: f32[32,32], index: 8, kind: input, shape index: {}]   ;;  %s5935_s9 = inlined_call_operand.vmem [shape: f32[1,32], index: 9, kind: input, shape index: {}]   ;;  %s5936_s10 = inlined_call_operand.vmem [shape: f32[32,1], index: 10, kind: input, shape index: {}]   ;;  %s5937_s11 = inlined_call_operand.<no memory space> [shape: f32[1,1], index: 11, kind: input, shape index: {}]   ;;  %s5938_s12 = inlined_call_operand.vmem [shape: f32[8,1], index: 12, kind: output, shape index: {}]   ;;  %s5939_s0 = inlined_call_operand.vmem [shape: bf16[864,128], index: 0, kind: input, shape index: {}]   ;;  %s5940_s3 = inlined_call_operand.vmem [shape: bf16[64,512], index: 3, kind: input, shape index: {}]   ;;  %s5941_s2 = inlined_call_operand.vmem [shape: f32[1,64], index: 2, kind: input, shape index: {}]   ;;  %s5942_s4 = inlined_call_operand.vmem [shape: f32[1,512], index: 4, kind: input, shape index: {}]   ;;  %s5943_s5 = inlined_call_operand.vmem [shape: bf16[128,512], index: 5, kind: input, shape index: {}]  }
   0x1   :  { %v17_v0 = vstv %s5937_s11  ;;  %v4090_v1 = vld [vmem:[%s5931_s1] sm:$0xff]   ;;  %v4091_v2 = vld [vmem:[%s5931_s1 + $0x8] sm:$0xff]   ;;  %v4092_v3 = vld [vmem:[%s5931_s1 + $0x10] sm:$0xff]  }
   0x2   :  { %18 = vst [vmem:[#allocation3] sm:$0x1] %v17_v0  ;;  %3792 = vmatprep.subr.bf16.mxu0 %v4090_v1  ;;  %v4093_v4 = vld [vmem:[%s5931_s1 + $0x18] sm:$0xff]   ;;  %v4098_v5 = vld [vmem:[%s5939_s0] sm:$0xff]   ;;  %v4095_v7 = vld [vmem:[%s5931_s1 + $0x28] sm:$0xff]  }
   0x3   :  { %3793 = vmatpush3.bf16.msra.mxu0 %v4090_v1  ;;  %3808 = vmatprep.mubr.bf16.mxu0 %v4098_v5  ;;  %v4094_v6 = vld [vmem:[%s5931_s1 + $0x20] sm:$0xff]   ;;  %v4096_v8 = vld [vmem:[%s5931_s1 + $0x30] sm:$0xff]   ;;  %v4097_v9 = vld [vmem:[%s5931_s1 + $0x38] sm:$0xff]  }
   0x4   :  { %3794 = vmatprep.subr.bf16.mxu0 %v4091_v2  ;;  %v4099_v10 = vld [vmem:[%s5939_s0 + $0x8] sm:$0xff]   ;;  %v4100_v11 = vld [vmem:[%s5939_s0 + $0x10] sm:$0xff]   ;;  %v4101_v12 = vld [vmem:[%s5939_s0 + $0x18] sm:$0xff]  }
   0x5   :  { %v4102_v13 = vld [vmem:[%s5939_s0 + $0x20] sm:$0xff]   ;;  %v4103_v14 = vld [vmem:[%s5939_s0 + $0x28] sm:$0xff]   ;;  %v4104_v15 = vld [vmem:[%s5939_s0 + $0x30] sm:$0xff]  }
   0x6   :  { %v4105_v16 = vld [vmem:[%s5939_s0 + $0x38] sm:$0xff]   ;;  %v4106_v17 = vld [vmem:[%s5939_s0 + $0x40] sm:$0xff]   ;;  %v4107_v18 = vld [vmem:[%s5939_s0 + $0x48] sm:$0xff]  }
   0x7   :  { %3795 = vmatpush3.bf16.msra.mxu0 %v4091_v2  ;;  %v4108_v19 = vld [vmem:[%s5939_s0 + $0x50] sm:$0xff]   ;;  %v4109_v20 = vld [vmem:[%s5939_s0 + $0x58] sm:$0xff]   ;;  %v4110_v21 = vld [vmem:[%s5939_s0 + $0x60] sm:$0xff]  }
   0x8   :  { %3796 = vmatprep.subr.bf16.mxu0 %v4092_v3  ;;  %v4111_v22 = vld [vmem:[%s5939_s0 + $0x68] sm:$0xff]   ;;  %v4112_v23 = vld [vmem:[%s5939_s0 + $0x70] sm:$0xff]   ;;  %v4113_v24 = vld [vmem:[%s5939_s0 + $0x78] sm:$0xff]  }
   0x9   :  { %v4114_v25 = vld [vmem:[%s5939_s0 + $0x80] sm:$0xff]   ;;  %v4115_v26 = vld [vmem:[%s5939_s0 + $0x88] sm:$0xff]   ;;  %v4116_v27 = vld [vmem:[%s5939_s0 + $0x90] sm:$0xff]  }
   0xa   :  { %v4117_v28 = vld [vmem:[%s5939_s0 + $0x98] sm:$0xff]   ;;  %v4118_v29 = vld [vmem:[%s5939_s0 + $0xa0] sm:$0xff]   ;;  %v4119_v30 = vld [vmem:[%s5939_s0 + $0xa8] sm:$0xff]  }
   0xb   :  { %3797 = vmatpush3.bf16.msra.mxu0 %v4092_v3  ;;  %v4120_v31 = vld [vmem:[%s5939_s0 + $0xb0] sm:$0xff]   ;;  %v4121_v32 = vld [vmem:[%s5939_s0 + $0xb8] sm:$0xff]   ;;  %v4122_v33 = vld [vmem:[%s5939_s0 + $0xc0] sm:$0xff]  }
   0xc   :  { %3798 = vmatprep.subr.bf16.mxu0 %v4093_v4  ;;  %v4123_v34 = vld [vmem:[%s5939_s0 + $0xc8] sm:$0xff]   ;;  %v4124_v35 = vld [vmem:[%s5939_s0 + $0xd0] sm:$0xff]   ;;  %v4125_v36 = vld [vmem:[%s5939_s0 + $0xd8] sm:$0xff]  }
   0xd   :  { %v4126_v37 = vld [vmem:[%s5939_s0 + $0xe0] sm:$0xff]   ;;  %v4127_v38 = vld [vmem:[%s5939_s0 + $0xe8] sm:$0xff]   ;;  %v4128_v39 = vld [vmem:[%s5939_s0 + $0xf0] sm:$0xff]  }
   0xe   :  { %v4129_v40 = vld [vmem:[%s5939_s0 + $0xf8] sm:$0xff]   ;;  %v4130_v41 = vld [vmem:[%s5939_s0 + $0x100] sm:$0xff]   ;;  %v4131_v42 = vld [vmem:[%s5939_s0 + $0x108] sm:$0xff]  }
   0xf   :  { %3799 = vmatpush3.bf16.msra.mxu0 %v4093_v4  ;;  %v4132_v43 = vld [vmem:[%s5939_s0 + $0x110] sm:$0xff]   ;;  %v4133_v44 = vld [vmem:[%s5939_s0 + $0x118] sm:$0xff]   ;;  %v4134_v45 = vld [vmem:[%s5939_s0 + $0x120] sm:$0xff]  }
  0x10   :  { %3800 = vmatprep.subr.bf16.mxu0 %v4094_v6  ;;  %v4135_v46 = vld [vmem:[%s5939_s0 + $0x128] sm:$0xff]   ;;  %v4136_v47 = vld [vmem:[%s5939_s0 + $0x130] sm:$0xff]   ;;  %v4137_v48 = vld [vmem:[%s5939_s0 + $0x138] sm:$0xff]  }
  0x11   :  { %v4138_v49 = vld [vmem:[%s5939_s0 + $0x140] sm:$0xff]   ;;  %v4139_v50 = vld [vmem:[%s5939_s0 + $0x148] sm:$0xff]   ;;  %v4140_v51 = vld [vmem:[%s5939_s0 + $0x150] sm:$0xff]  }
  0x12   :  { %v4141_v52 = vld [vmem:[%s5939_s0 + $0x158] sm:$0xff]   ;;  %v4142_v53 = vld [vmem:[%s5939_s0 + $0x160] sm:$0xff]   ;;  %v4143_v54 = vld [vmem:[%s5939_s0 + $0x168] sm:$0xff]  }
  0x13   :  { %3801 = vmatpush3.bf16.msra.mxu0 %v4094_v6  ;;  %v4144_v55 = vld [vmem:[%s5939_s0 + $0x170] sm:$0xff]   ;;  %v4145_v56 = vld [vmem:[%s5939_s0 + $0x178] sm:$0xff]   ;;  %v4146_v57 = vld [vmem:[%s5939_s0 + $0x180] sm:$0xff]  }
  0x14   :  { %3802 = vmatprep.subr.bf16.mxu0 %v4095_v7  ;;  %v4147_v58 = vld [vmem:[%s5939_s0 + $0x188] sm:$0xff]   ;;  %v4148_v59 = vld [vmem:[%s5939_s0 + $0x190] sm:$0xff]   ;;  %v4149_v60 = vld [vmem:[%s5939_s0 + $0x198] sm:$0xff]  }
  0x15   :  { %v4150_v61 = vld [vmem:[%s5939_s0 + $0x1a0] sm:$0xff]   ;;  %v4151_v62 = vld [vmem:[%s5939_s0 + $0x1a8] sm:$0xff]  }
  0x16   :  { %v4154_v6 = vld [vmem:[%s5940_s3 + $0x4] ss:$16 sps:$4 sm:$0xff]  }
  0x17   :  { %3803 = vmatpush3.bf16.msra.mxu0 %v4095_v7  ;;  %4030 = vmatprep.subr.bf16.mxu1 %v4154_v6 }
  0x18   :  { %3804 = vmatprep.subr.bf16.mxu0 %v4096_v8 }
  0x1b   :  { %3805 = vmatpush3.bf16.msra.mxu0 %v4096_v8  ;;  %v4152_v8 = vld [vmem:[%s5940_s3] ss:$16 sps:$4 sm:$0xff]  }
  0x1c   :  { %3806 = vmatprep.subr.bf16.mxu0 %v4097_v9  ;;  %4034 = vmatpush1.bf16.msra.mxu1 %v4152_v8 }
  0x1f   :  { %3807 = vmatpush3.bf16.msra.mxu0 %v4097_v9  ;;  %v4157_v9 = vld [vmem:[%s5940_s3 + $0x24] ss:$16 sps:$4 sm:$0xff]  }
  0x20   :  { %1347 = vmatprep.subr.bf16.mxu0 %v4154_v6  ;;  %4031 = vmatprep.subr.bf16.mxu1 %v4157_v9 }
  0x22   :  { %3809 = vmatmul.mubr.bf16.vlgmr.msra.gmra.mrb[0].mxu0 %v4099_v10  ;;  %v4155_v10 = vld [vmem:[%s5940_s3 + $0x20] ss:$16 sps:$4 sm:$0xff]  }
  0x23   :  { %3812 = vmatprep.mubr.bf16.mxu0 %v4100_v11  ;;  %1348 = vmatpush1.bf16.msra.mxu0 %v4152_v8 }
  0x24   :  { %1349 = vmatprep.subr.bf16.mxu0 %v4157_v9  ;;  %4035 = vmatpush1.bf16.msra.mxu1 %v4155_v10 }
  0x27   :  { %1350 = vmatpush1.bf16.msra.mxu0 %v4155_v10 }
  0x2a   :  { %3813 = vmatmul.mubr.bf16.gmra.mrb[4].mxu0 %v4101_v12 }
  0x2b   :  { %3816 = vmatprep.mubr.bf16.mxu0 %v4102_v13 }
  0x32   :  { %3817 = vmatmul.mubr.bf16.gmra.mrb[8].mxu0 %v4103_v14  ;;  %v4160_v14 = vld [vmem:[%s5940_s3 + $0x44] ss:$16 sps:$4 sm:$0xff]  }
  0x33   :  { %3820 = vmatprep.mubr.bf16.mxu0 %v4104_v15  ;;  %1351 = vmatprep.subr.bf16.mxu0 %v4160_v14 }
  0x34   :  { %4032 = vmatprep.subr.bf16.mxu1 %v4160_v14 }
  0x3a   :  { %3821 = vmatmul.mubr.bf16.gmra.mrb[12].mxu0 %v4105_v16  ;;  %v4158_v16 = vld [vmem:[%s5940_s3 + $0x40] ss:$16 sps:$4 sm:$0xff]  }
  0x3b   :  { %3824 = vmatprep.mubr.bf16.mxu0 %v4106_v17  ;;  %1352 = vmatpush1.bf16.msra.mxu0 %v4158_v16  ;;  %v4163_v17 = vld [vmem:[%s5940_s3 + $0x64] ss:$16 sps:$4 sm:$0xff]  }
  0x3c   :  { %4036 = vmatpush1.bf16.msra.mxu1 %v4158_v16  ;;  %1353 = vmatprep.subr.bf16.mxu0 %v4163_v17 }
  0x3d   :  { %4033 = vmatprep.subr.bf16.mxu1 %v4163_v17 }
  0x42   :  { %3825 = vmatmul.mubr.bf16.gmra.mrb[16].mxu0 %v4107_v18  ;;  %v4161_v18 = vld [vmem:[%s5940_s3 + $0x60] ss:$16 sps:$4 sm:$0xff]  }
  0x43   :  { %3828 = vmatprep.mubr.bf16.mxu0 %v4108_v19  ;;  %1354 = vmatpush1.bf16.msra.mxu0 %v4161_v18 }
  0x44   :  { %4037 = vmatpush1.bf16.msra.mxu1 %v4161_v18  ;;  %v4813_v18 = vld [vmem:[%s5941_s2] ss:$0 sm:$0xff] }
  0x4a   :  { %3829 = vmatmul.mubr.bf16.gmra.mrb[20].mxu0 %v4109_v20 }
  0x4b   :  { %3832 = vmatprep.mubr.bf16.mxu0 %v4110_v21 }
  0x52   :  { %3833 = vmatmul.mubr.bf16.gmra.mrb[24].mxu0 %v4111_v22 }
  0x53   :  { %3836 = vmatprep.mubr.bf16.mxu0 %v4112_v23  ;;  %v5944_v23 = vmov 0  }
  0x54   :  { %1409 = vmatprep.mubr.bf16.mxu1 %v5944_v23 }
  0x5a   :  { %3837 = vmatmul.mubr.bf16.gmra.mrb[28].mxu0 %v4113_v24 }
  0x5b   :  { %3840 = vmatprep.mubr.bf16.mxu0 %v4114_v25 }
  0x62   :  { %3841 = vmatmul.mubr.bf16.gmra.mrb[32].mxu0 %v4115_v26 }
  0x63   :  { %3844 = vmatprep.mubr.bf16.mxu0 %v4116_v27 }
  0x6a   :  { %3845 = vmatmul.mubr.bf16.gmra.mrb[36].mxu0 %v4117_v28 }
  0x6b   :  { %3848 = vmatprep.mubr.bf16.mxu0 %v4118_v29 }
  0x72   :  { %3849 = vmatmul.mubr.bf16.gmra.mrb[40].mxu0 %v4119_v30 }
  0x73   :  { %3852 = vmatprep.mubr.bf16.mxu0 %v4120_v31  ;;  %v4166_v31 = vld [vmem:[%s5940_s3 + $0xc] ss:$16 sps:$4 sm:$0xff]  }
  0x74   :  { %1560 = vmatprep.subr.bf16.mxu1 %v4166_v31 }
  0x7a   :  { %3853 = vmatmul.mubr.bf16.gmra.mrb[44].mxu0 %v4121_v32 }
  0x7b   :  { %3856 = vmatprep.mubr.bf16.mxu0 %v4122_v33 }
  0x82   :  { %3857 = vmatmul.mubr.bf16.gmra.mrb[48].mxu0 %v4123_v34 }
  0x83   :  { %3860 = vmatprep.mubr.bf16.mxu0 %v4124_v35 }
  0x8a   :  { %3861 = vmatmul.mubr.bf16.gmra.mrb[52].mxu0 %v4125_v36 }
  0x8b   :  { %3864 = vmatprep.mubr.bf16.mxu0 %v4126_v37 }
  0x92   :  { %3865 = vmatmul.mubr.bf16.gmra.mrb[56].mxu0 %v4127_v38 }
  0x93   :  { %3868 = vmatprep.mubr.bf16.mxu0 %v4128_v39 }
  0x9a   :  { %3869 = vmatmul.mubr.bf16.gmra.mrb[60].mxu0 %v4129_v40 }
  0x9b   :  { %3872 = vmatprep.mubr.bf16.mxu0 %v4130_v41 }
  0xa2   :  { %3873 = vmatmul.mubr.bf16.gmra.mrb[64].mxu0 %v4131_v42 }
  0xa3   :  { %3876 = vmatprep.mubr.bf16.mxu0 %v4132_v43 }
  0xaa   :  { %3877 = vmatmul.mubr.bf16.gmra.mrb[68].mxu0 %v4133_v44 }
  0xab   :  { %3880 = vmatprep.mubr.bf16.mxu0 %v4134_v45 }
  0xb2   :  { %3881 = vmatmul.mubr.bf16.gmra.mrb[72].mxu0 %v4135_v46 }
  0xb3   :  { %3884 = vmatprep.mubr.bf16.mxu0 %v4136_v47 }
  0xba   :  { %3885 = vmatmul.mubr.bf16.gmra.mrb[76].mxu0 %v4137_v48 }
  0xbb   :  { %3888 = vmatprep.mubr.bf16.mxu0 %v4138_v49 }
  0xc2   :  { %3889 = vmatmul.mubr.bf16.gmra.mrb[80].mxu0 %v4139_v50 }
  0xc3   :  { %3892 = vmatprep.mubr.bf16.mxu0 %v4140_v51 }
  0xca   :  { %3893 = vmatmul.mubr.bf16.gmra.mrb[84].mxu0 %v4141_v52 }
  0xcb   :  { %3896 = vmatprep.mubr.bf16.mxu0 %v4142_v53 }
  0xd2   :  { %3897 = vmatmul.mubr.bf16.gmra.mrb[88].mxu0 %v4143_v54 }
  0xd3   :  { %3900 = vmatprep.mubr.bf16.mxu0 %v4144_v55 }
  0xda   :  { %3901 = vmatmul.mubr.bf16.gmra.mrb[92].mxu0 %v4145_v56 }
  0xdb   :  { %3904 = vmatprep.mubr.bf16.mxu0 %v4146_v57 }
  0xe2   :  { %3905 = vmatmul.mubr.bf16.gmra.mrb[96].mxu0 %v4147_v58 }
  0xe3   :  { %3908 = vmatprep.mubr.bf16.mxu0 %v4148_v59 }
  0xea   :  { %3909 = vmatmul.mubr.bf16.gmra.mrb[100].mxu0 %v4149_v60 }
  0xeb   :  { %3912 = vmatprep.mubr.bf16.mxu0 %v4150_v61 }
  0xf2   :  { %3913 = vmatmul.mubr.bf16.gmra.mrb[104].mxu0 %v4151_v62 }
  0xf3   :  { %1379 = vmatprep.mubr.bf16.mxu0 %v5944_v23 }
  0xf5   :  { %v4565_v63 = vpop.f32.mrb[0].mxu0 }
  0xf6   :  { %v4567_v0 = vpop.f32.mrb[1].mxu0 }
  0xf7   :  { %v4569_v1 = vpop.f32.mrb[2].mxu0 }
  0xf8   :  { %v4571_v2 = vpop.f32.mrb[3].mxu0 }
  0xfd   :  { %v4573_v3 = vpop.f32.mrb[4].mxu0 }
  0xfe   :  { %v4575_v4 = vpop.f32.mrb[5].mxu0 }
  0xff   :  { %v4577_v5 = vpop.f32.mrb[6].mxu0 }
 0x100   :  { %v4582_v7 = vpop.f32.mrb[7].mxu0 }
 0x105   :  { %v4593_v11 = vpop.f32.mrb[8].mxu0 }
 0x106   :  { %v4595_v12 = vpop.f32.mrb[9].mxu0 }
 0x107   :  { %v4597_v13 = vpop.f32.mrb[10].mxu0 }
 0x108   :  { %v4602_v15 = vpop.f32.mrb[11].mxu0 }
 0x10d   :  { %v4613_v19 = vpop.f32.mrb[12].mxu0 }
 0x10e   :  { %v4615_v20 = vpop.f32.mrb[13].mxu0 }
 0x10f   :  { %v4617_v21 = vpop.f32.mrb[14].mxu0 }
 0x110   :  { %v4619_v22 = vpop.f32.mrb[15].mxu0 }
 0x115   :  { %v4623_v24 = vpop.f32.mrb[16].mxu0 }
 0x116   :  { %v4625_v25 = vpop.f32.mrb[17].mxu0 }
 0x117   :  { %v4627_v26 = vpop.f32.mrb[18].mxu0 }
 0x118   :  { %v4629_v27 = vpop.f32.mrb[19].mxu0 }
 0x11d   :  { %v4631_v28 = vpop.f32.mrb[20].mxu0 }
 0x11e   :  { %v4633_v29 = vpop.f32.mrb[21].mxu0 }
 0x11f   :  { %v4635_v30 = vpop.f32.mrb[22].mxu0 }
 0x120   :  { %v4640_v32 = vpop.f32.mrb[23].mxu0 }
 0x125   :  { %v4642_v33 = vpop.f32.mrb[24].mxu0 }
 0x126   :  { %v4644_v34 = vpop.f32.mrb[25].mxu0 }
 0x127   :  { %v4646_v35 = vpop.f32.mrb[26].mxu0 }
 0x128   :  { %v4648_v36 = vpop.f32.mrb[27].mxu0 }
 0x12d   :  { %v4650_v37 = vpop.f32.mrb[28].mxu0 }
 0x12e   :  { %v4652_v38 = vpop.f32.mrb[29].mxu0 }
 0x12f   :  { %v4654_v39 = vpop.f32.mrb[30].mxu0 }
 0x130   :  { %v4656_v40 = vpop.f32.mrb[31].mxu0 }
 0x131   :  { %6000 = vst [vmem:[#allocation4_spill] sm:$0xff] %v4656_v40 }
 0x135   :  { %v4658_v41 = vpop.f32.mrb[32].mxu0 }
 0x136   :  { %6001 = vst [vmem:[#allocation5_spill] sm:$0xff] %v4658_v41  ;;  %v4660_v42 = vpop.f32.mrb[33].mxu0 }
 0x137   :  { %6002 = vst [vmem:[#allocation6_spill] sm:$0xff] %v4660_v42  ;;  %v4662_v43 = vpop.f32.mrb[34].mxu0 }
 0x138   :  { %6003 = vst [vmem:[#allocation7_spill] sm:$0xff] %v4662_v43  ;;  %v4664_v44 = vpop.f32.mrb[35].mxu0 }
 0x139   :  { %6004 = vst [vmem:[#allocation8_spill] sm:$0xff] %v4664_v44 }
 0x13d   :  { %v4666_v45 = vpop.f32.mrb[36].mxu0 }
 0x13e   :  { %v4670_v47 = vpop.f32.mrb[37].mxu0 }
 0x13f   :  { %v4674_v49 = vpop.f32.mrb[38].mxu0  ;;  %v6023_v42 = vmax.f32 %v4567_v0, %v4670_v47 }
 0x140   :  { %v4678_v51 = vpop.f32.mrb[39].mxu0  ;;  %v6024_v16 = vmax.f32 %v4569_v1, %v4674_v49 }
 0x141   :  { %v6025_v40 = vmax.f32 %v4571_v2, %v4678_v51 }
 0x145   :  { %v4682_v53 = vpop.f32.mrb[40].mxu0 }
 0x146   :  { %v4686_v55 = vpop.f32.mrb[41].mxu0  ;;  %v6026_v1 = vmax.f32 %v4573_v3, %v4682_v53 }
 0x147   :  { %v4690_v57 = vpop.f32.mrb[42].mxu0  ;;  %v6027_v2 = vmax.f32 %v4575_v4, %v4686_v55  ;;  %v6030_v55 = vmov 0  }
 0x148   :  { %v4694_v59 = vpop.f32.mrb[43].mxu0 }
 0x149   :  { %v6029_v3 = vmax.f32 %v4582_v7, %v4694_v59 }
 0x14d   :  { %v4698_v61 = vpop.f32.mrb[44].mxu0 }
 0x14e   :  { %v4702_v6 = vpop.f32.mrb[45].mxu0  ;;  %v6031_v59 = vmax.f32 %v4593_v11, %v4698_v61 }
 0x14f   :  { %v4706_v9 = vpop.f32.mrb[46].mxu0 }
 0x150   :  { %v4710_v14 = vpop.f32.mrb[47].mxu0 }
 0x155   :  { %v4714_v17 = vpop.f32.mrb[48].mxu0 }
 0x156   :  { %v4718_v31 = vpop.f32.mrb[49].mxu0 }
 0x157   :  { %v4722_v62 = vpop.f32.mrb[50].mxu0 }
 0x158   :  { %v4726_v23 = vpop.f32.mrb[51].mxu0 }
 0x15d   :  { %v4730_v60 = vpop.f32.mrb[52].mxu0 }
 0x15e   :  { %v4734_v58 = vpop.f32.mrb[53].mxu0 }
 0x15f   :  { %v4738_v56 = vpop.f32.mrb[54].mxu0 }
 0x160   :  { %v4742_v54 = vpop.f32.mrb[55].mxu0 }
 0x161   :  { %6005 = vst [vmem:[#allocation9_spill] sm:$0xff] %v4742_v54 }
 0x165   :  { %v4746_v52 = vpop.f32.mrb[56].mxu0 }
 0x166   :  { %6006 = vst [vmem:[#allocation10_spill] sm:$0xff] %v4746_v52  ;;  %v4750_v50 = vpop.f32.mrb[57].mxu0 }
 0x167   :  { %6007 = vst [vmem:[#allocation11_spill] sm:$0xff] %v4750_v50  ;;  %v4754_v48 = vpop.f32.mrb[58].mxu0 }
 0x168   :  { %6008 = vst [vmem:[#allocation12_spill] sm:$0xff] %v4754_v48  ;;  %v4758_v46 = vpop.f32.mrb[59].mxu0 }
 0x169   :  { %6009 = vst [vmem:[#allocation13_spill] sm:$0xff] %v4758_v46 }
 0x16d   :  { %v4762_v54 = vpop.f32.mrb[60].mxu0 }
 0x16e   :  { %6010 = vst [vmem:[#allocation14_spill] sm:$0xff] %v4762_v54  ;;  %v4766_v52 = vpop.f32.mrb[61].mxu0 }
 0x16f   :  { %6011 = vst [vmem:[#allocation15_spill] sm:$0xff] %v4766_v52  ;;  %v4770_v50 = vpop.f32.mrb[62].mxu0 }
 0x170   :  { %6012 = vst [vmem:[#allocation16_spill] sm:$0xff] %v4770_v50  ;;  %v4774_v48 = vpop.f32.mrb[63].mxu0 }
 0x171   :  { %6013 = vst [vmem:[#allocation17_spill] sm:$0xff] %v4774_v48 }
 0x175   :  { %v4778_v46 = vpop.f32.mrb[64].mxu0 }
 0x176   :  { %6014 = vst [vmem:[#allocation18_spill] sm:$0xff] %v4778_v46  ;;  %v4782_v54 = vpop.f32.mrb[65].mxu0 }
 0x177   :  { %6015 = vst [vmem:[#allocation19_spill] sm:$0xff] %v4782_v54  ;;  %v4786_v52 = vpop.f32.mrb[66].mxu0 }
 0x178   :  { %6016 = vst [vmem:[#allocation20_spill] sm:$0xff] %v4786_v52  ;;  %v4790_v50 = vpop.f32.mrb[67].mxu0 }
 0x179   :  { %6017 = vst [vmem:[#allocation21_spill] sm:$0xff] %v4790_v50 }
 0x17d   :  { %v4794_v48 = vpop.f32.mrb[68].mxu0 }
 0x17e   :  { %6018 = vst [vmem:[#allocation22_spill] sm:$0xff] %v4794_v48  ;;  %v4798_v46 = vpop.f32.mrb[69].mxu0  ;;  %v6022_v48 = vmax.f32 %v4565_v63, %v4666_v45 }
 0x17f   :  { %6019 = vst [vmem:[#allocation23_spill] sm:$0xff] %v4798_v46  ;;  %v4802_v54 = vpop.f32.mrb[70].mxu0 }
 0x180   :  { %6020 = vst [vmem:[#allocation24_spill] sm:$0xff] %v4802_v54  ;;  %v4806_v52 = vpop.f32.mrb[71].mxu0 }
 0x181   :  { %6021 = vst [vmem:[#allocation25_spill] sm:$0xff] %v4806_v52 }
 0x185   :  { %v3882_v50 = vpop.f32.mrb[72].mxu0 }
 0x186   :  { %v1043_v8 = vmax.f32 %v6022_v48, %v3882_v50  ;;  %v862_v46 = vpop.f32.mrb[73].mxu0 }
 0x187   :  { %v1041_v10 = vmax.f32 %v6023_v42, %v862_v46  ;;  %v3883_v54 = vpop.f32.mrb[74].mxu0 }
 0x188   :  { %v1086_v43 = vadd.f32 %v4813_v18, %v1043_v8  ;;  %v1044_v52 = vmax.f32 %v6024_v16, %v3883_v54  ;;  %v865_v44 = vpop.f32.mrb[75].mxu0 }
 0x189   :  { %v1084_v41 = vadd.f32 %v4813_v18, %v1041_v10  ;;  %v1042_v63 = vmax.f32 %v6025_v40, %v865_v44 }
 0x18a   :  { %v1087_v45 = vadd.f32 %v4813_v18, %v1044_v52  ;;  %v1122_v0 = vmax.f32 %v1086_v43, 0.0 }
 0x18b   :  { %v1085_v48 = vadd.f32 %v4813_v18, %v1042_v63  ;;  %v1120_v46 = vmax.f32 %v1084_v41, 0.0  ;;  %v6028_v41 = vmax.f32 %v4577_v5, %v4690_v57 }
 0x18c   :  { %v1123_v42 = vmax.f32 %v1087_v45, 0.0 }
 0x18d   :  { %v1121_v47 = vmax.f32 %v1085_v48, 0.0  ;;  %v3886_v50 = vpop.f32.mrb[76].mxu0 }
 0x18e   :  { %v4831_v8 = vpack.c.bf16 %v1123_v42, %v1122_v0  ;;  %v1047_v49 = vmax.f32 %v6026_v1, %v3886_v50  ;;  %v878_v54 = vpop.f32.mrb[77].mxu0  ;;  %v4164_v42 = vld [vmem:[%s5940_s3 + $0x8] ss:$16 sps:$4 sm:$0xff]   ;;  %v6032_v1 = vmax.f32 %v4595_v12, %v4702_v6  ;;  %v6034_v12 = vmax.f32 %v4602_v15, %v4710_v14 }
 0x18f   :  { %v4836_v10 = vpack.c.bf16 %v1121_v47, %v1120_v46  ;;  %v1045_v40 = vmax.f32 %v6027_v2, %v878_v54  ;;  %v3887_v44 = vpop.f32.mrb[78].mxu0  ;;  %v4169_v2 = vld [vmem:[%s5940_s3 + $0x2c] ss:$16 sps:$4 sm:$0xff]  }
 0x190   :  { %v1090_v43 = vadd.f32 %v4813_v18, %v1047_v49  ;;  %v1048_v51 = vmax.f32 %v6028_v41, %v3887_v44  ;;  %v881_v52 = vpop.f32.mrb[79].mxu0  ;;  %v6033_v44 = vmax.f32 %v4597_v13, %v4706_v9  ;;  %v4167_v41 = vld [vmem:[%s5940_s3 + $0x28] ss:$16 sps:$4 sm:$0xff]   ;;  %v4172_v9 = vld [vmem:[%s5940_s3 + $0x4c] ss:$16 sps:$4 sm:$0xff]  }
 0x191   :  { %v1088_v16 = vadd.f32 %v4813_v18, %v1045_v40  ;;  %v1046_v53 = vmax.f32 %v6029_v3, %v881_v52  ;;  %3464 = vmatmul.mubr.msk.bf16.vlgmr.msra.gmra.mrb[108].mxu0 %vm1292_vm0, %v4836_v10 }
 0x192   :  { %v1091_v4 = vadd.f32 %v4813_v18, %v1048_v51  ;;  %1389 = vmatprep.mubr.bf16.mxu0 %v6030_v55  ;;  %v1126_v45 = vmax.f32 %v1090_v43, 0.0 }
 0x193   :  { %v1089_v63 = vadd.f32 %v4813_v18, %v1046_v53  ;;  %v1124_v5 = vmax.f32 %v1088_v16, 0.0 }
 0x194   :  { %v1127_v48 = vmax.f32 %v1091_v4, 0.0  ;;  %v6035_v4 = vmax.f32 %v4613_v19, %v4714_v17  ;;  %v6037_v17 = vmax.f32 %v4617_v21, %v4722_v62  ;;  %v4173_v21 = vld [vmem:[%s5940_s3 + $0x68] ss:$16 sps:$4 sm:$0xff]  }
 0x195   :  { %v1125_v57 = vmax.f32 %v1089_v63, 0.0  ;;  %v3890_v0 = vpop.f32.mrb[80].mxu0 }
 0x196   :  { %v4857_v7 = vpack.c.bf16 %v1127_v48, %v1126_v45  ;;  %v1051_v46 = vmax.f32 %v6031_v59, %v3890_v0  ;;  %v894_v47 = vpop.f32.mrb[81].mxu0  ;;  %v4170_v48 = vld [vmem:[%s5940_s3 + $0x48] ss:$16 sps:$4 sm:$0xff]   ;;  %v4175_v59 = vld [vmem:[%s5940_s3 + $0x6c] ss:$16 sps:$4 sm:$0xff]  }
 0x197   :  { %v4862_v50 = vpack.c.bf16 %v1125_v57, %v1124_v5  ;;  %v1049_v49 = vmax.f32 %v6032_v1, %v894_v47  ;;  %v3891_v54 = vpop.f32.mrb[82].mxu0  ;;  %v6036_v57 = vmax.f32 %v4615_v20, %v4718_v31 }
 0x198   :  { %v1094_v40 = vadd.f32 %v4813_v18, %v1051_v46  ;;  %v1052_v43 = vmax.f32 %v6033_v44, %v3891_v54  ;;  %v897_v11 = vpop.f32.mrb[83].mxu0  ;;  %3467 = vmatmul.mubr.msk.bf16.vlgmr.msra.gmra.mrb[0].mxu1 %vm1292_vm0, %v4857_v7 }
 0x199   :  { %v1092_v61 = vadd.f32 %v4813_v18, %v1049_v49  ;;  %v1050_v6 = vmax.f32 %v6034_v12, %v897_v11  ;;  %3465 = vmatmul.mubr.msk.bf16.gmra.mrb[112].mxu0 %vm1292_vm0, %v4831_v8  ;;  %1561 = vmatpush1.bf16.msra.mxu1 %v4164_v42  ;;  %v6038_v49 = vmax.f32 %v4619_v22, %v4726_v23 }
 0x19a   :  { %v1095_v13 = vadd.f32 %v4813_v18, %v1052_v43  ;;  %1399 = vmatprep.mubr.bf16.mxu0 %v6030_v55  ;;  %1419 = vmatprep.mubr.bf16.mxu1 %v6030_v55  ;;  %v1130_v14 = vmax.f32 %v1094_v40, 0.0  ;;  %v6039_v43 = vmax.f32 %v4623_v24, %v4730_v60  ;;  %v6042_v24 = vld [vmem:[#allocation9_spill] sm:$0xff] }
 0x19b   :  { %v1093_v15 = vadd.f32 %v4813_v18, %v1050_v6  ;;  %1562 = vmatprep.subr.bf16.mxu1 %v4169_v2  ;;  %v1128_v52 = vmax.f32 %v1092_v61, 0.0  ;;  %v6040_v6 = vmax.f32 %v4625_v25, %v4734_v58  ;;  %v6043_v60 = vmax.f32 %v4629_v27, %v6042_v24  ;;  %v6056_v24 = vld [vmem:[#allocation16_spill] sm:$0xff] }
 0x19c   :  { %v1131_v51 = vmax.f32 %v1095_v13, 0.0 }
 0x19d   :  { %v1129_v16 = vmax.f32 %v1093_v15, 0.0  ;;  %v3894_v3 = vpop.f32.mrb[84].mxu0  ;;  %1563 = vmatpush1.bf16.msra.mxu1 %v4167_v41  ;;  %v6041_v15 = vmax.f32 %v4627_v26, %v4738_v56 }
 0x19e   :  { %v4892_v53 = vpack.c.bf16 %v1131_v51, %v1130_v14  ;;  %v1055_v63 = vmax.f32 %v6035_v4, %v3894_v3  ;;  %v910_v45 = vpop.f32.mrb[85].mxu0  ;;  %1564 = vmatprep.subr.bf16.mxu1 %v4172_v9 }
 0x19f   :  { %v4900_v5 = vpack.c.bf16 %v1129_v16, %v1128_v52  ;;  %v1053_v0 = vmax.f32 %v6036_v57, %v910_v45  ;;  %v3895_v42 = vpop.f32.mrb[86].mxu0 }
 0x1a0   :  { %v1098_v19 = vadd.f32 %v4813_v18, %v1055_v63  ;;  %v1056_v46 = vmax.f32 %v6037_v17, %v3895_v42  ;;  %v913_v47 = vpop.f32.mrb[87].mxu0 }
 0x1a1   :  { %v1096_v1 = vadd.f32 %v4813_v18, %v1053_v0  ;;  %v1054_v54 = vmax.f32 %v6038_v49, %v913_v47  ;;  %3466 = vmatmul.mubr.msk.bf16.gmra.mrb[116].mxu0 %vm1292_vm0, %v4862_v50  ;;  %3468 = vmatmul.mubr.msk.bf16.gmra.mrb[4].mxu1 %vm1292_vm0, %v4900_v5 }
 0x1a2   :  { %v1099_v20 = vadd.f32 %v4813_v18, %v1056_v46  ;;  %1429 = vmatprep.mubr.bf16.mxu1 %v6030_v55  ;;  %1565 = vmatpush1.bf16.msra.mxu1 %v4170_v48  ;;  %v1134_v22 = vmax.f32 %v1098_v19, 0.0  ;;  %v6044_v48 = vld [vmem:[#allocation10_spill] sm:$0xff] }
 0x1a3   :  { %v1097_v62 = vadd.f32 %v4813_v18, %v1054_v54  ;;  %1566 = vmatprep.subr.bf16.mxu1 %v4175_v59  ;;  %v1132_v31 = vmax.f32 %v1096_v1, 0.0  ;;  %v6045_v27 = vmax.f32 %v4631_v28, %v6044_v48  ;;  %v6046_v59 = vld [vmem:[#allocation11_spill] sm:$0xff]  ;;  %v6048_v1 = vld [vmem:[#allocation12_spill] sm:$0xff]  ;;  %v6050_v28 = vld [vmem:[#allocation13_spill] sm:$0xff] }
 0x1a4   :  { %v1135_v23 = vmax.f32 %v1099_v20, 0.0  ;;  %v6047_v19 = vmax.f32 %v4633_v29, %v6046_v59  ;;  %v6049_v49 = vmax.f32 %v4635_v30, %v6048_v1 }
 0x1a5   :  { %v1133_v2 = vmax.f32 %v1097_v62, 0.0  ;;  %v3898_v40 = vpop.f32.mrb[88].mxu0  ;;  %v6051_v62 = vmax.f32 %v4640_v32, %v6050_v28 }
 0x1a6   :  { %v4926_v44 = vpack.c.bf16 %v1135_v23, %v1134_v22  ;;  %v1059_v11 = vmax.f32 %v6039_v43, %v3898_v40  ;;  %v926_v61 = vpop.f32.mrb[89].mxu0  ;;  %1567 = vmatpush1.bf16.msra.mxu1 %v4173_v21 }
 0x1a7   :  { %v4931_v12 = vpack.c.bf16 %v1133_v2, %v1132_v31  ;;  %v1057_v41 = vmax.f32 %v6040_v6, %v926_v61  ;;  %v3899_v13 = vpop.f32.mrb[90].mxu0  ;;  %v6052_v61 = vld [vmem:[#allocation14_spill] sm:$0xff] }
 0x1a8   :  { %v1102_v9 = vadd.f32 %v4813_v18, %v1059_v11  ;;  %v1060_v14 = vmax.f32 %v6041_v15, %v3899_v13  ;;  %v929_v51 = vpop.f32.mrb[91].mxu0  ;;  %v6053_v32 = vmax.f32 %v4642_v33, %v6052_v61  ;;  %v6058_v33 = vld [vmem:[#allocation17_spill] sm:$0xff] }
 0x1a9   :  { %v1100_v52 = vadd.f32 %v4813_v18, %v1057_v41  ;;  %v1058_v16 = vmax.f32 %v6043_v60, %v929_v51  ;;  %3469 = vmatmul.mubr.msk.bf16.gmra.mrb[8].mxu1 %vm1292_vm0, %v4892_v53  ;;  %v6057_v60 = vmax.f32 %v4646_v35, %v6056_v24  ;;  %v6073_v24 = vld [vmem:[#allocation23_spill] sm:$0xff] }
 0x1aa   :  { %v1103_v25 = vadd.f32 %v4813_v18, %v1060_v14  ;;  %1439 = vmatprep.mubr.bf16.mxu1 %v6030_v55  ;;  %v1138_v3 = vmax.f32 %v1102_v9, 0.0  ;;  %v6054_v9 = vld [vmem:[#allocation15_spill] sm:$0xff] }
 0x1ab   :  { %v1101_v58 = vadd.f32 %v4813_v18, %v1058_v16  ;;  %v1136_v26 = vmax.f32 %v1100_v52, 0.0  ;;  %v6055_v15 = vmax.f32 %v4644_v34, %v6054_v9 }
 0x1ac   :  { %v1139_v4 = vmax.f32 %v1103_v25, 0.0 }
 0x1ad   :  { %v1137_v56 = vmax.f32 %v1101_v58, 0.0  ;;  %v3902_v63 = vpop.f32.mrb[92].mxu0 }
 0x1ae   :  { %v4949_v45 = vpack.c.bf16 %v1139_v4, %v1138_v3  ;;  %v1063_v57 = vmax.f32 %v6045_v27, %v3902_v63  ;;  %v942_v0 = vpop.f32.mrb[93].mxu0  ;;  %v6059_v3 = vmax.f32 %v4648_v36, %v6058_v33  ;;  %v6075_v33 = vld [vmem:[#allocation7_spill] sm:$0xff] }
 0x1af   :  { %v4954_v42 = vpack.c.bf16 %v1137_v56, %v1136_v26  ;;  %v1061_v17 = vmax.f32 %v6047_v19, %v942_v0  ;;  %v3903_v46 = vpop.f32.mrb[94].mxu0  ;;  %v6060_v0 = vld [vmem:[#allocation18_spill] sm:$0xff] }
 0x1b0   :  { %v1106_v47 = vadd.f32 %v4813_v18, %v1063_v57  ;;  %v1064_v54 = vmax.f32 %v6049_v49, %v3903_v46  ;;  %v945_v20 = vpop.f32.mrb[95].mxu0  ;;  %v6061_v36 = vmax.f32 %v4650_v37, %v6060_v0  ;;  %v6062_v46 = vld [vmem:[#allocation19_spill] sm:$0xff]  ;;  %v6067_v37 = vld [vmem:[#allocation21_spill] sm:$0xff] }
 0x1b1   :  { %v1104_v21 = vadd.f32 %v4813_v18, %v1061_v17  ;;  %v1062_v22 = vmax.f32 %v6051_v62, %v945_v20  ;;  %3470 = vmatmul.mubr.msk.bf16.gmra.mrb[12].mxu1 %vm1292_vm0, %v4931_v12  ;;  %v6064_v20 = vld [vmem:[#allocation20_spill] sm:$0xff] }
 0x1b2   :  { %v1107_v29 = vadd.f32 %v4813_v18, %v1064_v54  ;;  %1449 = vmatprep.mubr.bf16.mxu1 %v6030_v55  ;;  %v1142_v31 = vmax.f32 %v1106_v47, 0.0  ;;  %v6063_v47 = vmax.f32 %v4652_v38, %v6062_v46 }
 0x1b3   :  { %v1105_v23 = vadd.f32 %v4813_v18, %v1062_v22  ;;  %v1140_v30 = vmax.f32 %v1104_v21, 0.0  ;;  %v6065_v21 = vmax.f32 %v4654_v39, %v6064_v20 }
 0x1b4   :  { %v1143_v2 = vmax.f32 %v1107_v29, 0.0  ;;  %v6066_v29 = vld [vmem:[#allocation4_spill] sm:$0xff] }
 0x1b5   :  { %v1141_v40 = vmax.f32 %v1105_v23, 0.0  ;;  %v3906_v43 = vpop.f32.mrb[96].mxu0  ;;  %v6068_v23 = vmax.f32 %v6066_v29, %v6067_v37 }
 0x1b6   :  { %v4972_v11 = vpack.c.bf16 %v1143_v2, %v1142_v31  ;;  %v1067_v6 = vmax.f32 %v6053_v32, %v3906_v43  ;;  %v958_v41 = vpop.f32.mrb[97].mxu0 }
 0x1b7   :  { %v4977_v13 = vpack.c.bf16 %v1141_v40, %v1140_v30  ;;  %v1065_v14 = vmax.f32 %v6055_v15, %v958_v41  ;;  %v3907_v51 = vpop.f32.mrb[98].mxu0  ;;  %v6070_v41 = vld [vmem:[#allocation22_spill] sm:$0xff] }
 0x1b8   :  { %v1110_v52 = vadd.f32 %v4813_v18, %v1067_v6  ;;  %v1068_v16 = vmax.f32 %v6057_v60, %v3907_v51  ;;  %v961_v25 = vpop.f32.mrb[99].mxu0  ;;  %v6069_v6 = vld [vmem:[#allocation5_spill] sm:$0xff] }
 0x1b9   :  { %v1108_v58 = vadd.f32 %v4813_v18, %v1065_v14  ;;  %v1066_v4 = vmax.f32 %v6059_v3, %v961_v25  ;;  %3471 = vmatmul.mubr.msk.bf16.gmra.mrb[16].mxu1 %vm1292_vm0, %v4926_v44  ;;  %v6071_v9 = vmax.f32 %v6069_v6, %v6070_v41  ;;  %v6076_v3 = vld [vmem:[#allocation24_spill] sm:$0xff] }
 0x1ba   :  { %v1111_v34 = vadd.f32 %v4813_v18, %v1068_v16  ;;  %1459 = vmatprep.mubr.bf16.mxu1 %v6030_v55  ;;  %v1146_v56 = vmax.f32 %v1110_v52, 0.0  ;;  %v6072_v52 = vld [vmem:[#allocation6_spill] sm:$0xff] }
 0x1bb   :  { %v1109_v26 = vadd.f32 %v4813_v18, %v1066_v4  ;;  %v1144_v35 = vmax.f32 %v1108_v58, 0.0  ;;  %v6074_v60 = vmax.f32 %v6072_v52, %v6073_v24  ;;  %v6077_v4 = vmax.f32 %v6075_v33, %v6076_v3 }
 0x1bc   :  { %v1147_v63 = vmax.f32 %v1111_v34, 0.0 }
 0x1bd   :  { %v1145_v48 = vmax.f32 %v1109_v26, 0.0  ;;  %v3910_v27 = vpop.f32.mrb[100].mxu0 }
 0x1be   :  { %v4995_v57 = vpack.c.bf16 %v1147_v63, %v1146_v56  ;;  %v1071_v59 = vmax.f32 %v6061_v36, %v3910_v27  ;;  %v974_v19 = vpop.f32.mrb[101].mxu0  ;;  %v6078_v63 = vld [vmem:[#allocation8_spill] sm:$0xff] }
 0x1bf   :  { %v5000_v17 = vpack.c.bf16 %v1145_v48, %v1144_v35  ;;  %v1069_v1 = vmax.f32 %v6063_v47, %v974_v19  ;;  %v3911_v49 = vpop.f32.mrb[102].mxu0  ;;  %v6079_v35 = vld [vmem:[#allocation25_spill] sm:$0xff] }
 0x1c0   :  { %v1114_v54 = vadd.f32 %v4813_v18, %v1071_v59  ;;  %v1072_v28 = vmax.f32 %v6065_v21, %v3911_v49  ;;  %v977_v62 = vpop.f32.mrb[103].mxu0  ;;  %v6080_v48 = vmax.f32 %v6078_v63, %v6079_v35 }
 0x1c1   :  { %v1112_v22 = vadd.f32 %v4813_v18, %v1069_v1  ;;  %v1070_v31 = vmax.f32 %v6068_v23, %v977_v62  ;;  %3472 = vmatmul.mubr.msk.bf16.gmra.mrb[20].mxu1 %vm1292_vm0, %v4954_v42 }
 0x1c2   :  { %v1115_v38 = vadd.f32 %v4813_v18, %v1072_v28  ;;  %1469 = vmatprep.mubr.bf16.mxu1 %v6030_v55  ;;  %v1150_v30 = vmax.f32 %v1114_v54, 0.0 }
 0x1c3   :  { %v1113_v2 = vadd.f32 %v4813_v18, %v1070_v31  ;;  %v1148_v39 = vmax.f32 %v1112_v22, 0.0 }
 0x1c4   :  { %v1151_v40 = vmax.f32 %v1115_v38, 0.0 }
 0x1c5   :  { %v1149_v43 = vmax.f32 %v1113_v2, 0.0  ;;  %v3914_v61 = vpop.f32.mrb[104].mxu0 }
 0x1c6   :  { %v5018_v32 = vpack.c.bf16 %v1151_v40, %v1150_v30  ;;  %v1075_v15 = vmax.f32 %v6071_v9, %v3914_v61  ;;  %v990_v14 = vpop.f32.mrb[105].mxu0 }
 0x1c7   :  { %v5023_v51 = vpack.c.bf16 %v1149_v43, %v1148_v39  ;;  %v1073_v16 = vmax.f32 %v6074_v60, %v990_v14  ;;  %v3915_v25 = vpop.f32.mrb[106].mxu0 }
 0x1c8   :  { %v1118_v58 = vadd.f32 %v4813_v18, %v1075_v15  ;;  %v1076_v34 = vmax.f32 %v6077_v4, %v3915_v25  ;;  %v993_v26 = vpop.f32.mrb[107].mxu0 }
 0x1c9   :  { %v1116_v56 = vadd.f32 %v4813_v18, %v1073_v16  ;;  %v1074_v27 = vmax.f32 %v6080_v48, %v993_v26  ;;  %3473 = vmatmul.mubr.msk.bf16.gmra.mrb[24].mxu1 %vm1292_vm0, %v4949_v45 }
 0x1ca   :  { %v1119_v0 = vadd.f32 %v4813_v18, %v1076_v34  ;;  %1479 = vmatprep.mubr.bf16.mxu1 %v6030_v55  ;;  %v1154_v59 = vmax.f32 %v1118_v58, 0.0 }
 0x1cb   :  { %v1117_v36 = vadd.f32 %v4813_v18, %v1074_v27  ;;  %v1152_v46 = vmax.f32 %v1116_v56, 0.0  ;;  %v1192_v18 = vlaneseq }
 0x1cc   :  { %v1155_v19 = vmax.f32 %v1119_v0, 0.0 }
 0x1cd   :  { %v1153_v47 = vmax.f32 %v1117_v36, 0.0 }
 0x1ce   :  { %v5041_v1 = vpack.c.bf16 %v1155_v19, %v1154_v59 }
 0x1cf   :  { %v5043_v49 = vpack.c.bf16 %v1153_v47, %v1152_v46 }
 0x1d1   :  { %3474 = vmatmul.mubr.msk.bf16.gmra.mrb[28].mxu1 %vm1292_vm0, %v4977_v13 }
 0x1d2   :  { %1489 = vmatprep.mubr.bf16.mxu1 %v6030_v55 }
 0x1d9   :  { %3475 = vmatmul.mubr.msk.bf16.gmra.mrb[32].mxu1 %vm1292_vm0, %v4972_v11 }
 0x1da   :  { %1499 = vmatprep.mubr.bf16.mxu1 %v6030_v55 }
 0x1e1   :  { %3476 = vmatmul.mubr.msk.bf16.gmra.mrb[36].mxu1 %vm1292_vm0, %v5000_v17 }
 0x1e2   :  { %1509 = vmatprep.mubr.bf16.mxu1 %v6030_v55 }
 0x1e9   :  { %3477 = vmatmul.mubr.msk.bf16.gmra.mrb[40].mxu1 %vm1292_vm0, %v4995_v57 }
 0x1ea   :  { %1519 = vmatprep.mubr.bf16.mxu1 %v6030_v55 }
 0x1f1   :  { %3478 = vmatmul.mubr.msk.bf16.gmra.mrb[44].mxu1 %vm1292_vm0, %v5023_v51 }
 0x1f2   :  { %1529 = vmatprep.mubr.bf16.mxu1 %v6030_v55 }
 0x1f9   :  { %3479 = vmatmul.mubr.msk.bf16.gmra.mrb[48].mxu1 %vm1292_vm0, %v5018_v32 }
 0x1fa   :  { %1539 = vmatprep.mubr.bf16.mxu1 %v6030_v55 }
 0x201   :  { %3480 = vmatmul.mubr.msk.bf16.gmra.mrb[52].mxu1 %vm1292_vm0, %v5043_v49 }
 0x202   :  { %1549 = vmatprep.mubr.bf16.mxu1 %v6030_v55 }
 0x209   :  { %3481 = vmatmul.mubr.msk.bf16.gmra.mrb[56].mxu1 %vm1292_vm0, %v5041_v1 }
 0x20a   :  { %1592 = vmatprep.mubr.bf16.mxu1 %v6030_v55 }
 0x211   :  { %3482 = vmatmul.mubr.msk.bf16.vlgmr.msra.gmra.mrb[60].mxu1 %vm1292_vm0, %v4836_v10 }
 0x212   :  { %1602 = vmatprep.mubr.bf16.mxu1 %v6030_v55 }
 0x219   :  { %3483 = vmatmul.mubr.msk.bf16.gmra.mrb[64].mxu1 %vm1292_vm0, %v4831_v8  ;;  %v5099_v8 = vshrl.u32 %v1192_v18, 7 }
 0x21a   :  { %1612 = vmatprep.mubr.bf16.mxu1 %v6030_v55 }
 0x21b   :  { %v1194_v10 = vsub.s32 0, %v5099_v8 }
 0x221   :  { %3484 = vmatmul.mubr.msk.bf16.gmra.mrb[68].mxu1 %vm1292_vm0, %v4862_v50  ;;  %v1198_v50 = vsub.s32 1, %v5099_v8 }
 0x222   :  { %1622 = vmatprep.mubr.bf16.mxu1 %v6030_v55 }
 0x229   :  { %3485 = vmatmul.mubr.msk.bf16.gmra.mrb[72].mxu1 %vm1292_vm0, %v4857_v7  ;;  %v5106_v7 = vld [vmem:[%s5942_s4] sm:$0xf] }
 0x22a   :  { %1632 = vmatprep.mubr.bf16.mxu1 %v6030_v55 }
 0x231   :  { %3486 = vmatmul.mubr.msk.bf16.gmra.mrb[76].mxu1 %vm1292_vm0, %v4900_v5  ;;  %v5115_v5 = vrot.slane %v5106_v7, %v1198_v50 }
 0x232   :  { %1642 = vmatprep.mubr.bf16.mxu1 %v6030_v55 }
 0x239   :  { %3487 = vmatmul.mubr.msk.bf16.gmra.mrb[80].mxu1 %vm1292_vm0, %v4892_v53  ;;  %v5112_v53 = vrot.slane %v5106_v7, %v1194_v10 }
 0x23a   :  { %1652 = vmatprep.mubr.bf16.mxu1 %v6030_v55 }
 0x241   :  { %3488 = vmatmul.mubr.msk.bf16.gmra.mrb[84].mxu1 %vm1292_vm0, %v4931_v12 }
 0x242   :  { %1662 = vmatprep.mubr.bf16.mxu1 %v6030_v55 }
 0x249   :  { %3489 = vmatmul.mubr.msk.bf16.gmra.mrb[88].mxu1 %vm1292_vm0, %v4926_v44 }
 0x24a   :  { %1672 = vmatprep.mubr.bf16.mxu1 %v6030_v55 }
 0x251   :  { %3490 = vmatmul.mubr.msk.bf16.gmra.mrb[92].mxu1 %vm1292_vm0, %v4954_v42 }
 0x252   :  { %1682 = vmatprep.mubr.bf16.mxu1 %v6030_v55 }
 0x259   :  { %3491 = vmatmul.mubr.msk.bf16.gmra.mrb[96].mxu1 %vm1292_vm0, %v4949_v45 }
 0x25a   :  { %1692 = vmatprep.mubr.bf16.mxu1 %v6030_v55 }
 0x261   :  { %3492 = vmatmul.mubr.msk.bf16.gmra.mrb[100].mxu1 %vm1292_vm0, %v4977_v13 }
 0x262   :  { %1702 = vmatprep.mubr.bf16.mxu1 %v6030_v55 }
 0x264   :  { %v1381_v44 = vpop.f32.mrb[108].mxu0 }
 0x265   :  { %v1382_v12 = vadd.f32 %v1381_v44, %v5112_v53  ;;  %v1383_v45 = vpop.f32.mrb[109].mxu0 }
 0x266   :  { %v1384_v42 = vadd.f32 %v1383_v45, %v5115_v5  ;;  %v1385_v54 = vpop.f32.mrb[110].mxu0 }
 0x267   :  { %1773 = vst [vmem:[#allocation2] sm:$0xff] %v1382_v12  ;;  %v1386_v20 = vadd.f32 %v1385_v54, %v5112_v53  ;;  %v1387_v21 = vpop.f32.mrb[111].mxu0 }
 0x268   :  { %1774 = vst [vmem:[#allocation2 + $0x8] sm:$0xff] %v1384_v42  ;;  %v1388_v13 = vadd.f32 %v1387_v21, %v5115_v5 }
 0x269   :  { %1777 = vst [vmem:[#allocation2 + $0x20] sm:$0xff] %v1386_v20  ;;  %3493 = vmatmul.mubr.msk.bf16.gmra.mrb[104].mxu1 %vm1292_vm0, %v4972_v11 }
 0x26a   :  { %1778 = vst [vmem:[#allocation2 + $0x28] sm:$0xff] %v1388_v13  ;;  %1712 = vmatprep.mubr.bf16.mxu1 %v6030_v55 }
 0x26b   :  { %v1411_v28 = vpop.f32.mrb[0].mxu1 }
 0x26c   :  { %v1412_v62 = vadd.f32 %v1411_v28, %v5112_v53  ;;  %v1391_v22 = vpop.f32.mrb[112].mxu0  ;;  %v1413_v29 = vpop.f32.mrb[1].mxu1 }
 0x26d   :  { %v1392_v37 = vadd.f32 %v1391_v22, %v5112_v53  ;;  %v1414_v23 = vadd.f32 %v1413_v29, %v5115_v5  ;;  %v1393_v31 = vpop.f32.mrb[113].mxu0  ;;  %v1415_v38 = vpop.f32.mrb[2].mxu1 }
 0x26e   :  { %1797 = vst [vmem:[#allocation2 + $0xc0] sm:$0xff] %v1412_v62  ;;  %v1394_v2 = vadd.f32 %v1393_v31, %v5115_v5  ;;  %v1416_v30 = vadd.f32 %v1415_v38, %v5112_v53  ;;  %v1395_v11 = vpop.f32.mrb[114].mxu0  ;;  %v1417_v40 = vpop.f32.mrb[3].mxu1 }
 0x26f   :  { %1781 = vst [vmem:[#allocation2 + $0x40] sm:$0xff] %v1392_v37  ;;  %1798 = vst [vmem:[#allocation2 + $0xc8] sm:$0xff] %v1414_v23  ;;  %v1396_v39 = vadd.f32 %v1395_v11, %v5112_v53  ;;  %v1418_v43 = vadd.f32 %v1417_v40, %v5115_v5  ;;  %v1397_v61 = vpop.f32.mrb[115].mxu0 }
 0x270   :  { %1782 = vst [vmem:[#allocation2 + $0x48] sm:$0xff] %v1394_v2  ;;  %1801 = vst [vmem:[#allocation2 + $0xe0] sm:$0xff] %v1416_v30  ;;  %v1398_v6 = vadd.f32 %v1397_v61, %v5115_v5 }
 0x271   :  { %1785 = vst [vmem:[#allocation2 + $0x60] sm:$0xff] %v1396_v39  ;;  %1802 = vst [vmem:[#allocation2 + $0xe8] sm:$0xff] %v1418_v43  ;;  %3494 = vmatmul.mubr.msk.bf16.gmra.mrb[108].mxu1 %vm1292_vm0, %v5000_v17 }
 0x272   :  { %1786 = vst [vmem:[#allocation2 + $0x68] sm:$0xff] %v1398_v6  ;;  %1722 = vmatprep.mubr.bf16.mxu1 %v6030_v55 }
 0x274   :  { %v1401_v41 = vpop.f32.mrb[116].mxu0  ;;  %v1421_v9 = vpop.f32.mrb[4].mxu1 }
 0x275   :  { %v1402_v15 = vadd.f32 %v1401_v41, %v5112_v53  ;;  %v1422_v14 = vadd.f32 %v1421_v9, %v5112_v53  ;;  %v1403_v52 = vpop.f32.mrb[117].mxu0  ;;  %v1423_v24 = vpop.f32.mrb[5].mxu1 }
 0x276   :  { %v1404_v60 = vadd.f32 %v1403_v52, %v5115_v5  ;;  %v1424_v16 = vadd.f32 %v1423_v24, %v5115_v5  ;;  %v1405_v25 = vpop.f32.mrb[118].mxu0  ;;  %v1425_v58 = vpop.f32.mrb[6].mxu1 }
 0x277   :  { %1789 = vst [vmem:[#allocation2 + $0x80] sm:$0xff] %v1402_v15  ;;  %1805 = vst [vmem:[#allocation2 + $0x100] sm:$0xff] %v1422_v14  ;;  %v1406_v17 = vadd.f32 %v1405_v25, %v5112_v53  ;;  %v1426_v33 = vadd.f32 %v1425_v58, %v5112_v53  ;;  %v1407_v3 = vpop.f32.mrb[119].mxu0  ;;  %v1427_v4 = vpop.f32.mrb[7].mxu1 }
 0x278   :  { %1790 = vst [vmem:[#allocation2 + $0x88] sm:$0xff] %v1404_v60  ;;  %1806 = vst [vmem:[#allocation2 + $0x108] sm:$0xff] %v1424_v16  ;;  %v1408_v34 = vadd.f32 %v1407_v3, %v5115_v5  ;;  %v1428_v26 = vadd.f32 %v1427_v4, %v5115_v5 }
 0x279   :  { %1793 = vst [vmem:[#allocation2 + $0xa0] sm:$0xff] %v1406_v17  ;;  %1809 = vst [vmem:[#allocation2 + $0x120] sm:$0xff] %v1426_v33  ;;  %3495 = vmatmul.mubr.msk.bf16.gmra.mrb[112].mxu1 %vm1292_vm0, %v4995_v57 }
 0x27a   :  { %1794 = vst [vmem:[#allocation2 + $0xa8] sm:$0xff] %v1408_v34  ;;  %1810 = vst [vmem:[#allocation2 + $0x128] sm:$0xff] %v1428_v26  ;;  %1732 = vmatprep.mubr.bf16.mxu1 %v6030_v55 }
 0x27c   :  { %v1431_v56 = vpop.f32.mrb[8].mxu1 }
 0x27d   :  { %v1432_v63 = vadd.f32 %v1431_v56, %v5112_v53  ;;  %v1433_v35 = vpop.f32.mrb[9].mxu1 }
 0x27e   :  { %v1434_v48 = vadd.f32 %v1433_v35, %v5115_v5  ;;  %v1435_v27 = vpop.f32.mrb[10].mxu1 }
 0x27f   :  { %1813 = vst [vmem:[#allocation2 + $0x140] sm:$0xff] %v1432_v63  ;;  %v1436_v0 = vadd.f32 %v1435_v27, %v5112_v53  ;;  %v1437_v36 = vpop.f32.mrb[11].mxu1 }
 0x280   :  { %1814 = vst [vmem:[#allocation2 + $0x148] sm:$0xff] %v1434_v48  ;;  %v1438_v59 = vadd.f32 %v1437_v36, %v5115_v5 }
 0x281   :  { %1817 = vst [vmem:[#allocation2 + $0x160] sm:$0xff] %v1436_v0  ;;  %3496 = vmatmul.mubr.msk.bf16.gmra.mrb[116].mxu1 %vm1292_vm0, %v5023_v51 }
 0x282   :  { %1818 = vst [vmem:[#allocation2 + $0x168] sm:$0xff] %v1438_v59  ;;  %1742 = vmatprep.mubr.bf16.mxu1 %v6030_v55 }
 0x284   :  { %v1441_v57 = vpop.f32.mrb[12].mxu1 }
 0x285   :  { %v1442_v19 = vadd.f32 %v1441_v57, %v5112_v53  ;;  %v1443_v46 = vpop.f32.mrb[13].mxu1 }
 0x286   :  { %v1444_v47 = vadd.f32 %v1443_v46, %v5115_v5  ;;  %v1445_v10 = vpop.f32.mrb[14].mxu1 }
 0x287   :  { %1821 = vst [vmem:[#allocation2 + $0x180] sm:$0xff] %v1442_v19  ;;  %v1446_v50 = vadd.f32 %v1445_v10, %v5112_v53  ;;  %v1447_v44 = vpop.f32.mrb[15].mxu1 }
 0x288   :  { %1822 = vst [vmem:[#allocation2 + $0x188] sm:$0xff] %v1444_v47  ;;  %v1448_v12 = vadd.f32 %v1447_v44, %v5115_v5 }
 0x289   :  { %1825 = vst [vmem:[#allocation2 + $0x1a0] sm:$0xff] %v1446_v50  ;;  %3497 = vmatmul.mubr.msk.bf16.gmra.mrb[120].mxu1 %vm1292_vm0, %v5018_v32 }
 0x28a   :  { %1826 = vst [vmem:[#allocation2 + $0x1a8] sm:$0xff] %v1448_v12  ;;  %1752 = vmatprep.mubr.bf16.mxu1 %v6030_v55 }
 0x28c   :  { %v1451_v51 = vpop.f32.mrb[16].mxu1 }
 0x28d   :  { %v1452_v45 = vadd.f32 %v1451_v51, %v5112_v53  ;;  %v1453_v42 = vpop.f32.mrb[17].mxu1 }
 0x28e   :  { %v1454_v54 = vadd.f32 %v1453_v42, %v5115_v5  ;;  %v1455_v20 = vpop.f32.mrb[18].mxu1 }
 0x28f   :  { %1829 = vst [vmem:[#allocation2 + $0x1c0] sm:$0xff] %v1452_v45  ;;  %v1456_v21 = vadd.f32 %v1455_v20, %v5112_v53  ;;  %v1457_v13 = vpop.f32.mrb[19].mxu1 }
 0x290   :  { %1830 = vst [vmem:[#allocation2 + $0x1c8] sm:$0xff] %v1454_v54  ;;  %v1458_v28 = vadd.f32 %v1457_v13, %v5115_v5 }
 0x291   :  { %1833 = vst [vmem:[#allocation2 + $0x1e0] sm:$0xff] %v1456_v21  ;;  %3498 = vmatmul.mubr.msk.bf16.gmra.mrb[124].mxu1 %vm1292_vm0, %v5043_v49 }
 0x292   :  { %1834 = vst [vmem:[#allocation2 + $0x1e8] sm:$0xff] %v1458_v28  ;;  %1762 = vmatprep.mubr.bf16.mxu1 %v6030_v55 }
 0x294   :  { %v1461_v32 = vpop.f32.mrb[20].mxu1 }
 0x295   :  { %v1462_v62 = vadd.f32 %v1461_v32, %v5112_v53  ;;  %v1463_v22 = vpop.f32.mrb[21].mxu1 }
 0x296   :  { %v1464_v29 = vadd.f32 %v1463_v22, %v5115_v5  ;;  %v1465_v37 = vpop.f32.mrb[22].mxu1 }
 0x297   :  { %1837 = vst [vmem:[#allocation2 + $0x200] sm:$0xff] %v1462_v62  ;;  %v1466_v23 = vadd.f32 %v1465_v37, %v5112_v53  ;;  %v1467_v31 = vpop.f32.mrb[23].mxu1 }
 0x298   :  { %1838 = vst [vmem:[#allocation2 + $0x208] sm:$0xff] %v1464_v29  ;;  %v1468_v38 = vadd.f32 %v1467_v31, %v5115_v5 }
 0x299   :  { %1841 = vst [vmem:[#allocation2 + $0x220] sm:$0xff] %v1466_v23  ;;  %3499 = vmatmul.mubr.msk.bf16.gmra.mrb[128].mxu1 %vm1292_vm0, %v5041_v1 }
 0x29a   :  { %1842 = vst [vmem:[#allocation2 + $0x228] sm:$0xff] %v1468_v38 }
 0x29c   :  { %v1471_v55 = vpop.f32.mrb[24].mxu1 }
 0x29d   :  { %v1472_v49 = vadd.f32 %v1471_v55, %v5112_v53  ;;  %v1473_v2 = vpop.f32.mrb[25].mxu1 }
 0x29e   :  { %v1474_v30 = vadd.f32 %v1473_v2, %v5115_v5  ;;  %v1475_v11 = vpop.f32.mrb[26].mxu1 }
 0x29f   :  { %1845 = vst [vmem:[#allocation2 + $0x240] sm:$0xff] %v1472_v49  ;;  %v1476_v40 = vadd.f32 %v1475_v11, %v5112_v53  ;;  %v1477_v39 = vpop.f32.mrb[27].mxu1 }
 0x2a0   :  { %1846 = vst [vmem:[#allocation2 + $0x248] sm:$0xff] %v1474_v30  ;;  %v1478_v43 = vadd.f32 %v1477_v39, %v5115_v5 }
 0x2a1   :  { %1849 = vst [vmem:[#allocation2 + $0x260] sm:$0xff] %v1476_v40 }
 0x2a2   :  { %1850 = vst [vmem:[#allocation2 + $0x268] sm:$0xff] %v1478_v43 }
 0x2a4   :  { %v1481_v61 = vpop.f32.mrb[28].mxu1 }
 0x2a5   :  { %v1482_v1 = vadd.f32 %v1481_v61, %v5112_v53  ;;  %v1483_v6 = vpop.f32.mrb[29].mxu1  ;;  %v1202_v61 = vsub.s32 2, %v5099_v8 }
 0x2a6   :  { %v1484_v41 = vadd.f32 %v1483_v6, %v5115_v5  ;;  %v1485_v9 = vpop.f32.mrb[30].mxu1 }
 0x2a7   :  { %1853 = vst [vmem:[#allocation2 + $0x280] sm:$0xff] %v1482_v1  ;;  %v1486_v15 = vadd.f32 %v1485_v9, %v5112_v53  ;;  %v1487_v14 = vpop.f32.mrb[31].mxu1 }
 0x2a8   :  { %1854 = vst [vmem:[#allocation2 + $0x288] sm:$0xff] %v1484_v41  ;;  %v1488_v52 = vadd.f32 %v1487_v14, %v5115_v5  ;;  %v1206_v41 = vsub.s32 3, %v5099_v8 }
 0x2a9   :  { %1857 = vst [vmem:[#allocation2 + $0x2a0] sm:$0xff] %v1486_v15 }
 0x2aa   :  { %1858 = vst [vmem:[#allocation2 + $0x2a8] sm:$0xff] %v1488_v52  ;;  %v5213_v52 = vrot.slane %v5106_v7, %v1202_v61  ;;  %v5357_v61 = vld [vmem:[%s5943_s5 + $0xa8] sm:$0xff] }
 0x2ac   :  { %v1491_v24 = vpop.f32.mrb[32].mxu1 }
 0x2ad   :  { %v1492_v60 = vadd.f32 %v1491_v24, %v5112_v53  ;;  %v1493_v16 = vpop.f32.mrb[33].mxu1  ;;  %v5216_v24 = vrot.slane %v5106_v7, %v1206_v41  ;;  %v5223_v7 = vand.u32 127, %v1192_v18  ;;  %v5372_v41 = vld [vmem:[%s5943_s5 + $0xc0] sm:$0xff] }
 0x2ae   :  { %v1494_v25 = vadd.f32 %v1493_v16, %v5115_v5  ;;  %v1495_v58 = vpop.f32.mrb[34].mxu1  ;;  %6109 = vst [vmem:[#allocation26_spill] sm:$0xff] %v5372_v41 }
 0x2af   :  { %1861 = vst [vmem:[#allocation2 + $0x2c0] sm:$0xff] %v1492_v60  ;;  %v1496_v17 = vadd.f32 %v1495_v58, %v5112_v53  ;;  %v1497_v33 = vpop.f32.mrb[35].mxu1  ;;  %vm2002_vm1 = vcmp.lt.s32.totalorder %v5223_v7, 64 }
 0x2b0   :  { %1862 = vst [vmem:[#allocation2 + $0x2c8] sm:$0xff] %v1494_v25  ;;  %v1498_v3 = vadd.f32 %v1497_v33, %v5115_v5 }
 0x2b1   :  { %1865 = vst [vmem:[#allocation2 + $0x2e0] sm:$0xff] %v1496_v17 }
 0x2b2   :  { %1866 = vst [vmem:[#allocation2 + $0x2e8] sm:$0xff] %v1498_v3 }
 0x2b4   :  { %v1501_v4 = vpop.f32.mrb[36].mxu1 }
 0x2b5   :  { %v1502_v34 = vadd.f32 %v1501_v4, %v5112_v53  ;;  %v1503_v26 = vpop.f32.mrb[37].mxu1 }
 0x2b6   :  { %v1504_v56 = vadd.f32 %v1503_v26, %v5115_v5  ;;  %v1505_v63 = vpop.f32.mrb[38].mxu1 }
 0x2b7   :  { %1869 = vst [vmem:[#allocation2 + $0x300] sm:$0xff] %v1502_v34  ;;  %v1506_v35 = vadd.f32 %v1505_v63, %v5112_v53  ;;  %v1507_v48 = vpop.f32.mrb[39].mxu1  ;;  %v1952_v63 = vadd.s32 256, %v5223_v7 }
 0x2b8   :  { %1870 = vst [vmem:[#allocation2 + $0x308] sm:$0xff] %v1504_v56  ;;  %v1508_v27 = vadd.f32 %v1507_v48, %v5115_v5  ;;  %v1951_v56 = vadd.s32 128, %v5223_v7 }
 0x2b9   :  { %1873 = vst [vmem:[#allocation2 + $0x320] sm:$0xff] %v1506_v35  ;;  %v1953_v35 = vadd.s32 384, %v5223_v7 }
 0x2ba   :  { %1874 = vst [vmem:[#allocation2 + $0x328] sm:$0xff] %v1508_v27 }
 0x2bc   :  { %v1511_v0 = vpop.f32.mrb[40].mxu1 }
 0x2bd   :  { %v1512_v36 = vadd.f32 %v1511_v0, %v5112_v53  ;;  %v1513_v59 = vpop.f32.mrb[41].mxu1  ;;  %v1965_v0 = vand.u32 127, %v1951_v56 }
 0x2be   :  { %v1514_v57 = vadd.f32 %v1513_v59, %v5115_v5  ;;  %v1515_v19 = vpop.f32.mrb[42].mxu1  ;;  %v1979_v59 = vand.u32 127, %v1953_v35 }
 0x2bf   :  { %1877 = vst [vmem:[#allocation2 + $0x340] sm:$0xff] %v1512_v36  ;;  %v1516_v46 = vadd.f32 %v1515_v19, %v5112_v53  ;;  %v1517_v47 = vpop.f32.mrb[43].mxu1  ;;  %v1972_v36 = vand.u32 127, %v1952_v63  ;;  %v5240_v19 = vld [vmem:[%s5943_s5 + $0x8] sm:$0xff]  ;;  %vm5248_vm2 = vcmp.lt.s32.totalorder %v1965_v0, 64 }
 0x2c0   :  { %1878 = vst [vmem:[#allocation2 + $0x348] sm:$0xff] %v1514_v57  ;;  %v1518_v10 = vadd.f32 %v1517_v47, %v5115_v5  ;;  %v5235_v57 = vld [vmem:[%s5943_s5] sm:$0xff]  ;;  %6082 = vst [vmem:[#allocation10_spill] sm:$0xff] %v5240_v19  ;;  %vm5271_vm4 = vcmp.lt.s32.totalorder %v1979_v59, 64 }
 0x2c1   :  { %1881 = vst [vmem:[#allocation2 + $0x360] sm:$0xff] %v1516_v46  ;;  %6081 = vst [vmem:[#allocation9_spill] sm:$0xff] %v5235_v57  ;;  %v5245_v46 = vld [vmem:[%s5943_s5 + $0x10] sm:$0xff]  ;;  %vm5252_vm3 = vcmp.lt.s32.totalorder %v1972_v36, 64 }
 0x2c2   :  { %1882 = vst [vmem:[#allocation2 + $0x368] sm:$0xff] %v1518_v10  ;;  %6083 = vst [vmem:[#allocation11_spill] sm:$0xff] %v5245_v46 }
 0x2c4   :  { %v1521_v50 = vpop.f32.mrb[44].mxu1 }
 0x2c5   :  { %v1522_v44 = vadd.f32 %v1521_v50, %v5112_v53  ;;  %v1523_v12 = vpop.f32.mrb[45].mxu1  ;;  %v5259_v50 = vld [vmem:[%s5943_s5 + $0x18] sm:$0xff] }
 0x2c6   :  { %v1524_v51 = vadd.f32 %v1523_v12, %v5115_v5  ;;  %v1525_v45 = vpop.f32.mrb[46].mxu1  ;;  %6088 = vst [vmem:[#allocation12_spill] sm:$0xff] %v5259_v50  ;;  %v5269_v12 = vld [vmem:[%s5943_s5 + $0x28] sm:$0xff] }
 0x2c7   :  { %1885 = vst [vmem:[#allocation2 + $0x380] sm:$0xff] %v1522_v44  ;;  %v1526_v42 = vadd.f32 %v1525_v45, %v5112_v53  ;;  %v1527_v54 = vpop.f32.mrb[47].mxu1  ;;  %v5264_v44 = vld [vmem:[%s5943_s5 + $0x20] sm:$0xff]  ;;  %6090 = vst [vmem:[#allocation14_spill] sm:$0xff] %v5269_v12 }
 0x2c8   :  { %1886 = vst [vmem:[#allocation2 + $0x388] sm:$0xff] %v1524_v51  ;;  %v1528_v20 = vadd.f32 %v1527_v54, %v5115_v5  ;;  %6089 = vst [vmem:[#allocation13_spill] sm:$0xff] %v5264_v44  ;;  %v5283_v54 = vld [vmem:[%s5943_s5 + $0x38] sm:$0xff] }
 0x2c9   :  { %1889 = vst [vmem:[#allocation2 + $0x3a0] sm:$0xff] %v1526_v42  ;;  %v5278_v42 = vld [vmem:[%s5943_s5 + $0x30] sm:$0xff]  ;;  %6094 = vst [vmem:[#allocation16_spill] sm:$0xff] %v5283_v54 }
 0x2ca   :  { %1890 = vst [vmem:[#allocation2 + $0x3a8] sm:$0xff] %v1528_v20  ;;  %6093 = vst [vmem:[#allocation15_spill] sm:$0xff] %v5278_v42  ;;  %v5288_v20 = vld [vmem:[%s5943_s5 + $0x40] sm:$0xff] }
 0x2cb   :  { %6095 = vst [vmem:[#allocation17_spill] sm:$0xff] %v5288_v20 }
 0x2cc   :  { %v1531_v21 = vpop.f32.mrb[48].mxu1 }
 0x2cd   :  { %v1532_v13 = vadd.f32 %v1531_v21, %v5112_v53  ;;  %v1533_v28 = vpop.f32.mrb[49].mxu1 }
 0x2ce   :  { %v1534_v32 = vadd.f32 %v1533_v28, %v5115_v5  ;;  %v1535_v62 = vpop.f32.mrb[50].mxu1  ;;  %v5294_v28 = vld [vmem:[%s5943_s5 + $0x48] sm:$0xff] }
 0x2cf   :  { %1893 = vst [vmem:[#allocation2 + $0x3c0] sm:$0xff] %v1532_v13  ;;  %v1536_v22 = vadd.f32 %v1535_v62, %v5112_v53  ;;  %v1537_v29 = vpop.f32.mrb[51].mxu1  ;;  %6096 = vst [vmem:[#allocation18_spill] sm:$0xff] %v5294_v28  ;;  %v5304_v62 = vld [vmem:[%s5943_s5 + $0x58] sm:$0xff] }
 0x2d0   :  { %1894 = vst [vmem:[#allocation2 + $0x3c8] sm:$0xff] %v1534_v32  ;;  %v1538_v37 = vadd.f32 %v1537_v29, %v5115_v5  ;;  %v5299_v32 = vld [vmem:[%s5943_s5 + $0x50] sm:$0xff] }
 0x2d1   :  { %1897 = vst [vmem:[#allocation2 + $0x3e0] sm:$0xff] %v1536_v22  ;;  %6097 = vst [vmem:[#allocation19_spill] sm:$0xff] %v5299_v32 }
 0x2d2   :  { %1898 = vst [vmem:[#allocation2 + $0x3e8] sm:$0xff] %v1538_v37  ;;  %v5310_v37 = vld [vmem:[%s5943_s5 + $0x60] sm:$0xff] }
 0x2d3   :  { %6098 = vst [vmem:[#allocation20_spill] sm:$0xff] %v5310_v37 }
 0x2d4   :  { %v1541_v23 = vpop.f32.mrb[52].mxu1 }
 0x2d5   :  { %v1542_v31 = vadd.f32 %v1541_v23, %v5112_v53  ;;  %v1543_v38 = vpop.f32.mrb[53].mxu1  ;;  %v5315_v23 = vld [vmem:[%s5943_s5 + $0x68] sm:$0xff] }
 0x2d6   :  { %v1544_v55 = vadd.f32 %v1543_v38, %v5115_v5  ;;  %v1545_v49 = vpop.f32.mrb[54].mxu1  ;;  %6099 = vst [vmem:[#allocation4_spill] sm:$0xff] %v5315_v23 }
 0x2d7   :  { %1901 = vst [vmem:[#allocation2 + $0x400] sm:$0xff] %v1542_v31  ;;  %v1546_v2 = vadd.f32 %v1545_v49, %v5112_v53  ;;  %v1547_v30 = vpop.f32.mrb[55].mxu1  ;;  %v5320_v31 = vld [vmem:[%s5943_s5 + $0x70] sm:$0xff]  ;;  %v5326_v49 = vld [vmem:[%s5943_s5 + $0x78] sm:$0xff] }
 0x2d8   :  { %1902 = vst [vmem:[#allocation2 + $0x408] sm:$0xff] %v1544_v55  ;;  %v1548_v11 = vadd.f32 %v1547_v30, %v5115_v5  ;;  %6100 = vst [vmem:[#allocation21_spill] sm:$0xff] %v5320_v31  ;;  %v5336_v30 = vld [vmem:[%s5943_s5 + $0x88] sm:$0xff] }
 0x2d9   :  { %1905 = vst [vmem:[#allocation2 + $0x420] sm:$0xff] %v1546_v2  ;;  %6101 = vst [vmem:[#allocation5_spill] sm:$0xff] %v5326_v49  ;;  %v5331_v2 = vld [vmem:[%s5943_s5 + $0x80] sm:$0xff] }
 0x2da   :  { %1906 = vst [vmem:[#allocation2 + $0x428] sm:$0xff] %v1548_v11  ;;  %6102 = vst [vmem:[#allocation22_spill] sm:$0xff] %v5331_v2 }
 0x2db   :  { %6103 = vst [vmem:[#allocation6_spill] sm:$0xff] %v5336_v30 }
 0x2dc   :  { %v1551_v40 = vpop.f32.mrb[56].mxu1 }
 0x2dd   :  { %v1552_v39 = vadd.f32 %v1551_v40, %v5112_v53  ;;  %v1553_v43 = vpop.f32.mrb[57].mxu1  ;;  %v5342_v40 = vld [vmem:[%s5943_s5 + $0x90] sm:$0xff] }
 0x2de   :  { %v1554_v1 = vadd.f32 %v1553_v43, %v5115_v5  ;;  %v1555_v6 = vpop.f32.mrb[58].mxu1  ;;  %6104 = vst [vmem:[#allocation23_spill] sm:$0xff] %v5342_v40  ;;  %v5352_v43 = vld [vmem:[%s5943_s5 + $0xa0] sm:$0xff] }
 0x2df   :  { %1909 = vst [vmem:[#allocation2 + $0x440] sm:$0xff] %v1552_v39  ;;  %v1556_v9 = vadd.f32 %v1555_v6, %v5112_v53  ;;  %v1557_v15 = vpop.f32.mrb[59].mxu1  ;;  %v5347_v39 = vld [vmem:[%s5943_s5 + $0x98] sm:$0xff]  ;;  %6106 = vst [vmem:[#allocation24_spill] sm:$0xff] %v5352_v43 }
 0x2e0   :  { %1910 = vst [vmem:[#allocation2 + $0x448] sm:$0xff] %v1554_v1  ;;  %v1558_v14 = vadd.f32 %v1557_v15, %v5115_v5  ;;  %6105 = vst [vmem:[#allocation7_spill] sm:$0xff] %v5347_v39  ;;  %v5362_v1 = vld [vmem:[%s5943_s5 + $0xb0] sm:$0xff]  ;;  %v5367_v6 = vld [vmem:[%s5943_s5 + $0xb8] sm:$0xff] }
 0x2e1   :  { %1913 = vst [vmem:[#allocation2 + $0x460] sm:$0xff] %v1556_v9  ;;  %6107 = vst [vmem:[#allocation8_spill] sm:$0xff] %v5362_v1  ;;  %v5377_v9 = vld [vmem:[%s5943_s5 + $0xc8] sm:$0xff]  ;;  %v5382_v15 = vld [vmem:[%s5943_s5 + $0xd0] sm:$0xff] }
 0x2e2   :  { %1914 = vst [vmem:[#allocation2 + $0x468] sm:$0xff] %v1558_v14  ;;  %6108 = vst [vmem:[#allocation25_spill] sm:$0xff] %v5367_v6  ;;  %v5387_v14 = vld [vmem:[%s5943_s5 + $0xd8] sm:$0xff] }
 0x2e3   :  { %6110 = vst [vmem:[#allocation27_spill] sm:$0xff] %v5377_v9  ;;  %6111 = vst [vmem:[#allocation28_spill] sm:$0xff] %v5382_v15 }
 0x2e4   :  { %v1594_v60 = vpop.f32.mrb[60].mxu1  ;;  %6112 = vst [vmem:[#allocation29_spill] sm:$0xff] %v5387_v14 }
 0x2e5   :  { %v1595_v16 = vadd.f32 %v1594_v60, %v5213_v52  ;;  %v1596_v25 = vpop.f32.mrb[61].mxu1  ;;  %v5392_v60 = vld [vmem:[%s5943_s5 + $0xe0] sm:$0xff] }
 0x2e6   :  { %v1597_v8 = vadd.f32 %v1596_v25, %v5216_v24  ;;  %v1598_v58 = vpop.f32.mrb[62].mxu1 }
 0x2e7   :  { %1775 = vst [vmem:[#allocation2 + $0x10] sm:$0xff] %v1595_v16  ;;  %v1599_v53 = vadd.f32 %v1598_v58, %v5213_v52  ;;  %v1600_v17 = vpop.f32.mrb[63].mxu1  ;;  %v5397_v16 = vld [vmem:[%s5943_s5 + $0xe8] sm:$0xff]  ;;  %v5407_v58 = vld [vmem:[%s5943_s5 + $0xf8] sm:$0xff] }
 0x2e8   :  { %1776 = vst [vmem:[#allocation2 + $0x18] sm:$0xff] %v1597_v8  ;;  %v1601_v5 = vadd.f32 %v1600_v17, %v5216_v24  ;;  %6113 = vst [vmem:[#allocation30_spill] sm:$0xff] %v5397_v16  ;;  %v5402_v8 = vld [vmem:[%s5943_s5 + $0xf0] sm:$0xff]  ;;  %s5475_s5 = smov 0  }
 0x2e9   :  { %1779 = vst [vmem:[#allocation2 + $0x30] sm:$0xff] %v1599_v53  ;;  %6114 = vst [vmem:[#allocation31_spill] sm:$0xff] %v5402_v8 }
 0x2ea   :  { %1780 = vst [vmem:[#allocation2 + $0x38] sm:$0xff] %v1601_v5 }
 0x2ec   :  { %v1604_v33 = vpop.f32.mrb[64].mxu1 }
 0x2ed   :  { %v1605_v3 = vadd.f32 %v1604_v33, %v5213_v52  ;;  %v1606_v4 = vpop.f32.mrb[65].mxu1 }
 0x2ee   :  { %v1607_v34 = vadd.f32 %v1606_v4, %v5216_v24  ;;  %v1608_v26 = vpop.f32.mrb[66].mxu1 }
 0x2ef   :  { %1783 = vst [vmem:[#allocation2 + $0x50] sm:$0xff] %v1605_v3  ;;  %v1609_v48 = vadd.f32 %v1608_v26, %v5213_v52  ;;  %v1610_v27 = vpop.f32.mrb[67].mxu1 }
 0x2f0   :  { %1784 = vst [vmem:[#allocation2 + $0x58] sm:$0xff] %v1607_v34  ;;  %v1611_v18 = vadd.f32 %v1610_v27, %v5216_v24 }
 0x2f1   :  { %1787 = vst [vmem:[#allocation2 + $0x70] sm:$0xff] %v1609_v48 }
 0x2f2   :  { %1788 = vst [vmem:[#allocation2 + $0x78] sm:$0xff] %v1611_v18 }
 0x2f4   :  { %v1614_v45 = vpop.f32.mrb[68].mxu1 }
 0x2f5   :  { %v1615_v21 = vadd.f32 %v1614_v45, %v5213_v52  ;;  %v1616_v13 = vpop.f32.mrb[69].mxu1 }
 0x2f6   :  { %v1617_v22 = vadd.f32 %v1616_v13, %v5216_v24  ;;  %v1618_v29 = vpop.f32.mrb[70].mxu1 }
 0x2f7   :  { %1791 = vst [vmem:[#allocation2 + $0x90] sm:$0xff] %v1615_v21  ;;  %v1619_v38 = vadd.f32 %v1618_v29, %v5213_v52  ;;  %v1620_v55 = vpop.f32.mrb[71].mxu1 }
 0x2f8   :  { %1792 = vst [vmem:[#allocation2 + $0x98] sm:$0xff] %v1617_v22  ;;  %v1621_v11 = vadd.f32 %v1620_v55, %v5216_v24 }
 0x2f9   :  { %1795 = vst [vmem:[#allocation2 + $0xb0] sm:$0xff] %v1619_v38 }
 0x2fa   :  { %1796 = vst [vmem:[#allocation2 + $0xb8] sm:$0xff] %v1621_v11 }
 0x2fc   :  { %v1624_v25 = vpop.f32.mrb[72].mxu1 }
 0x2fd   :  { %v1625_v53 = vadd.f32 %v1624_v25, %v5213_v52  ;;  %v1626_v17 = vpop.f32.mrb[73].mxu1 }
 0x2fe   :  { %v1627_v5 = vadd.f32 %v1626_v17, %v5216_v24  ;;  %v1628_v33 = vpop.f32.mrb[74].mxu1 }
 0x2ff   :  { %1799 = vst [vmem:[#allocation2 + $0xd0] sm:$0xff] %v1625_v53  ;;  %v1629_v3 = vadd.f32 %v1628_v33, %v5213_v52  ;;  %v1630_v4 = vpop.f32.mrb[75].mxu1 }
 0x300   :  { %1800 = vst [vmem:[#allocation2 + $0xd8] sm:$0xff] %v1627_v5  ;;  %v1631_v34 = vadd.f32 %v1630_v4, %v5216_v24 }
 0x301   :  { %1803 = vst [vmem:[#allocation2 + $0xf0] sm:$0xff] %v1629_v3 }
 0x302   :  { %1804 = vst [vmem:[#allocation2 + $0xf8] sm:$0xff] %v1631_v34 }
 0x304   :  { %v1634_v26 = vpop.f32.mrb[76].mxu1 }
 0x305   :  { %v1635_v56 = vadd.f32 %v1634_v26, %v5213_v52  ;;  %v1636_v63 = vpop.f32.mrb[77].mxu1 }
 0x306   :  { %v1637_v35 = vadd.f32 %v1636_v63, %v5216_v24  ;;  %v1638_v48 = vpop.f32.mrb[78].mxu1 }
 0x307   :  { %1807 = vst [vmem:[#allocation2 + $0x110] sm:$0xff] %v1635_v56  ;;  %v1639_v27 = vadd.f32 %v1638_v48, %v5213_v52  ;;  %v1640_v18 = vpop.f32.mrb[79].mxu1 }
 0x308   :  { %1808 = vst [vmem:[#allocation2 + $0x118] sm:$0xff] %v1637_v35  ;;  %v1641_v0 = vadd.f32 %v1640_v18, %v5216_v24 }
 0x309   :  { %1811 = vst [vmem:[#allocation2 + $0x130] sm:$0xff] %v1639_v27 }
 0x30a   :  { %1812 = vst [vmem:[#allocation2 + $0x138] sm:$0xff] %v1641_v0 }
 0x30c   :  { %v1644_v36 = vpop.f32.mrb[80].mxu1 }
 0x30d   :  { %v1645_v59 = vadd.f32 %v1644_v36, %v5213_v52  ;;  %v1646_v45 = vpop.f32.mrb[81].mxu1 }
 0x30e   :  { %v1647_v21 = vadd.f32 %v1646_v45, %v5216_v24  ;;  %v1648_v13 = vpop.f32.mrb[82].mxu1 }
 0x30f   :  { %1815 = vst [vmem:[#allocation2 + $0x150] sm:$0xff] %v1645_v59  ;;  %v1649_v22 = vadd.f32 %v1648_v13, %v5213_v52  ;;  %v1650_v29 = vpop.f32.mrb[83].mxu1 }
 0x310   :  { %1816 = vst [vmem:[#allocation2 + $0x158] sm:$0xff] %v1647_v21  ;;  %v1651_v38 = vadd.f32 %v1650_v29, %v5216_v24 }
 0x311   :  { %1819 = vst [vmem:[#allocation2 + $0x170] sm:$0xff] %v1649_v22 }
 0x312   :  { %1820 = vst [vmem:[#allocation2 + $0x178] sm:$0xff] %v1651_v38 }
 0x314   :  { %v1654_v55 = vpop.f32.mrb[84].mxu1 }
 0x315   :  { %v1655_v11 = vadd.f32 %v1654_v55, %v5213_v52  ;;  %v1656_v25 = vpop.f32.mrb[85].mxu1 }
 0x316   :  { %v1657_v53 = vadd.f32 %v1656_v25, %v5216_v24  ;;  %v1658_v17 = vpop.f32.mrb[86].mxu1 }
 0x317   :  { %1823 = vst [vmem:[#allocation2 + $0x190] sm:$0xff] %v1655_v11  ;;  %v1659_v5 = vadd.f32 %v1658_v17, %v5213_v52  ;;  %v1660_v33 = vpop.f32.mrb[87].mxu1 }
 0x318   :  { %1824 = vst [vmem:[#allocation2 + $0x198] sm:$0xff] %v1657_v53  ;;  %v1661_v3 = vadd.f32 %v1660_v33, %v5216_v24 }
 0x319   :  { %1827 = vst [vmem:[#allocation2 + $0x1b0] sm:$0xff] %v1659_v5 }
 0x31a   :  { %1828 = vst [vmem:[#allocation2 + $0x1b8] sm:$0xff] %v1661_v3 }
 0x31c   :  { %v1664_v4 = vpop.f32.mrb[88].mxu1 }
 0x31d   :  { %v1665_v34 = vadd.f32 %v1664_v4, %v5213_v52  ;;  %v1666_v26 = vpop.f32.mrb[89].mxu1 }
 0x31e   :  { %v1667_v56 = vadd.f32 %v1666_v26, %v5216_v24  ;;  %v1668_v63 = vpop.f32.mrb[90].mxu1 }
 0x31f   :  { %1831 = vst [vmem:[#allocation2 + $0x1d0] sm:$0xff] %v1665_v34  ;;  %v1669_v35 = vadd.f32 %v1668_v63, %v5213_v52  ;;  %v1670_v48 = vpop.f32.mrb[91].mxu1 }
 0x320   :  { %1832 = vst [vmem:[#allocation2 + $0x1d8] sm:$0xff] %v1667_v56  ;;  %v1671_v27 = vadd.f32 %v1670_v48, %v5216_v24 }
 0x321   :  { %1835 = vst [vmem:[#allocation2 + $0x1f0] sm:$0xff] %v1669_v35 }
 0x322   :  { %1836 = vst [vmem:[#allocation2 + $0x1f8] sm:$0xff] %v1671_v27 }
 0x324   :  { %v1674_v18 = vpop.f32.mrb[92].mxu1 }
 0x325   :  { %v1675_v0 = vadd.f32 %v1674_v18, %v5213_v52  ;;  %v1676_v36 = vpop.f32.mrb[93].mxu1 }
 0x326   :  { %v1677_v59 = vadd.f32 %v1676_v36, %v5216_v24  ;;  %v1678_v45 = vpop.f32.mrb[94].mxu1 }
 0x327   :  { %1839 = vst [vmem:[#allocation2 + $0x210] sm:$0xff] %v1675_v0  ;;  %v1679_v21 = vadd.f32 %v1678_v45, %v5213_v52  ;;  %v1680_v13 = vpop.f32.mrb[95].mxu1 }
 0x328   :  { %1840 = vst [vmem:[#allocation2 + $0x218] sm:$0xff] %v1677_v59  ;;  %v1681_v22 = vadd.f32 %v1680_v13, %v5216_v24 }
 0x329   :  { %1843 = vst [vmem:[#allocation2 + $0x230] sm:$0xff] %v1679_v21 }
 0x32a   :  { %1844 = vst [vmem:[#allocation2 + $0x238] sm:$0xff] %v1681_v22 }
 0x32c   :  { %v1684_v29 = vpop.f32.mrb[96].mxu1 }
 0x32d   :  { %v1685_v38 = vadd.f32 %v1684_v29, %v5213_v52  ;;  %v1686_v55 = vpop.f32.mrb[97].mxu1 }
 0x32e   :  { %v1687_v11 = vadd.f32 %v1686_v55, %v5216_v24  ;;  %v1688_v25 = vpop.f32.mrb[98].mxu1 }
 0x32f   :  { %1847 = vst [vmem:[#allocation2 + $0x250] sm:$0xff] %v1685_v38  ;;  %v1689_v53 = vadd.f32 %v1688_v25, %v5213_v52  ;;  %v1690_v17 = vpop.f32.mrb[99].mxu1 }
 0x330   :  { %1848 = vst [vmem:[#allocation2 + $0x258] sm:$0xff] %v1687_v11  ;;  %v1691_v5 = vadd.f32 %v1690_v17, %v5216_v24 }
 0x331   :  { %1851 = vst [vmem:[#allocation2 + $0x270] sm:$0xff] %v1689_v53 }
 0x332   :  { %1852 = vst [vmem:[#allocation2 + $0x278] sm:$0xff] %v1691_v5 }
 0x334   :  { %v1694_v33 = vpop.f32.mrb[100].mxu1 }
 0x335   :  { %v1695_v3 = vadd.f32 %v1694_v33, %v5213_v52  ;;  %v1696_v4 = vpop.f32.mrb[101].mxu1 }
 0x336   :  { %v1697_v34 = vadd.f32 %v1696_v4, %v5216_v24  ;;  %v1698_v26 = vpop.f32.mrb[102].mxu1 }
 0x337   :  { %1855 = vst [vmem:[#allocation2 + $0x290] sm:$0xff] %v1695_v3  ;;  %v1699_v56 = vadd.f32 %v1698_v26, %v5213_v52  ;;  %v1700_v63 = vpop.f32.mrb[103].mxu1 }
 0x338   :  { %1856 = vst [vmem:[#allocation2 + $0x298] sm:$0xff] %v1697_v34  ;;  %v1701_v35 = vadd.f32 %v1700_v63, %v5216_v24 }
 0x339   :  { %1859 = vst [vmem:[#allocation2 + $0x2b0] sm:$0xff] %v1699_v56 }
 0x33a   :  { %1860 = vst [vmem:[#allocation2 + $0x2b8] sm:$0xff] %v1701_v35 }
 0x33c   :  { %v1704_v48 = vpop.f32.mrb[104].mxu1 }
 0x33d   :  { %v1705_v27 = vadd.f32 %v1704_v48, %v5213_v52  ;;  %v1706_v18 = vpop.f32.mrb[105].mxu1 }
 0x33e   :  { %v1707_v0 = vadd.f32 %v1706_v18, %v5216_v24  ;;  %v1708_v36 = vpop.f32.mrb[106].mxu1 }
 0x33f   :  { %1863 = vst [vmem:[#allocation2 + $0x2d0] sm:$0xff] %v1705_v27  ;;  %v1709_v59 = vadd.f32 %v1708_v36, %v5213_v52  ;;  %v1710_v45 = vpop.f32.mrb[107].mxu1 }
 0x340   :  { %1864 = vst [vmem:[#allocation2 + $0x2d8] sm:$0xff] %v1707_v0  ;;  %v1711_v21 = vadd.f32 %v1710_v45, %v5216_v24 }
 0x341   :  { %1867 = vst [vmem:[#allocation2 + $0x2f0] sm:$0xff] %v1709_v59 }
 0x342   :  { %1868 = vst [vmem:[#allocation2 + $0x2f8] sm:$0xff] %v1711_v21 }
 0x344   :  { %v1714_v13 = vpop.f32.mrb[108].mxu1 }
 0x345   :  { %v1715_v22 = vadd.f32 %v1714_v13, %v5213_v52  ;;  %v1716_v29 = vpop.f32.mrb[109].mxu1 }
 0x346   :  { %v1717_v38 = vadd.f32 %v1716_v29, %v5216_v24  ;;  %v1718_v55 = vpop.f32.mrb[110].mxu1 }
 0x347   :  { %1871 = vst [vmem:[#allocation2 + $0x310] sm:$0xff] %v1715_v22  ;;  %v1719_v11 = vadd.f32 %v1718_v55, %v5213_v52  ;;  %v1720_v25 = vpop.f32.mrb[111].mxu1 }
 0x348   :  { %1872 = vst [vmem:[#allocation2 + $0x318] sm:$0xff] %v1717_v38  ;;  %v1721_v53 = vadd.f32 %v1720_v25, %v5216_v24 }
 0x349   :  { %1875 = vst [vmem:[#allocation2 + $0x330] sm:$0xff] %v1719_v11 }
 0x34a   :  { %1876 = vst [vmem:[#allocation2 + $0x338] sm:$0xff] %v1721_v53 }
 0x34c   :  { %v1724_v17 = vpop.f32.mrb[112].mxu1 }
 0x34d   :  { %v1725_v5 = vadd.f32 %v1724_v17, %v5213_v52  ;;  %v1726_v33 = vpop.f32.mrb[113].mxu1 }
 0x34e   :  { %v1727_v3 = vadd.f32 %v1726_v33, %v5216_v24  ;;  %v1728_v4 = vpop.f32.mrb[114].mxu1 }
 0x34f   :  { %1879 = vst [vmem:[#allocation2 + $0x350] sm:$0xff] %v1725_v5  ;;  %v1729_v34 = vadd.f32 %v1728_v4, %v5213_v52  ;;  %v1730_v26 = vpop.f32.mrb[115].mxu1 }
 0x350   :  { %1880 = vst [vmem:[#allocation2 + $0x358] sm:$0xff] %v1727_v3  ;;  %v1731_v56 = vadd.f32 %v1730_v26, %v5216_v24 }
 0x351   :  { %1883 = vst [vmem:[#allocation2 + $0x370] sm:$0xff] %v1729_v34 }
 0x352   :  { %1884 = vst [vmem:[#allocation2 + $0x378] sm:$0xff] %v1731_v56 }
 0x354   :  { %v1734_v63 = vpop.f32.mrb[116].mxu1 }
 0x355   :  { %v1735_v35 = vadd.f32 %v1734_v63, %v5213_v52  ;;  %v1736_v48 = vpop.f32.mrb[117].mxu1 }
 0x356   :  { %v1737_v27 = vadd.f32 %v1736_v48, %v5216_v24  ;;  %v1738_v18 = vpop.f32.mrb[118].mxu1 }
 0x357   :  { %1887 = vst [vmem:[#allocation2 + $0x390] sm:$0xff] %v1735_v35  ;;  %v1739_v0 = vadd.f32 %v1738_v18, %v5213_v52  ;;  %v1740_v36 = vpop.f32.mrb[119].mxu1 }
 0x358   :  { %1888 = vst [vmem:[#allocation2 + $0x398] sm:$0xff] %v1737_v27  ;;  %v1741_v59 = vadd.f32 %v1740_v36, %v5216_v24  ;;  %v5469_v36 = vmov 0.0  }
 0x359   :  { %1891 = vst [vmem:[#allocation2 + $0x3b0] sm:$0xff] %v1739_v0 }
 0x35a   :  { %1892 = vst [vmem:[#allocation2 + $0x3b8] sm:$0xff] %v1741_v59  ;;  %v5471_v59 = vmov 0.0  }
 0x35c   :  { %v1744_v45 = vpop.f32.mrb[120].mxu1 }
 0x35d   :  { %v1745_v21 = vadd.f32 %v1744_v45, %v5213_v52  ;;  %v1746_v13 = vpop.f32.mrb[121].mxu1  ;;  %v5473_v45 = vmov 0.0  }
 0x35e   :  { %v1747_v22 = vadd.f32 %v1746_v13, %v5216_v24  ;;  %v1748_v29 = vpop.f32.mrb[122].mxu1 }
 0x35f   :  { %1895 = vst [vmem:[#allocation2 + $0x3d0] sm:$0xff] %v1745_v21  ;;  %v1749_v38 = vadd.f32 %v1748_v29, %v5213_v52  ;;  %v1750_v55 = vpop.f32.mrb[123].mxu1 }
 0x360   :  { %1896 = vst [vmem:[#allocation2 + $0x3d8] sm:$0xff] %v1747_v22  ;;  %v1751_v11 = vadd.f32 %v1750_v55, %v5216_v24 }
 0x361   :  { %1899 = vst [vmem:[#allocation2 + $0x3f0] sm:$0xff] %v1749_v38 }
 0x362   :  { %1900 = vst [vmem:[#allocation2 + $0x3f8] sm:$0xff] %v1751_v11 }
 0x364   :  { %v1754_v25 = vpop.f32.mrb[124].mxu1 }
 0x365   :  { %v1755_v53 = vadd.f32 %v1754_v25, %v5213_v52  ;;  %v1756_v17 = vpop.f32.mrb[125].mxu1 }
 0x366   :  { %v1757_v5 = vadd.f32 %v1756_v17, %v5216_v24  ;;  %v1758_v33 = vpop.f32.mrb[126].mxu1 }
 0x367   :  { %1903 = vst [vmem:[#allocation2 + $0x410] sm:$0xff] %v1755_v53  ;;  %v1759_v3 = vadd.f32 %v1758_v33, %v5213_v52  ;;  %v1760_v4 = vpop.f32.mrb[127].mxu1 }
 0x368   :  { %1904 = vst [vmem:[#allocation2 + $0x418] sm:$0xff] %v1757_v5  ;;  %v1761_v34 = vadd.f32 %v1760_v4, %v5216_v24 }
 0x369   :  { %1907 = vst [vmem:[#allocation2 + $0x430] sm:$0xff] %v1759_v3 }
 0x36a   :  { %1908 = vst [vmem:[#allocation2 + $0x438] sm:$0xff] %v1761_v34 }
 0x36c   :  { %v1764_v26 = vpop.f32.mrb[128].mxu1 }
 0x36d   :  { %v1765_v56 = vadd.f32 %v1764_v26, %v5213_v52  ;;  %v1766_v63 = vpop.f32.mrb[129].mxu1 }
 0x36e   :  { %v1767_v35 = vadd.f32 %v1766_v63, %v5216_v24  ;;  %v1768_v48 = vpop.f32.mrb[130].mxu1 }
 0x36f   :  { %1911 = vst [vmem:[#allocation2 + $0x450] sm:$0xff] %v1765_v56  ;;  %v1769_v27 = vadd.f32 %v1768_v48, %v5213_v52  ;;  %v1770_v18 = vpop.f32.mrb[131].mxu1 }
 0x370   :  { %1912 = vst [vmem:[#allocation2 + $0x458] sm:$0xff] %v1767_v35  ;;  %v1771_v0 = vadd.f32 %v1770_v18, %v5216_v24 }
 0x371   :  { %1915 = vst [vmem:[#allocation2 + $0x470] sm:$0xff] %v1769_v27 }
 0x372   :  { %1916 = vst [vmem:[#allocation2 + $0x478] sm:$0xff] %v1771_v0 }
 0x373 LB: > { %v6115_v57 = vld [vmem:[#allocation9_spill] sm:$0xff]  ;;  %v6116_v54 = vld [vmem:[#allocation16_spill] sm:$0xff]  ;;  %v6119_v46 = vld [vmem:[#allocation11_spill] sm:$0xff]  ;;  %v5968_v29 = vmov 0   ;;  %v2041_v56 = vpack.c.bf16 %v4298_v45, %v4298_v45  ;;  %s3665_s13 = sshll.u32 %s4302_s5, 8  ;;  %vm4307_vm5 = vmmov 0   ;;  %s4302_s5 = sphi %s5475_s5, %s2011_s5   ;;  %v4298_v45 = vphi %v5473_v45, %v3046_v45   ;;  %v4294_v59 = vphi %v5471_v59, %v3044_v59   ;;  %v4290_v36 = vphi %v5469_v36, %v6145_v36  }
 0x374   : > { %v6117_v50 = vld [vmem:[#allocation12_spill] sm:$0xff]  ;;  %v6118_v49 = vld [vmem:[#allocation5_spill] sm:$0xff]  ;;  %v6122_v42 = vld [vmem:[#allocation15_spill] sm:$0xff]  ;;  %v5489_v52 = vcombine.high %v6115_v57, %v6119_v46  ;;  %v5493_v24 = vcombine.low %v6115_v57, %v6119_v46  ;;  %2234 = vmatprep.mubr.bf16.mxu1 %v5968_v29  ;;  %s5671_s16 = scalar_lea.vmem %s5932_s6, %s3665_s13  ;;  %s5693_s17 = sshll.u32 %s4302_s5, 2 }
 0x375   : > { %v6120_v44 = vld [vmem:[#allocation13_spill] sm:$0xff]  ;;  %v6121_v43 = vld [vmem:[#allocation24_spill] sm:$0xff]  ;;  %v6123_v41 = vld [vmem:[#allocation26_spill] sm:$0xff]  ;;  %s2016_s18 = ssub.s32 35, %s5693_s17  ;;  %s5697_s3 = sshll.u32 %s4302_s5, 5 }
 0x376   : > { %v6124_v40 = vld [vmem:[#allocation23_spill] sm:$0xff]  ;;  %v6126_v37 = vld [vmem:[#allocation20_spill] sm:$0xff]  ;;  %v6128_v31 = vld [vmem:[#allocation21_spill] sm:$0xff]  ;;  %v5497_v21 = vcombine.high %v6120_v44, %v6122_v42  ;;  %2202 = vmatprep.subr.bf16.mxu1 %v5489_v52  ;;  %v5503_v13 = vcombine.low %v6120_v44, %v6122_v42  ;;  %s3504_s19 = sshll.u32 %s2016_s18, 3  ;;  %s2018_s4 = sshra.s32 %s5697_s3, 3 }
 0x377   : > { %v6125_v39 = vld [vmem:[#allocation7_spill] sm:$0xff]  ;;  %v6129_v30 = vld [vmem:[#allocation6_spill] sm:$0xff]  ;;  %v6131_v23 = vld [vmem:[#allocation4_spill] sm:$0xff]  ;;  %2203 = vmatpush1.bf16.msra.mxu1 %v5493_v24  ;;  %v5519_v55 = vcombine.high %v6126_v37, %v6128_v31  ;;  %v5524_v11 = vcombine.low %v6126_v37, %v6128_v31  ;;  %s2028_s20 = sshra.s32 %s3504_s19, 3  ;;  %s3662_s21 = sshll.u32 %s2018_s4, 5 }
 0x378   : > { %v6127_v32 = vld [vmem:[#allocation19_spill] sm:$0xff]  ;;  %v6130_v28 = vld [vmem:[#allocation18_spill] sm:$0xff]  ;;  %v6132_v20 = vld [vmem:[#allocation17_spill] sm:$0xff]  ;;  %2204 = vmatprep.subr.bf16.mxu1 %v5497_v21  ;;  %v5600_v0 = vcombine.high %v6131_v23, %v6118_v49  ;;  %v5605_v45 = vcombine.low %v6131_v23, %v6118_v49  ;;  %s3663_s22 = sshll.u32 %s2028_s20, 5  ;;  %s2022_s23 = scalar_lea.vmem [#allocation2], %s3662_s21 }
 0x379   : > { %v6133_v16 = vld [vmem:[#allocation30_spill] sm:$0xff]  ;;  %v6134_v14 = vld [vmem:[#allocation29_spill] sm:$0xff]  ;;  %v6135_v9 = vld [vmem:[#allocation27_spill] sm:$0xff]  ;;  %v5508_v22 = vcombine.high %v6132_v20, %v6127_v32  ;;  %v5514_v38 = vcombine.low %v6132_v20, %v6127_v32  ;;  %v5590_v27 = vcombine.high %v6130_v28, %v5304_v62  ;;  %v5595_v18 = vcombine.low %v6130_v28, %v5304_v62  ;;  %s2032_s24 = scalar_lea.vmem [#allocation2], %s3663_s22  ;;  %s2422_s25 = ssub.s32 34, %s5693_s17 }
 0x37a   : > { %v6136_v6 = vld [vmem:[#allocation25_spill] sm:$0xff]  ;;  %v6137_v19 = vld [vmem:[#allocation10_spill] sm:$0xff]  ;;  %v6138_v15 = vld [vmem:[#allocation28_spill] sm:$0xff]  ;;  %s3667_s26 = sadd.s32 8, %s5697_s3  ;;  %s3555_s2 = sshll.u32 %s2422_s25, 3 }
 0x37b   : > { %v6139_v12 = vld [vmem:[#allocation14_spill] sm:$0xff]  ;;  %v6140_v8 = vld [vmem:[#allocation31_spill] sm:$0xff]  ;;  %v6142_v1 = vld [vmem:[#allocation8_spill] sm:$0xff]  ;;  %2205 = vmatpush1.bf16.msra.mxu1 %v5503_v13  ;;  %v5549_v33 = vcombine.high %v6123_v41, %v6138_v15  ;;  %v5554_v3 = vcombine.low %v6123_v41, %v6138_v15  ;;  %v5569_v26 = vcombine.high %v6137_v19, %v6117_v50  ;;  %v5574_v63 = vcombine.low %v6137_v19, %v6117_v50  ;;  %s2424_s27 = sshra.s32 %s3667_s26, 3  ;;  %s2434_s28 = sshra.s32 %s3555_s2, 3 }
 0x37c   : > { %v6141_v2 = vld [vmem:[#allocation22_spill] sm:$0xff]  ;;  %2206 = vmatprep.subr.bf16.mxu1 %v5508_v22  ;;  %v5539_v17 = vcombine.high %v6121_v43, %v6142_v1  ;;  %v5544_v5 = vcombine.low %v6121_v43, %v6142_v1  ;;  %v5559_v4 = vcombine.high %v5392_v60, %v6140_v8  ;;  %v5564_v34 = vcombine.low %v5392_v60, %v6140_v8  ;;  %v4180_v28 = vld [vmem:[%s5671_s16 + $0x20] sm:$0xff]   ;;  %s3668_s29 = sshll.u32 %s2424_s27, 5  ;;  %s3669_s0 = sshll.u32 %s2434_s28, 5 }
 0x37d   : > { %v5529_v25 = vcombine.high %v6141_v2, %v6124_v40  ;;  %v5534_v53 = vcombine.low %v6141_v2, %v6124_v40  ;;  %v5579_v35 = vcombine.high %v6139_v12, %v6116_v54  ;;  %v5584_v48 = vcombine.low %v6139_v12, %v6116_v54  ;;  %v4178_v20 = vld [vmem:[%s5671_s16 + $0x10] sm:$0xff]   ;;  %v4179_v23 = vld [vmem:[%s5671_s16 + $0x18] sm:$0xff]   ;;  %s2428_s1 = scalar_lea.vmem [#allocation2], %s3668_s29  ;;  %s2438_s30 = scalar_lea.vmem [#allocation2], %s3669_s0 }
 0x37e   : > { %v5615_v1 = vcombine.low %v6129_v30, %v6125_v39  ;;  %v5620_v2 = vcombine.high %v5357_v61, %v6136_v6  ;;  %v5625_v8 = vcombine.low %v5357_v61, %v6136_v6  ;;  %v5630_v12 = vcombine.high %v6135_v9, %v6134_v14  ;;  %v2025_v46 = vld [vmem:[%s2022_s23 + $0x10] sm:$0xff]  ;;  %v2036_v50 = vld [vmem:[%s2032_s24 + $0x18] sm:$0xff]  ;;  %s2667_s11 = ssub.s32 33, %s5693_s17  ;;  %s3672_s13 = sadd.s32 16, %s5697_s3 }
 0x37f   : > { %2207 = vmatpush1.bf16.msra.mxu1 %v5514_v38  ;;  %v5635_v15 = vcombine.low %v6135_v9, %v6134_v14  ;;  %v5640_v19 = vcombine.high %v6133_v16, %v5407_v58  ;;  %v5645_v6 = vcombine.low %v6133_v16, %v5407_v58  ;;  %v6143_v9 = vmov 0   ;;  %v4177_v16 = vld [vmem:[%s5671_s16 + $0x8] sm:$0xff]   ;;  %v2035_v49 = vld [vmem:[%s2032_s24 + $0x10] sm:$0xff]  ;;  %s3590_s14 = sshll.u32 %s2667_s11, 3  ;;  %s2669_s15 = sshra.s32 %s3672_s13, 3 }
 0x380   : > { %2208 = vmatprep.subr.bf16.mxu1 %v5519_v55  ;;  %v5983_v14 = vmov 0.0   ;;  %s2679_s18 = sshra.s32 %s3590_s14, 3  ;;  %s3673_s19 = sshll.u32 %s2669_s15, 5 }
 0x381   : > { %3916 = vmatprep.subr.bf16.mxu0 %v5983_v14  ;;  %3932 = vmatprep.mubr.msk.bf16.mxu0 %vm4307_vm5, %v5983_v14  ;;  %s3674_s4 = sshll.u32 %s2679_s18, 5  ;;  %s2673_s20 = scalar_lea.vmem [#allocation2], %s3673_s19 }
 0x382   : > { %s2683_s21 = scalar_lea.vmem [#allocation2], %s3674_s4  ;;  %s2912_s22 = ssub.s32 32, %s5693_s17 }
 0x383   : > { %2209 = vmatpush1.bf16.msra.mxu1 %v5524_v11  ;;  %s2011_s5 = sadd.s32 1, %s4302_s5  }
 0x384   : > { %2210 = vmatprep.subr.bf16.mxu1 %v5529_v25  ;;  %p2008_p0 = scmp.ge.s32.totalorder %s2011_s5, 9  }
 0x385   :  { %vm4309_vm6 = vmmov (%p2008_p0), 0   ;;  %v4310_v7 = vmov (%p2008_p0), 0.0   ;;  %v3657_v47 = vld [vmem:[%s5933_s7] ss:$0 sm:$0xff] (%p2008_p0)  ;;  %v3252_v62 = vld [vmem:[%s5936_s10 + $0x8] sm:$0xff] (%p2008_p0)  ;;  %vm3176_vm7 = vcmask (%p2008_p0), 261120  }
 0x386   :  { %v3251_v10 = vld [vmem:[%s5936_s10] sm:$0xff] (%p2008_p0)  ;;  %vm3335_vm8 = vcmask (%p2008_p0), 7168  }
 0x387   : > { %2211 = vmatpush1.bf16.msra.mxu1 %v5534_v53  ;;  %v4025_v60 = vpack.c.bf16 (%p2008_p0), %v3252_v62, %v3251_v10 }
 0x388   : > { %2212 = vmatprep.subr.bf16.mxu1 %v5539_v17 }
 0x38b   : > { %2213 = vmatpush1.bf16.msra.mxu1 %v5544_v5 }
 0x38c   : > { %2214 = vmatprep.subr.bf16.mxu1 %v5549_v33 }
 0x38f   : > { %2215 = vmatpush1.bf16.msra.mxu1 %v5554_v3 }
 0x390   : > { %2216 = vmatprep.subr.bf16.mxu1 %v5559_v4 }
 0x393   : > { %2217 = vmatpush1.bf16.msra.mxu1 %v5564_v34 }
 0x394   : > { %2243 = vmatprep.subr.bf16.mxu1 %v5569_v26 }
 0x396   : > { %2235 = vmatmul.mubr.bf16.vlgmr.msra.gmra.mrb[0].mxu1 %v2041_v56 }
 0x397   : > { %2244 = vmatpush1.bf16.msra.mxu1 %v5574_v63  ;;  %2275 = vmatprep.mubr.bf16.mxu1 %v5968_v29  ;;  %v5610_v29 = vcombine.high %v6129_v30, %v6125_v39  ;;  %v2033_v30 = vld [vmem:[%s2032_s24] sm:$0xff] }
 0x398   : > { %2245 = vmatprep.subr.bf16.mxu1 %v5579_v35 }
 0x39b   : > { %2246 = vmatpush1.bf16.msra.mxu1 %v5584_v48 }
 0x39c   : > { %2247 = vmatprep.subr.bf16.mxu1 %v5590_v27 }
 0x39f   : > { %2248 = vmatpush1.bf16.msra.mxu1 %v5595_v18 }
 0x3a0   : > { %2249 = vmatprep.subr.bf16.mxu1 %v5600_v0 }
 0x3a3   : > { %2250 = vmatpush1.bf16.msra.mxu1 %v5605_v45 }
 0x3a4   : > { %2251 = vmatprep.subr.bf16.mxu1 %v5610_v29 }
 0x3a7   : > { %2252 = vmatpush1.bf16.msra.mxu1 %v5615_v1 }
 0x3a8   : > { %2253 = vmatprep.subr.bf16.mxu1 %v5620_v2 }
 0x3ab   : > { %2254 = vmatpush1.bf16.msra.mxu1 %v5625_v8 }
 0x3ac   : > { %2255 = vmatprep.subr.bf16.mxu1 %v5630_v12 }
 0x3af   : > { %2256 = vmatpush1.bf16.msra.mxu1 %v5635_v15 }
 0x3b0   : > { %2257 = vmatprep.subr.bf16.mxu1 %v5640_v19 }
 0x3b3   : > { %2258 = vmatpush1.bf16.msra.mxu1 %v5645_v6 }
 0x3b4   : > { %2447 = vmatprep.subr.bf16.mxu1 %v5489_v52 }
 0x3b6   : > { %2276 = vmatmul.mubr.bf16.vlgmr.msra.gmra.mrb[4].mxu1 %v2041_v56  ;;  %v4176_v56 = vld [vmem:[%s5671_s16] sm:$0xff]  }
 0x3b7   : > { %2448 = vmatpush1.bf16.msra.mxu1 %v5493_v24  ;;  %2479 = vmatprep.mubr.bf16.mxu1 %v6143_v9 }
 0x3b8   : > { %2449 = vmatprep.subr.bf16.mxu1 %v5497_v21  ;;  %3917 = vmatpush3.bf16.msra.mxu0 %v4176_v56  ;;  %v4181_v56 = vld [vmem:[%s5671_s16 + $0x28] sm:$0xff]  }
 0x3b9   : > { %3918 = vmatprep.subr.bf16.mxu0 %v5983_v14 }
 0x3bb   : > { %2450 = vmatpush1.bf16.msra.mxu1 %v5503_v13 }
 0x3bc   : > { %2451 = vmatprep.subr.bf16.mxu1 %v5508_v22  ;;  %3919 = vmatpush3.bf16.msra.mxu0 %v4177_v16  ;;  %v4182_v16 = vld [vmem:[%s5671_s16 + $0x30] sm:$0xff]  }
 0x3bd   : > { %3920 = vmatprep.subr.bf16.mxu0 %v5983_v14 }
 0x3bf   : > { %2452 = vmatpush1.bf16.msra.mxu1 %v5514_v38 }
 0x3c0   : > { %2453 = vmatprep.subr.bf16.mxu1 %v5519_v55  ;;  %3921 = vmatpush3.bf16.msra.mxu0 %v4178_v20  ;;  %v4183_v20 = vld [vmem:[%s5671_s16 + $0x38] sm:$0xff]  }
 0x3c1   : > { %3922 = vmatprep.subr.bf16.mxu0 %v5983_v14 }
 0x3c3   : > { %2454 = vmatpush1.bf16.msra.mxu1 %v5524_v11 }
 0x3c4   : > { %2455 = vmatprep.subr.bf16.mxu1 %v5529_v25  ;;  %3923 = vmatpush3.bf16.msra.mxu0 %v4179_v23 }
 0x3c5   : > { %3924 = vmatprep.subr.bf16.mxu0 %v5983_v14 }
 0x3c7   : > { %2456 = vmatpush1.bf16.msra.mxu1 %v5534_v53 }
 0x3c8   : > { %2457 = vmatprep.subr.bf16.mxu1 %v5539_v17  ;;  %3925 = vmatpush3.bf16.msra.mxu0 %v4180_v28 }
 0x3c9   : > { %3926 = vmatprep.subr.bf16.mxu0 %v5983_v14 }
 0x3cb   : > { %2458 = vmatpush1.bf16.msra.mxu1 %v5544_v5 }
 0x3cc   : > { %2459 = vmatprep.subr.bf16.mxu1 %v5549_v33  ;;  %3927 = vmatpush3.bf16.msra.mxu0 %v4181_v56  ;;  %v2024_v56 = vld [vmem:[%s2022_s23 + $0x8] sm:$0xff] }
 0x3cd   : > { %3928 = vmatprep.subr.bf16.mxu0 %v5983_v14 }
 0x3cf   : > { %2460 = vmatpush1.bf16.msra.mxu1 %v5554_v3 }
 0x3d0   : > { %2461 = vmatprep.subr.bf16.mxu1 %v5559_v4  ;;  %3929 = vmatpush3.bf16.msra.mxu0 %v4182_v16  ;;  %v2034_v16 = vld [vmem:[%s2032_s24 + $0x8] sm:$0xff]  ;;  %s3625_s24 = sshll.u32 %s2912_s22, 3 }
 0x3d1   : > { %3930 = vmatprep.subr.bf16.mxu0 %v5983_v14  ;;  %v2023_v14 = vld [vmem:[%s2022_s23] sm:$0xff]  ;;  %v2038_v32 = vsel %vm5248_vm2, %v2024_v56, %v2034_v16  ;;  %v2039_v56 = vsel %vm5252_vm3, %v2025_v46, %v2035_v49  ;;  %s2924_s26 = sshra.s32 %s3625_s24, 3 }
 0x3d2   : > { %v2037_v37 = vsel %vm2002_vm1, %v2023_v14, %v2033_v30  ;;  %s3679_s27 = sshll.u32 %s2924_s26, 5 }
 0x3d3   : > { %2462 = vmatpush1.bf16.msra.mxu1 %v5564_v34  ;;  %s2928_s29 = scalar_lea.vmem [#allocation2], %s3679_s27 }
 0x3d4   : > { %2692 = vmatprep.subr.bf16.mxu1 %v5489_v52  ;;  %3931 = vmatpush3.bf16.msra.mxu0 %v4183_v20 }
 0x3d5   : > { %2488 = vmatprep.subr.bf16.mxu0 %v5569_v26 }
 0x469   : > { %v2236_v28 = vpop.f32.mrb[0].mxu1 }
 0x46a   : > { %v2238_v23 = vpop.f32.mrb[1].mxu1  ;;  %v2284_v40 = vadd.f32 %v2236_v28, %v2037_v37 }
 0x46b   : > { %v2240_v20 = vpop.f32.mrb[2].mxu1  ;;  %v2285_v39 = vadd.f32 %v2238_v23, %v2038_v32 }
 0x46c   : > { %v2241_v31 = vpop.f32.mrb[3].mxu1  ;;  %v3539_v42 = vmul.f32 -1.442695, %v2284_v40  ;;  %v2026_v20 = vld [vmem:[%s2022_s23 + $0x18] sm:$0xff]  ;;  %s3677_s23 = sadd.s32 24, %s5697_s3 }
 0x46d   : > { %v3540_v41 = vmul.f32 -1.442695, %v2285_v39  ;;  %v2040_v30 = vsel %vm5271_vm4, %v2026_v20, %v2036_v50  ;;  %s2914_s25 = sshra.s32 %s3677_s23, 3 }
 0x46e   : > { %s3678_s2 = sshll.u32 %s2914_s25, 5 }
 0x46f   : > { %4208 = vpow2.f32 %v3540_v41  ;;  %s2918_s28 = scalar_lea.vmem [#allocation2], %s3678_s2 }
 0x470   : > { %4210 = vpow2.f32 %v3539_v42 }
 0x479   : > { %v4209_v43 = vpop.eup %4208 }
 0x47a   : > { %v4211_v44 = vpop.eup %4210  ;;  %v2297_v54 = vadd.f32 1.0, %v4209_v43 }
 0x47b   : > { %v2291_v31 = vadd.f32 1.0, %v4211_v44 }
 0x47c   : > { %4212 = vrcp.f32 %v2297_v54 }
 0x47d   : > { %4214 = vrcp.f32 %v2291_v31 }
 0x486   : > { %v4213_v28 = vpop.eup %4212 }
 0x487   : > { %v4215_v43 = vpop.eup %4214  ;;  %v2307_v23 = vmul.f32 %v4294_v59, %v4213_v28  ;;  %v6144_v59 = vmov 0.0  }
 0x489   : > { %v2277_v32 = vpop.f32.mrb[4].mxu1 }
 0x48a   : > { %v2286_v37 = vadd.f32 %v2277_v32, %v2039_v56  ;;  %v2279_v40 = vpop.f32.mrb[5].mxu1  ;;  %v4185_v32 = vld [vmem:[%s5671_s16 + $0x48] sm:$0xff]  }
 0x48b   : > { %v2287_v42 = vadd.f32 %v2279_v40, %v2040_v30  ;;  %v2281_v39 = vpop.f32.mrb[6].mxu1  ;;  %v4184_v30 = vld [vmem:[%s5671_s16 + $0x40] sm:$0xff]   ;;  %v4187_v40 = vld [vmem:[%s5671_s16 + $0x58] sm:$0xff]  }
 0x48c   : > { %4216 = vtanh.f32 %v2286_v37  ;;  %v2282_v41 = vpop.f32.mrb[7].mxu1  ;;  %v4186_v37 = vld [vmem:[%s5671_s16 + $0x50] sm:$0xff]   ;;  %v4189_v39 = vld [vmem:[%s5671_s16 + $0x68] sm:$0xff]  }
 0x48d   : > { %v3541_v14 = vmul.f32 -1.442695, %v2287_v42  ;;  %v4188_v42 = vld [vmem:[%s5671_s16 + $0x60] sm:$0xff]   ;;  %v4190_v41 = vld [vmem:[%s5671_s16 + $0x70] sm:$0xff]  }
 0x48f   : > { %4218 = vpow2.f32 %v3541_v14  ;;  %v4191_v14 = vld [vmem:[%s5671_s16 + $0x78] sm:$0xff]  }
 0x496   : > { %v4217_v44 = vpop.eup %4216 }
 0x497   : > { %v2308_v46 = vmul.f32 %v4217_v44, %v4215_v43  ;;  %v2430_v44 = vld [vmem:[%s2428_s1 + $0x8] sm:$0xff] }
 0x499   : > { %v4219_v49 = vpop.eup %4218  ;;  %v5709_v16 = vadd.f32 %v2308_v46, %v2307_v23  ;;  %v2440_v23 = vld [vmem:[%s2438_s30 + $0x8] sm:$0xff] }
 0x49a   : > { %v2304_v50 = vadd.f32 1.0, %v4219_v49  ;;  %v2429_v49 = vld [vmem:[%s2428_s1] sm:$0xff] }
 0x49b   : > { %4220 = vtanh.f32 %v5709_v16 }
 0x49c   : > { %4222 = vrcp.f32 %v2304_v50  ;;  %v2439_v50 = vld [vmem:[%s2438_s30] sm:$0xff] }
 0x4a5   : > { %v4221_v54 = vpop.eup %4220 }
 0x4a6   : > { %v4223_v20 = vpop.eup %4222 }
 0x4a7   : > { %v2311_v31 = vmul.f32 %v4223_v20, %v4221_v54  ;;  %v2444_v20 = vsel %vm5248_vm2, %v2430_v44, %v2440_v23 }
 0x4a9   : > { %v2312_v56 = vpack.c.bf16 %v2311_v31, %v2311_v31  ;;  %v2443_v31 = vsel %vm2002_vm1, %v2429_v49, %v2439_v50 }
 0x4ab   : > { %3933 = vmatmul.mubr.bf16.vlgmr.msra.gmra.mrb[0].mxu0 %v2312_v56  ;;  %2480 = vmatmul.mubr.bf16.vlgmr.msra.gmra.mrb[8].mxu1 %v2312_v56 }
 0x4ac   : > { %2489 = vmatpush1.bf16.msra.mxu0 %v5574_v63  ;;  %2520 = vmatprep.mubr.bf16.mxu0 %v6143_v9 }
 0x4ad   : > { %2490 = vmatprep.subr.bf16.mxu0 %v5579_v35  ;;  %2693 = vmatpush1.bf16.msra.mxu1 %v5493_v24 }
 0x4ae   : > { %2694 = vmatprep.subr.bf16.mxu1 %v5497_v21  ;;  %2724 = vmatprep.mubr.bf16.mxu1 %v6143_v9 }
 0x4b0   : > { %2491 = vmatpush1.bf16.msra.mxu0 %v5584_v48 }
 0x4b1   : > { %2492 = vmatprep.subr.bf16.mxu0 %v5590_v27  ;;  %2695 = vmatpush1.bf16.msra.mxu1 %v5503_v13 }
 0x4b2   : > { %2696 = vmatprep.subr.bf16.mxu1 %v5508_v22 }
 0x4b4   : > { %2493 = vmatpush1.bf16.msra.mxu0 %v5595_v18 }
 0x4b5   : > { %2494 = vmatprep.subr.bf16.mxu0 %v5600_v0  ;;  %2697 = vmatpush1.bf16.msra.mxu1 %v5514_v38 }
 0x4b6   : > { %2698 = vmatprep.subr.bf16.mxu1 %v5519_v55 }
 0x4b8   : > { %2495 = vmatpush1.bf16.msra.mxu0 %v5605_v45 }
 0x4b9   : > { %2496 = vmatprep.subr.bf16.mxu0 %v5610_v29  ;;  %2699 = vmatpush1.bf16.msra.mxu1 %v5524_v11 }
 0x4ba   : > { %2700 = vmatprep.subr.bf16.mxu1 %v5529_v25 }
 0x4bc   : > { %2497 = vmatpush1.bf16.msra.mxu0 %v5615_v1 }
 0x4bd   : > { %2498 = vmatprep.subr.bf16.mxu0 %v5620_v2  ;;  %2701 = vmatpush1.bf16.msra.mxu1 %v5534_v53 }
 0x4be   : > { %2702 = vmatprep.subr.bf16.mxu1 %v5539_v17 }
 0x4c0   : > { %2499 = vmatpush1.bf16.msra.mxu0 %v5625_v8 }
 0x4c1   : > { %2500 = vmatprep.subr.bf16.mxu0 %v5630_v12  ;;  %2703 = vmatpush1.bf16.msra.mxu1 %v5544_v5 }
 0x4c2   : > { %2704 = vmatprep.subr.bf16.mxu1 %v5549_v33 }
 0x4c4   : > { %2501 = vmatpush1.bf16.msra.mxu0 %v5635_v15 }
 0x4c5   : > { %2502 = vmatprep.subr.bf16.mxu0 %v5640_v19  ;;  %2705 = vmatpush1.bf16.msra.mxu1 %v5554_v3 }
 0x4c6   : > { %2706 = vmatprep.subr.bf16.mxu1 %v5559_v4 }
 0x4c8   : > { %2503 = vmatpush1.bf16.msra.mxu0 %v5645_v6 }
 0x4c9   : > { %3936 = vmatprep.subr.bf16.mxu0 %v6144_v59  ;;  %2707 = vmatpush1.bf16.msra.mxu1 %v5564_v34 }
 0x4ca   : > { %2733 = vmatprep.subr.bf16.mxu1 %v5569_v26 }
 0x4cb   : > { %2521 = vmatmul.mubr.bf16.vlgmr.msra.gmra.mrb[4].mxu0 %v2312_v56 }
 0x4cc   : > { %3952 = vmatprep.mubr.msk.bf16.mxu0 %vm4307_vm5, %v6144_v59  ;;  %3937 = vmatpush3.bf16.msra.mxu0 %v4184_v30 }
 0x4cd   : > { %3938 = vmatprep.subr.bf16.mxu0 %v6144_v59 }
 0x4d0   : > { %3939 = vmatpush3.bf16.msra.mxu0 %v4185_v32 }
 0x4d1   : > { %3940 = vmatprep.subr.bf16.mxu0 %v6144_v59 }
 0x4d4   : > { %3941 = vmatpush3.bf16.msra.mxu0 %v4186_v37 }
 0x4d5   : > { %3942 = vmatprep.subr.bf16.mxu0 %v6144_v59 }
 0x4d8   : > { %3943 = vmatpush3.bf16.msra.mxu0 %v4187_v40 }
 0x4d9   : > { %3944 = vmatprep.subr.bf16.mxu0 %v6144_v59 }
 0x4dc   : > { %3945 = vmatpush3.bf16.msra.mxu0 %v4188_v42 }
 0x4dd   : > { %3946 = vmatprep.subr.bf16.mxu0 %v6144_v59 }
 0x4e0   : > { %3947 = vmatpush3.bf16.msra.mxu0 %v4189_v39  ;;  %v2431_v39 = vld [vmem:[%s2428_s1 + $0x10] sm:$0xff] }
 0x4e1   : > { %3948 = vmatprep.subr.bf16.mxu0 %v6144_v59 }
 0x4e4   : > { %3949 = vmatpush3.bf16.msra.mxu0 %v4190_v41  ;;  %v2441_v41 = vld [vmem:[%s2438_s30 + $0x10] sm:$0xff] }
 0x4e5   : > { %3950 = vmatprep.subr.bf16.mxu0 %v6144_v59  ;;  %v2445_v44 = vsel %vm5252_vm3, %v2431_v39, %v2441_v41 }
 0x4e8   : > { %3951 = vmatpush3.bf16.msra.mxu0 %v4191_v14  ;;  %v2432_v14 = vld [vmem:[%s2428_s1 + $0x18] sm:$0xff] }
 0x4e9   : > { %3956 = vmatprep.subr.bf16.mxu0 %v6144_v59 }
 0x57e   : > { %v2481_v28 = vpop.f32.mrb[8].mxu1 }
 0x57f   : > { %v2483_v43 = vpop.f32.mrb[9].mxu1  ;;  %v2529_v30 = vadd.f32 %v2481_v28, %v2443_v31 }
 0x580   : > { %v2485_v46 = vpop.f32.mrb[10].mxu1  ;;  %v2530_v56 = vadd.f32 %v2483_v43, %v2444_v20 }
 0x581   : > { %v2486_v54 = vpop.f32.mrb[11].mxu1  ;;  %v3558_v37 = vmul.f32 -1.442695, %v2529_v30  ;;  %v2442_v46 = vld [vmem:[%s2438_s30 + $0x18] sm:$0xff] }
 0x582   : > { %v3559_v32 = vmul.f32 -1.442695, %v2530_v56  ;;  %v2446_v23 = vsel %vm5271_vm4, %v2432_v14, %v2442_v46 }
 0x584   : > { %4224 = vpow2.f32 %v3559_v32 }
 0x585   : > { %4226 = vpow2.f32 %v3558_v37 }
 0x58e   : > { %v4225_v40 = vpop.eup %4224 }
 0x58f   : > { %v4227_v42 = vpop.eup %4226  ;;  %v2542_v57 = vadd.f32 1.0, %v4225_v40 }
 0x590   : > { %v2536_v54 = vadd.f32 1.0, %v4227_v42 }
 0x591   : > { %4228 = vrcp.f32 %v2542_v57 }
 0x592   : > { %4230 = vrcp.f32 %v2536_v54 }
 0x59b   : > { %v4229_v30 = vpop.eup %4228 }
 0x59c   : > { %v4231_v32 = vpop.eup %4230  ;;  %v2552_v40 = vmul.f32 %v4229_v30, %v5709_v16  ;;  %v2677_v30 = vld [vmem:[%s2673_s20 + $0x18] sm:$0xff] }
 0x59e   : > { %v2522_v43 = vpop.f32.mrb[4].mxu0 }
 0x59f   : > { %v2531_v28 = vadd.f32 %v2522_v43, %v2445_v44  ;;  %v2524_v49 = vpop.f32.mrb[5].mxu0 }
 0x5a0   : > { %v2532_v50 = vadd.f32 %v2524_v49, %v2446_v23  ;;  %v2526_v20 = vpop.f32.mrb[6].mxu0 }
 0x5a1   : > { %4232 = vtanh.f32 %v2531_v28  ;;  %v2527_v31 = vpop.f32.mrb[7].mxu0 }
 0x5a2   : > { %v3560_v56 = vmul.f32 -1.442695, %v2532_v50  ;;  %v2676_v31 = vld [vmem:[%s2673_s20 + $0x10] sm:$0xff] }
 0x5a4   : > { %4234 = vpow2.f32 %v3560_v56  ;;  %v2686_v56 = vld [vmem:[%s2683_s21 + $0x10] sm:$0xff] }
 0x5ab   : > { %v4233_v37 = vpop.eup %4232 }
 0x5ac   : > { %v2553_v42 = vmul.f32 %v4233_v37, %v4231_v32  ;;  %v2687_v32 = vld [vmem:[%s2683_s21 + $0x18] sm:$0xff] }
 0x5ae   : > { %v4235_v39 = vpop.eup %4234  ;;  %v5775_v41 = vadd.f32 %v2553_v42, %v2552_v40  ;;  %v2690_v42 = vsel %vm5252_vm3, %v2676_v31, %v2686_v56 }
 0x5af   : > { %v2549_v14 = vadd.f32 1.0, %v4235_v39  ;;  %v2691_v39 = vsel %vm5271_vm4, %v2677_v30, %v2687_v32 }
 0x5b0   : > { %4236 = vtanh.f32 %v5775_v41 }
 0x5b1   : > { %4238 = vrcp.f32 %v2549_v14 }
 0x5ba   : > { %v4237_v57 = vpop.eup %4236 }
 0x5bb   : > { %v4239_v46 = vpop.eup %4238 }
 0x5bc   : > { %v2556_v54 = vmul.f32 %v4239_v46, %v4237_v57 }
 0x5be   : > { %v2557_v44 = vpack.c.bf16 %v2556_v54, %v2556_v54 }
 0x5c0   : > { %3953 = vmatmul.mubr.bf16.vlgmr.msra.gmra.mrb[0].mxu0 %v2557_v44  ;;  %2725 = vmatmul.mubr.bf16.vlgmr.msra.gmra.mrb[12].mxu1 %v2557_v44 }
 0x5c1   : > { %2734 = vmatpush1.bf16.msra.mxu1 %v5574_v63  ;;  %2765 = vmatprep.mubr.bf16.mxu1 %v6143_v9 }
 0x5c2   : > { %2735 = vmatprep.subr.bf16.mxu1 %v5579_v35  ;;  %3972 = vmatprep.mubr.msk.bf16.mxu0 %vm4307_vm5, %v6144_v59 }
 0x5c5   : > { %2736 = vmatpush1.bf16.msra.mxu1 %v5584_v48 }
 0x5c6   : > { %2737 = vmatprep.subr.bf16.mxu1 %v5590_v27 }
 0x5c9   : > { %2738 = vmatpush1.bf16.msra.mxu1 %v5595_v18 }
 0x5ca   : > { %2739 = vmatprep.subr.bf16.mxu1 %v5600_v0 }
 0x5cd   : > { %2740 = vmatpush1.bf16.msra.mxu1 %v5605_v45 }
 0x5ce   : > { %2741 = vmatprep.subr.bf16.mxu1 %v5610_v29 }
 0x5d1   : > { %2742 = vmatpush1.bf16.msra.mxu1 %v5615_v1 }
 0x5d2   : > { %2743 = vmatprep.subr.bf16.mxu1 %v5620_v2 }
 0x5d5   : > { %2744 = vmatpush1.bf16.msra.mxu1 %v5625_v8 }
 0x5d6   : > { %2745 = vmatprep.subr.bf16.mxu1 %v5630_v12 }
 0x5d9   : > { %2746 = vmatpush1.bf16.msra.mxu1 %v5635_v15 }
 0x5da   : > { %2747 = vmatprep.subr.bf16.mxu1 %v5640_v19 }
 0x5dd   : > { %2748 = vmatpush1.bf16.msra.mxu1 %v5645_v6 }
 0x5de   : > { %2937 = vmatprep.subr.bf16.mxu1 %v5489_v52  ;;  %v4192_v52 = vld [vmem:[%s5671_s16 + $0x80] sm:$0xff]  }
 0x5df   : > { %3957 = vmatpush3.bf16.msra.mxu0 %v4192_v52 }
 0x5e0   : > { %2766 = vmatmul.mubr.bf16.vlgmr.msra.gmra.mrb[16].mxu1 %v2557_v44  ;;  %3958 = vmatprep.subr.bf16.mxu0 %v6144_v59 }
 0x5e1   : > { %2938 = vmatpush1.bf16.msra.mxu1 %v5493_v24  ;;  %2969 = vmatprep.mubr.bf16.mxu1 %v6143_v9  ;;  %v4193_v24 = vld [vmem:[%s5671_s16 + $0x88] sm:$0xff]  }
 0x5e2   : > { %2939 = vmatprep.subr.bf16.mxu1 %v5497_v21  ;;  %v4194_v21 = vld [vmem:[%s5671_s16 + $0x90] sm:$0xff]  }
 0x5e3   : > { %3959 = vmatpush3.bf16.msra.mxu0 %v4193_v24 }
 0x5e4   : > { %3960 = vmatprep.subr.bf16.mxu0 %v6144_v59 }
 0x5e5   : > { %2940 = vmatpush1.bf16.msra.mxu1 %v5503_v13  ;;  %v4195_v13 = vld [vmem:[%s5671_s16 + $0x98] sm:$0xff]  }
 0x5e6   : > { %2941 = vmatprep.subr.bf16.mxu1 %v5508_v22  ;;  %v4196_v22 = vld [vmem:[%s5671_s16 + $0xa0] sm:$0xff]  }
 0x5e7   : > { %3961 = vmatpush3.bf16.msra.mxu0 %v4194_v21 }
 0x5e8   : > { %3962 = vmatprep.subr.bf16.mxu0 %v6144_v59 }
 0x5e9   : > { %2942 = vmatpush1.bf16.msra.mxu1 %v5514_v38  ;;  %v4197_v38 = vld [vmem:[%s5671_s16 + $0xa8] sm:$0xff]  }
 0x5ea   : > { %2943 = vmatprep.subr.bf16.mxu1 %v5519_v55  ;;  %v4198_v55 = vld [vmem:[%s5671_s16 + $0xb0] sm:$0xff]  }
 0x5eb   : > { %3963 = vmatpush3.bf16.msra.mxu0 %v4195_v13 }
 0x5ec   : > { %3964 = vmatprep.subr.bf16.mxu0 %v6144_v59 }
 0x5ed   : > { %2944 = vmatpush1.bf16.msra.mxu1 %v5524_v11  ;;  %v4199_v11 = vld [vmem:[%s5671_s16 + $0xb8] sm:$0xff]  }
 0x5ee   : > { %2945 = vmatprep.subr.bf16.mxu1 %v5529_v25 }
 0x5ef   : > { %3965 = vmatpush3.bf16.msra.mxu0 %v4196_v22 }
 0x5f0   : > { %3966 = vmatprep.subr.bf16.mxu0 %v6144_v59 }
 0x5f1   : > { %2946 = vmatpush1.bf16.msra.mxu1 %v5534_v53 }
 0x5f2   : > { %2947 = vmatprep.subr.bf16.mxu1 %v5539_v17  ;;  %v2675_v17 = vld [vmem:[%s2673_s20 + $0x8] sm:$0xff] }
 0x5f3   : > { %3967 = vmatpush3.bf16.msra.mxu0 %v4197_v38 }
 0x5f4   : > { %3968 = vmatprep.subr.bf16.mxu0 %v6144_v59 }
 0x5f5   : > { %2948 = vmatpush1.bf16.msra.mxu1 %v5544_v5  ;;  %v2685_v5 = vld [vmem:[%s2683_s21 + $0x8] sm:$0xff] }
 0x5f6   : > { %2949 = vmatprep.subr.bf16.mxu1 %v5549_v33 }
 0x5f7   : > { %3969 = vmatpush3.bf16.msra.mxu0 %v4198_v55 }
 0x5f8   : > { %3970 = vmatprep.subr.bf16.mxu0 %v6144_v59 }
 0x5f9   : > { %2950 = vmatpush1.bf16.msra.mxu1 %v5554_v3  ;;  %v2674_v3 = vld [vmem:[%s2673_s20] sm:$0xff] }
 0x5fa   : > { %2951 = vmatprep.subr.bf16.mxu1 %v5559_v4  ;;  %v2684_v4 = vld [vmem:[%s2683_s21] sm:$0xff] }
 0x5fb   : > { %3971 = vmatpush3.bf16.msra.mxu0 %v4199_v11  ;;  %v2688_v16 = vsel %vm2002_vm1, %v2674_v3, %v2684_v4 }
 0x5fc   : > { %2978 = vmatprep.subr.bf16.mxu0 %v5569_v26  ;;  %v2689_v26 = vsel %vm5248_vm2, %v2675_v17, %v2685_v5 }
 0x5fd   : > { %2952 = vmatpush1.bf16.msra.mxu1 %v5564_v34 }
 0x693   : > { %v2726_v25 = vpop.f32.mrb[12].mxu1 }
 0x694   : > { %v2728_v53 = vpop.f32.mrb[13].mxu1  ;;  %v2774_v43 = vadd.f32 %v2726_v25, %v2688_v16 }
 0x695   : > { %v2730_v33 = vpop.f32.mrb[14].mxu1  ;;  %v2775_v23 = vadd.f32 %v2728_v53, %v2689_v26 }
 0x696   : > { %v2731_v34 = vpop.f32.mrb[15].mxu1  ;;  %v3593_v49 = vmul.f32 -1.442695, %v2774_v43 }
 0x697   : > { %v3594_v28 = vmul.f32 -1.442695, %v2775_v23 }
 0x699   : > { %4240 = vpow2.f32 %v3594_v28  ;;  %v2921_v28 = vld [vmem:[%s2918_s28 + $0x10] sm:$0xff] }
 0x69a   : > { %4242 = vpow2.f32 %v3593_v49  ;;  %v2931_v49 = vld [vmem:[%s2928_s29 + $0x10] sm:$0xff] }
 0x69b   : > { %v2935_v30 = vsel %vm5252_vm3, %v2921_v28, %v2931_v49 }
 0x6a3   : > { %v4241_v50 = vpop.eup %4240 }
 0x6a4   : > { %v4243_v20 = vpop.eup %4242  ;;  %v2787_v37 = vadd.f32 1.0, %v4241_v50  ;;  %v2922_v50 = vld [vmem:[%s2918_s28 + $0x18] sm:$0xff] }
 0x6a5   : > { %v2781_v40 = vadd.f32 1.0, %v4243_v20  ;;  %v2932_v20 = vld [vmem:[%s2928_s29 + $0x18] sm:$0xff] }
 0x6a6   : > { %4244 = vrcp.f32 %v2787_v37  ;;  %v2936_v32 = vsel %vm5271_vm4, %v2922_v50, %v2932_v20 }
 0x6a7   : > { %4246 = vrcp.f32 %v2781_v40 }
 0x6b0   : > { %v4245_v21 = vpop.eup %4244 }
 0x6b1   : > { %v4247_v13 = vpop.eup %4246  ;;  %v2797_v38 = vmul.f32 %v4245_v21, %v5775_v41 }
 0x6b3   : > { %v2767_v14 = vpop.f32.mrb[16].mxu1 }
 0x6b4   : > { %v2776_v57 = vadd.f32 %v2767_v14, %v2690_v42  ;;  %v2769_v46 = vpop.f32.mrb[17].mxu1 }
 0x6b5   : > { %v2777_v54 = vadd.f32 %v2769_v46, %v2691_v39  ;;  %v2771_v44 = vpop.f32.mrb[18].mxu1 }
 0x6b6   : > { %4248 = vtanh.f32 %v2776_v57  ;;  %v2772_v52 = vpop.f32.mrb[19].mxu1 }
 0x6b7   : > { %v3595_v24 = vmul.f32 -1.442695, %v2777_v54 }
 0x6b9   : > { %4250 = vpow2.f32 %v3595_v24 }
 0x6c0   : > { %v4249_v22 = vpop.eup %4248 }
 0x6c1   : > { %v2798_v55 = vmul.f32 %v4249_v22, %v4247_v13 }
 0x6c3   : > { %v4251_v11 = vpop.eup %4250  ;;  %v5840_v25 = vadd.f32 %v2798_v55, %v2797_v38 }
 0x6c4   : > { %v2794_v53 = vadd.f32 1.0, %v4251_v11 }
 0x6c5   : > { %4252 = vtanh.f32 %v5840_v25 }
 0x6c6   : > { %4254 = vrcp.f32 %v2794_v53 }
 0x6cf   : > { %v4253_v17 = vpop.eup %4252 }
 0x6d0   : > { %v4255_v5 = vpop.eup %4254 }
 0x6d1   : > { %v2801_v33 = vmul.f32 %v4255_v5, %v4253_v17 }
 0x6d3   : > { %v2802_v3 = vpack.c.bf16 %v2801_v33, %v2801_v33 }
 0x6d5   : > { %3973 = vmatmul.mubr.bf16.vlgmr.msra.gmra.mrb[0].mxu0 %v2802_v3  ;;  %2970 = vmatmul.mubr.bf16.vlgmr.msra.gmra.mrb[20].mxu1 %v2802_v3 }
 0x6d6   : > { %2979 = vmatpush1.bf16.msra.mxu0 %v5574_v63  ;;  %3010 = vmatprep.mubr.bf16.mxu0 %v6143_v9  ;;  %v4205_v9 = vld [vmem:[%s5671_s16 + $0xe8] sm:$0xff]  }
 0x6d7   : > { %2980 = vmatprep.subr.bf16.mxu0 %v5579_v35  ;;  %v2920_v35 = vld [vmem:[%s2918_s28 + $0x8] sm:$0xff]  ;;  %4015 = vmatprep.mubr.msk.f32.mxu1 (%p2008_p0), %vm4309_vm6, %v4310_v7 }
 0x6da   : > { %2981 = vmatpush1.bf16.msra.mxu0 %v5584_v48  ;;  %v2930_v48 = vld [vmem:[%s2928_s29 + $0x8] sm:$0xff] }
 0x6db   : > { %2982 = vmatprep.subr.bf16.mxu0 %v5590_v27 }
 0x6de   : > { %2983 = vmatpush1.bf16.msra.mxu0 %v5595_v18  ;;  %v2919_v18 = vld [vmem:[%s2918_s28] sm:$0xff] }
 0x6df   : > { %2984 = vmatprep.subr.bf16.mxu0 %v5600_v0  ;;  %v2929_v0 = vld [vmem:[%s2928_s29] sm:$0xff] }
 0x6e0   : > { %v2933_v41 = vsel %vm2002_vm1, %v2919_v18, %v2929_v0 }
 0x6e2   : > { %2985 = vmatpush1.bf16.msra.mxu0 %v5605_v45 }
 0x6e3   : > { %2986 = vmatprep.subr.bf16.mxu0 %v5610_v29 }
 0x6e6   : > { %2987 = vmatpush1.bf16.msra.mxu0 %v5615_v1  ;;  %v4203_v1 = vld [vmem:[%s5671_s16 + $0xd8] sm:$0xff]  }
 0x6e7   : > { %2988 = vmatprep.subr.bf16.mxu0 %v5620_v2  ;;  %v4200_v2 = vld [vmem:[%s5671_s16 + $0xc0] sm:$0xff]  }
 0x6ea   : > { %2989 = vmatpush1.bf16.msra.mxu0 %v5625_v8  ;;  %v4207_v8 = vld [vmem:[%s5671_s16 + $0xf8] sm:$0xff]  }
 0x6eb   : > { %2990 = vmatprep.subr.bf16.mxu0 %v5630_v12  ;;  %v4201_v12 = vld [vmem:[%s5671_s16 + $0xc8] sm:$0xff]  }
 0x6ee   : > { %2991 = vmatpush1.bf16.msra.mxu0 %v5635_v15  ;;  %v4206_v15 = vld [vmem:[%s5671_s16 + $0xf0] sm:$0xff]  }
 0x6ef   : > { %2992 = vmatprep.subr.bf16.mxu0 %v5640_v19  ;;  %v4202_v19 = vld [vmem:[%s5671_s16 + $0xd0] sm:$0xff]  }
 0x6f2   : > { %2993 = vmatpush1.bf16.msra.mxu0 %v5645_v6  ;;  %v4204_v6 = vld [vmem:[%s5671_s16 + $0xe0] sm:$0xff]  }
 0x6f3   : > { %3976 = vmatprep.subr.bf16.mxu0 %v6144_v59 }
 0x6f5   : > { %3011 = vmatmul.mubr.bf16.vlgmr.msra.gmra.mrb[8].mxu0 %v2802_v3 }
 0x6f6   : > { %3992 = vmatprep.mubr.msk.bf16.mxu0 %vm4307_vm5, %v6144_v59  ;;  %3977 = vmatpush3.bf16.msra.mxu0 %v4200_v2  ;;  %v3166_v2 = vld [vmem:[%s5934_s8 + $0x8] sm:$0xff] (%p2008_p0) }
 0x6f7   : > { %3978 = vmatprep.subr.bf16.mxu0 %v6144_v59 }
 0x6fa   : > { %3979 = vmatpush3.bf16.msra.mxu0 %v4201_v12  ;;  %v3167_v12 = vld [vmem:[%s5934_s8 + $0x10] sm:$0xff] (%p2008_p0) }
 0x6fb   : > { %3980 = vmatprep.subr.bf16.mxu0 %v6144_v59 }
 0x6fe   : > { %3981 = vmatpush3.bf16.msra.mxu0 %v4202_v19  ;;  %v4308_v19 = vmov (%p2008_p0), 0.0|0.0  }
 0x6ff   : > { %3982 = vmatprep.subr.bf16.mxu0 %v6144_v59  ;;  %4024 = vmatprep.subr.bf16.mxu1 (%p2008_p0), %v4308_v19 }
 0x700   :  { %4026 = vmatpush3.bf16.msra.mxu1 (%p2008_p0), %v4025_v60 }
 0x701   :  { %4027 = vmatprep.subr.bf16.mxu1 (%p2008_p0), %v4308_v19 }
 0x702   : > { %3983 = vmatpush3.bf16.msra.mxu0 %v4203_v1 }
 0x703   : > { %3984 = vmatprep.subr.bf16.mxu0 %v6144_v59 }
 0x706   : > { %3985 = vmatpush3.bf16.msra.mxu0 %v4204_v6  ;;  %v3168_v6 = vld [vmem:[%s5934_s8 + $0x18] sm:$0xff] (%p2008_p0) }
 0x707   : > { %3986 = vmatprep.subr.bf16.mxu0 %v6144_v59  ;;  %v4022_v61 = vpack.c.bf16 (%p2008_p0), %v3168_v6, %v3167_v12 }
 0x70a   : > { %3987 = vmatpush3.bf16.msra.mxu0 %v4205_v9  ;;  %v3254_v9 = vld [vmem:[%s5936_s10 + $0x18] sm:$0xff] (%p2008_p0) }
 0x70b   : > { %3988 = vmatprep.subr.bf16.mxu0 %v6144_v59 }
 0x70e   : > { %3989 = vmatpush3.bf16.msra.mxu0 %v4206_v15 }
 0x70f   : > { %3990 = vmatprep.subr.bf16.mxu0 %v6144_v59  ;;  %v2934_v59 = vsel %vm5248_vm2, %v2920_v35, %v2930_v48 }
 0x712   : > { %3991 = vmatpush3.bf16.msra.mxu0 %v4207_v8  ;;  %v3658_v8 = vld [vmem:[%s5935_s9] ss:$0 sm:$0xff] (%p2008_p0) }
 0x713   :  { %4018 = vmatprep.subr.bf16.mxu0 (%p2008_p0), %v4308_v19 }
 0x7a8   : > { %v2971_v29 = vpop.f32.mrb[20].mxu1 }
 0x7a9   : > { %v2973_v63 = vpop.f32.mrb[21].mxu1  ;;  %v3019_v34 = vadd.f32 %v2971_v29, %v2933_v41 }
 0x7aa   : > { %v2975_v27 = vpop.f32.mrb[22].mxu1  ;;  %v3020_v4 = vadd.f32 %v2973_v63, %v2934_v59 }
 0x7ab   : > { %v2976_v45 = vpop.f32.mrb[23].mxu1  ;;  %v3628_v16 = vmul.f32 -1.442695, %v3019_v34  ;;  %v3660_v27 = vld [vmem:[#allocation3] ss:$0 sm:$0xff] (%p2008_p0) }
 0x7ac   : > { %v3629_v26 = vmul.f32 -1.442695, %v3020_v4 }
 0x7ae   : > { %4256 = vpow2.f32 %v3629_v26 }
 0x7af   : > { %4258 = vpow2.f32 %v3628_v16 }
 0x7b8   : > { %v4257_v23 = vpop.eup %4256 }
 0x7b9   : > { %v4259_v43 = vpop.eup %4258  ;;  %v3032_v31 = vadd.f32 1.0, %v4257_v23 }
 0x7ba   : > { %v3026_v56 = vadd.f32 1.0, %v4259_v43 }
 0x7bb   : > { %4260 = vrcp.f32 %v3032_v31 }
 0x7bc   : > { %4262 = vrcp.f32 %v3026_v56 }
 0x7c5   : > { %v4261_v54 = vpop.eup %4260 }
 0x7c6   : > { %v4263_v44 = vpop.eup %4262  ;;  %v3042_v24 = vmul.f32 %v4261_v54, %v5840_v25  ;;  %v3165_v25 = vld [vmem:[%s5934_s8] sm:$0xff] (%p2008_p0) }
 0x7c7   :  { %v4019_v1 = vpack.c.bf16 (%p2008_p0), %v3166_v2, %v3165_v25 }
 0x7c8   : > { %v3012_v37 = vpop.f32.mrb[8].mxu0 }
 0x7c9   : > { %v3021_v40 = vadd.f32 %v3012_v37, %v2935_v30  ;;  %v3014_v42 = vpop.f32.mrb[9].mxu0 }
 0x7ca   : > { %v3022_v39 = vadd.f32 %v3014_v42, %v2936_v32  ;;  %v3016_v14 = vpop.f32.mrb[10].mxu0 }
 0x7cb   : > { %4264 = vtanh.f32 %v3021_v40  ;;  %v3017_v57 = vpop.f32.mrb[11].mxu0 }
 0x7cc   : > { %v3630_v46 = vmul.f32 -1.442695, %v3022_v39 }
 0x7ce   : > { %4266 = vpow2.f32 %v3630_v46 }
 0x7d5   : > { %v4265_v52 = vpop.eup %4264 }
 0x7d6   : > { %v3043_v21 = vmul.f32 %v4265_v52, %v4263_v44 }
 0x7d8   : > { %v4267_v13 = vpop.eup %4266  ;;  %v3044_v59 = vadd.f32 %v3043_v21, %v3042_v24  }
 0x7d9   : > { %v3039_v22 = vadd.f32 1.0, %v4267_v13 }
 0x7da   : > { %4268 = vtanh.f32 %v3044_v59 }
 0x7db   : > { %4270 = vrcp.f32 %v3039_v22 }
 0x7e4   : > { %v4269_v38 = vpop.eup %4268 }
 0x7e5   : > { %v4271_v55 = vpop.eup %4270 }
 0x7e6   : > { %v3046_v45 = vmul.f32 %v4271_v55, %v4269_v38  }
 0x7e8   : > { %v3047_v11 = vpack.c.bf16 %v3046_v45, %v3046_v45 }
 0x7ea   : > { %3993 = vmatmul.mubr.bf16.vlgmr.msra.gmra.mrb[0].mxu0 %v3047_v11 }
 0x7eb   :  { %4004 = vmatprep.mubr.msk.f32.mxu0 (%p2008_p0), %vm4309_vm6, %v4310_v7  ;;  %4020 = vmatpush3.bf16.msra.mxu0 (%p2008_p0), %v4019_v1 }
 0x7ec   :  { %4021 = vmatprep.subr.bf16.mxu0 (%p2008_p0), %v4308_v19 }
 0x7ef   :  { %4023 = vmatpush3.bf16.msra.mxu0 (%p2008_p0), %v4022_v61 }
 0x8ba   :  { %2010 = sbr.rel (!%p2008_p0) target bundleno = 883 (0x373), region = 87 }
 0x8bd   : > { %v3149_v53 = vpop.f32.mrb[0].mxu0 }
 0x8be   : > { %v4038_v17 = vadd.f32 %v4290_v36, %v3149_v53   ;;  %v3994_v5 = vpop.f32.mrb[1].mxu0 }
 0x8bf   : > { %v3152_v33 = vpop.f32.mrb[2].mxu0 }
 0x8c0   : > { %v3995_v3 = vpop.f32.mrb[3].mxu0  ;;  %v6145_v36 = vmov %v4038_v17  ;;  %v3163_v51 = vadd.f32 (%p2008_p0), %v4038_v17, %v3657_v47 }
 0x8c1   :  { %v3253_v36 = vld [vmem:[%s5936_s10 + $0x10] sm:$0xff] }
 0x8c2   :  { %v3164_v58 = vmax.f32 %v3163_v51, 0.0  ;;  %v4028_v15 = vpack.c.bf16 %v3254_v9, %v3253_v36 }
 0x8c4   :  { %4005 = vmatmul.mubr.msk.f32.vlgmr.msra.gmra.mrb[0].mxu0 %vm3176_vm7, %v3164_v58  ;;  %4029 = vmatpush3.bf16.msra.mxu1 %v4028_v15 }
 0x997   :  { %v3246_v29 = vpop.f32.mrb[0].mxu0 }
 0x998   :  { %v3247_v63 = vadd.f32 %v3658_v8, %v3246_v29  ;;  %v4006_v35 = vpop.f32.mrb[1].mxu0 }
 0x99a   :  { %v3250_v48 = vmax.f32 %v3247_v63, 0.0 }
 0x99c   :  { %4016 = vmatmul.mubr.msk.f32.vlgmr.msra.gmra.mrb[0].mxu1 %vm3176_vm7, %v3250_v48 }
 0xa6f   :  { %v3331_v18 = vpop.f32.mrb[0].mxu1 }
 0xa70   :  { %v3332_v0 = vadd.f32 %v3660_v27, %v3331_v18  ;;  %v4017_v45 = vpop.f32.mrb[1].mxu1 }
 0xa72   :  { %3336 = vst.msk [vmem:[%s5938_s12] sm:$0xff] %vm3335_vm8, %v3332_v0 }

</bundles_post_ra>
